<compile_context>
chip_gen: v5e
topology: v5e:2x2
jax: 0.10.0
libtpu: 0.0.40
codegen_flags: <defaults>
</compile_context>

<pallas_src>
import functools

import jax
import jax.numpy as jnp
from jax.experimental import pallas as pl
from jax.experimental.pallas import tpu as pltpu

EPS = 1e-3
KH = KW = 5
PAD = 2
CB = 128      # output-channel block size (lane-dense)
L = 8         # slab column where the interior starts (sublane-8 aligned)


def fused_kernel(x_ref, w1_ref, g1_ref, b1_ref, wd_ref, g2_ref, b2_ref,
                 o_ref, pad_ref, shift_ref, *, w_real):
    # x_ref:     (N, H, Wp, Cin)   NHWC input, W zero-padded to Wp (mult. of 8)
    # w1_ref:    (Cin, CB)         1x1 conv weight slab for this channel block
    # g1/b1:     (1, CB)           BN1 gamma / beta block
    # wd_ref:    (KH*KW, 1, CB)    depthwise 5x5 weights, row k = kh*KW + kw
    # g2/b2:     (1, CB)           BN2 gamma / beta block
    # o_ref:     (N, H, Wp, CB)    output block (columns >= w_real are junk)
    # pad_ref:   VMEM (N, H+2*PAD, WPA, CB) zero-padded activation slab
    # shift_ref: VMEM (N, H+2*PAD, Wp, CB)  per-kw realigned staging buffer
    N, H, Wp, Cin = x_ref.shape
    C = o_ref.shape[-1]
    HP = H + 2 * PAD
    inv_n = 1.0 / float(N * H * w_real)

    # validity mask over columns (1.0 for real columns, 0.0 for padded tail)
    col = jax.lax.broadcasted_iota(jnp.int32, (1, 1, Wp, C), 2)
    mask = (col < w_real).astype(jnp.float32)

    # ---- 1x1 conv == channel matmul on the MXU (reshapes are layout no-ops) ----
    x2d = x_ref[...].reshape(N * H * Wp, Cin)
    y = jnp.dot(x2d, w1_ref[...], preferred_element_type=jnp.float32)
    y4 = y.reshape(N, H, Wp, C)

    # ---- BN1 (training-mode batch stats, two-pass) + ReLU, fused affine ----
    # Padded columns of y4 are exactly zero, so the unmasked mean sum is exact.
    mean1 = jnp.sum(y4, axis=(0, 1, 2), keepdims=True) * inv_n
    d1 = (y4 - mean1) * mask
    var1 = jnp.sum(d1 * d1, axis=(0, 1, 2), keepdims=True) * inv_n
    scale1 = g1_ref[...].reshape(1, 1, 1, C) * jax.lax.rsqrt(var1 + EPS)
    shift1 = b1_ref[...].reshape(1, 1, 1, C) - mean1 * scale1
    act = jnp.maximum(y4 * scale1 + shift1, 0.0)

    # ---- zero-padded slab; interior starts at sublane column L (aligned) ----
    WPA = pad_ref.shape[2]
    pad_ref[:, 0:PAD, :, :] = jnp.zeros((N, PAD, WPA, C), jnp.float32)          # top halo
    pad_ref[:, H + PAD:HP, :, :] = jnp.zeros((N, PAD, WPA, C), jnp.float32)     # bottom halo
    pad_ref[:, PAD:H + PAD, L - PAD:L, :] = jnp.zeros((N, H, PAD, C), jnp.float32)  # left halo
    pad_ref[:, PAD:H + PAD, L:L + Wp, :] = act                                  # aligned, unmasked
    # right conv padding; also overwrites the junk act columns (order matters)
    pad_ref[:, PAD:H + PAD, L + w_real:L + Wp + PAD, :] = (
        jnp.zeros((N, H, Wp - w_real + PAD, C), jnp.float32))

    # ---- depthwise 5x5: realign sublanes once per kw; kh taps are free ----
    acc = jnp.zeros((N, H, Wp, C), jnp.float32)
    for kw in range(KW):                              # 5 staging copies total
        c0 = L - PAD + kw
        shift_ref[...] = pad_ref[:, :, c0:c0 + Wp, :]

        def kh_body(kh, a, kw=kw):
            w = wd_ref[kh * KW + kw]                          # (1, CB)
            return a + shift_ref[:, pl.ds(kh, H), :, :] * w   # leading-dim slice

        acc = jax.lax.fori_loop(0, KH, kh_body, acc, unroll=True)

    # ---- BN2 (training-mode batch stats, two-pass, masked) + affine ----
    mean2 = jnp.sum(acc * mask, axis=(0, 1, 2), keepdims=True) * inv_n
    d2 = (acc - mean2) * mask
    var2 = jnp.sum(d2 * d2, axis=(0, 1, 2), keepdims=True) * inv_n
    scale2 = g2_ref[...].reshape(1, 1, 1, C) * jax.lax.rsqrt(var2 + EPS)
    shift2 = b2_ref[...].reshape(1, 1, 1, C) - mean2 * scale2
    o_ref[...] = acc * scale2 + shift2


@jax.jit
def run_module(x_nchw, w1_oihw, g1, b1, wd_o1hw, g2, b2):
    """x_nchw: (N, 64, H, W). Returns (N, 384, H, W), matching the torch module."""
    N, Cin, H, W = x_nchw.shape
    Cout = w1_oihw.shape[0]
    assert Cout % CB == 0

    Wp = ((W + 7) // 8) * 8                   # pad W so (H, W) reshapes are tile-aligned
    WPA = ((L + Wp + PAD + 7) // 8) * 8       # slab width (interior at column L)

    # NCHW -> NHWC (channels on lanes), zero-pad W -> Wp
    x = jnp.transpose(x_nchw, (0, 2, 3, 1)).astype(jnp.float32)
    x = jnp.pad(x, ((0, 0), (0, 0), (0, Wp - W), (0, 0)))

    # (Cout, Cin, 1, 1) -> (Cin, Cout)
    w1 = jnp.transpose(w1_oihw[:, :, 0, 0], (1, 0)).astype(jnp.float32)
    # (Cout, 1, 5, 5) -> (KH*KW, 1, Cout), row k = kh*KW + kw
    wd = jnp.transpose(wd_o1hw[:, 0, :, :], (1, 2, 0)).reshape(KH * KW, 1, Cout)
    wd = wd.astype(jnp.float32)

    g1_ = g1.reshape(1, Cout).astype(jnp.float32)
    b1_ = b1.reshape(1, Cout).astype(jnp.float32)
    g2_ = g2.reshape(1, Cout).astype(jnp.float32)
    b2_ = b2.reshape(1, Cout).astype(jnp.float32)

    out_nhwc = pl.pallas_call(
        functools.partial(fused_kernel, w_real=W),
        out_shape=jax.ShapeDtypeStruct((N, H, Wp, Cout), jnp.float32),
        grid_spec=pltpu.PrefetchScalarGridSpec(
            num_scalar_prefetch=0,
            grid=(Cout // CB,),
            in_specs=[
                pl.BlockSpec((N, H, Wp, Cin), lambda c: (0, 0, 0, 0)),   # x (shared)
                pl.BlockSpec((Cin, CB), lambda c: (0, c)),               # 1x1 weight block
                pl.BlockSpec((1, CB), lambda c: (0, c)),                 # gamma1
                pl.BlockSpec((1, CB), lambda c: (0, c)),                 # beta1
                pl.BlockSpec((KH * KW, 1, CB), lambda c: (0, 0, c)),     # depthwise weights
                pl.BlockSpec((1, CB), lambda c: (0, c)),                 # gamma2
                pl.BlockSpec((1, CB), lambda c: (0, c)),                 # beta2
            ],
            out_specs=pl.BlockSpec((N, H, Wp, CB), lambda c: (0, 0, 0, c)),
            scratch_shapes=[
                pltpu.VMEM((N, H + 2 * PAD, WPA, CB), jnp.float32),   # padded slab
                pltpu.VMEM((N, H + 2 * PAD, Wp, CB), jnp.float32),    # kw-realigned staging
            ],
        ),
        compiler_params=pltpu.CompilerParams(
            dimension_semantics=("parallel",),
        ),
    )(x, w1, g1_, b1_, wd, g2_, b2_)

    # Drop padded columns, NHWC -> NCHW to match the torch output layout.
    # (A consumer that accepts NHWC could skip this extra HBM round trip.)
    return jnp.transpose(out_nhwc[:, :, :W, :], (0, 3, 1, 2))


def reference(x_nchw, w1_oihw, g1, b1, wd_o1hw, g2, b2):
    """Pure-JAX reference mirroring the torch forward (training-mode BN)."""
    def bn(y, g, b):
        mean = jnp.mean(y, axis=(0, 2, 3), keepdims=True)
        var = jnp.mean((y - mean) ** 2, axis=(0, 2, 3), keepdims=True)
        return (y - mean) * jax.lax.rsqrt(var + EPS) * g[None, :, None, None] \
               + b[None, :, None, None]

    dn = ('NCHW', 'OIHW', 'NCHW')
    y = jax.lax.conv_general_dilated(x_nchw, w1_oihw, (1, 1), 'VALID',
                                     dimension_numbers=dn,
                                     precision=jax.lax.Precision.HIGHEST)
    y = jnp.maximum(bn(y, g1, b1), 0.0)
    y = jax.lax.conv_general_dilated(y, wd_o1hw, (1, 1),
                                     ((PAD, PAD), (PAD, PAD)),
                                     dimension_numbers=dn,
                                     feature_group_count=wd_o1hw.shape[0],
                                     precision=jax.lax.Precision.HIGHEST)
    return bn(y, g2, b2)


if __name__ == "__main__":
    key = jax.random.PRNGKey(0)
    k_x, k_w1, k_wd, k_g1, k_b1, k_g2, k_b2 = jax.random.split(key, 7)

    N, Cin, Cout, H, W = 1, 64, 384, 14, 14   # shapes implied by the module

    x = jax.random.normal(k_x, (N, Cin, H, W), jnp.float32)
    w1 = jax.random.normal(k_w1, (Cout, Cin, 1, 1), jnp.float32) * 0.1
    wd = jax.random.normal(k_wd, (Cout, 1, KH, KW), jnp.float32) * 0.1
    g1 = 1.0 + 0.1 * jax.random.normal(k_g1, (Cout,), jnp.float32)
    b1 = 0.1 * jax.random.normal(k_b1, (Cout,), jnp.float32)
    g2 = 1.0 + 0.1 * jax.random.normal(k_g2, (Cout,), jnp.float32)
    b2 = 0.1 * jax.random.normal(k_b2, (Cout,), jnp.float32)

    out = jax.block_until_ready(run_module(x, w1, g1, b1, wd, g2, b2))
    ref = jax.block_until_ready(reference(x, w1, g1, b1, wd, g2, b2))

    assert out.shape == (N, Cout, H, W), out.shape
    max_err = float(jnp.max(jnp.abs(out - ref)))
    assert jnp.allclose(out, ref, atol=2e-4, rtol=2e-4), max_err

    print("KERNEL_OK")
</pallas_src>

<mosaic_0001>
module attributes {stable_mosaic.version = 11 : i64} {
  func.func @fused_kernel(%arg0: i32, %arg1: memref<1x14x16x64xf32, #tpu.memory_space<vmem>>, %arg2: memref<64x128xf32, #tpu.memory_space<vmem>>, %arg3: memref<1x128xf32, #tpu.memory_space<vmem>>, %arg4: memref<1x128xf32, #tpu.memory_space<vmem>>, %arg5: memref<25x1x128xf32, #tpu.memory_space<vmem>>, %arg6: memref<1x128xf32, #tpu.memory_space<vmem>>, %arg7: memref<1x128xf32, #tpu.memory_space<vmem>>, %arg8: memref<1x14x16x128xf32, #tpu.memory_space<vmem>>, %arg9: memref<1x18x32x128xf32, #tpu.memory_space<vmem>>, %arg10: memref<1x18x16x128xf32, #tpu.memory_space<vmem>>) attributes {dimension_semantics = [#tpu.dimension_semantics<parallel>], iteration_bounds = array<i64: 3>, scalar_prefetch = 0 : i64, scratch_operands = 2 : i64, tpu.core_type = #tpu.core_type<tc>, window_params = [{pipeline_mode = #tpu.pipeline_mode<synchronous>, transform_indices = @transform_0, window_bounds = array<i64: 1, 14, 16, 64>}, {transform_indices = @transform_1, window_bounds = array<i64: 64, 128>}, {transform_indices = @transform_2, window_bounds = array<i64: 1, 128>}, {transform_indices = @transform_3, window_bounds = array<i64: 1, 128>}, {transform_indices = @transform_4, window_bounds = array<i64: 25, 1, 128>}, {transform_indices = @transform_5, window_bounds = array<i64: 1, 128>}, {transform_indices = @transform_6, window_bounds = array<i64: 1, 128>}, {transform_indices = @transform_7, window_bounds = array<i64: 1, 14, 16, 128>}]} {
    %0 = tpu.iota {dimensions = array<i32: 2>} : vector<1x1x16x128xi32>
    %c14_i32 = arith.constant 14 : i32
    %1 = vector.broadcast %c14_i32 : i32 to vector<1x1x16x128xi32>
    %2 = arith.cmpi slt, %0, %1 : vector<1x1x16x128xi32>
    %3 = arith.extui %2 : vector<1x1x16x128xi1> to vector<1x1x16x128xi32>
    %4 = arith.sitofp %3 : vector<1x1x16x128xi32> to vector<1x1x16x128xf32>
    %c0 = arith.constant 0 : index
    %c0_0 = arith.constant 0 : index
    %c0_1 = arith.constant 0 : index
    %c0_2 = arith.constant 0 : index
    %5 = vector.load %arg1[%c0, %c0_0, %c0_1, %c0_2] : memref<1x14x16x64xf32, #tpu.memory_space<vmem>>, vector<1x14x16x64xf32>
    %6 = vector.shape_cast %5 : vector<1x14x16x64xf32> to vector<224x64xf32>
    %c0_3 = arith.constant 0 : index
    %c0_4 = arith.constant 0 : index
    %7 = vector.load %arg2[%c0_3, %c0_4] : memref<64x128xf32, #tpu.memory_space<vmem>>, vector<64x128xf32>
    %cst = arith.constant dense<0.000000e+00> : vector<224x128xf32>
    %8 = tpu.matmul %6, %7, %cst {dimension_numbers = #tpu.dot_dimension_numbers<[1], [0], [0], [1], [0, 0, 1, 1], [], []>} : vector<224x64xf32>, vector<64x128xf32>, vector<224x128xf32> -> vector<224x128xf32>
    %9 = vector.shape_cast %8 : vector<224x128xf32> to vector<1x14x16x128xf32>
    %cst_5 = arith.constant dense<0.000000e+00> : vector<128xf32>
    %10 = vector.multi_reduction <add>, %9, %cst_5 [0, 1, 2] : vector<1x14x16x128xf32> to vector<128xf32>
    %11 = vector.shape_cast %10 : vector<128xf32> to vector<1x1x1x128xf32>
    %cst_6 = arith.constant 0.00510204071 : f32
    %12 = vector.broadcast %cst_6 : f32 to vector<1x1x1x128xf32>
    %13 = arith.mulf %11, %12 : vector<1x1x1x128xf32>
    %14 = vector.broadcast %13 : vector<1x1x1x128xf32> to vector<1x14x16x128xf32>
    %15 = arith.subf %9, %14 : vector<1x14x16x128xf32>
    %16 = vector.broadcast %4 : vector<1x1x16x128xf32> to vector<1x14x16x128xf32>
    %17 = arith.mulf %15, %16 : vector<1x14x16x128xf32>
    %18 = arith.mulf %17, %17 : vector<1x14x16x128xf32>
    %cst_7 = arith.constant dense<0.000000e+00> : vector<128xf32>
    %19 = vector.multi_reduction <add>, %18, %cst_7 [0, 1, 2] : vector<1x14x16x128xf32> to vector<128xf32>
    %20 = vector.shape_cast %19 : vector<128xf32> to vector<1x1x1x128xf32>
    %cst_8 = arith.constant 0.00510204071 : f32
    %21 = vector.broadcast %cst_8 : f32 to vector<1x1x1x128xf32>
    %22 = arith.mulf %20, %21 : vector<1x1x1x128xf32>
    %c0_9 = arith.constant 0 : index
    %c0_10 = arith.constant 0 : index
    %23 = vector.load %arg3[%c0_9, %c0_10] : memref<1x128xf32, #tpu.memory_space<vmem>>, vector<1x128xf32>
    %24 = vector.shape_cast %23 : vector<1x128xf32> to vector<1x1x1x128xf32>
    %cst_11 = arith.constant 1.000000e-03 : f32
    %25 = vector.broadcast %cst_11 : f32 to vector<1x1x1x128xf32>
    %26 = arith.addf %22, %25 : vector<1x1x1x128xf32>
    %27 = math.rsqrt %26 : vector<1x1x1x128xf32>
    %28 = arith.mulf %24, %27 : vector<1x1x1x128xf32>
    %c0_12 = arith.constant 0 : index
    %c0_13 = arith.constant 0 : index
    %29 = vector.load %arg4[%c0_12, %c0_13] : memref<1x128xf32, #tpu.memory_space<vmem>>, vector<1x128xf32>
    %30 = vector.shape_cast %29 : vector<1x128xf32> to vector<1x1x1x128xf32>
    %31 = arith.mulf %13, %28 : vector<1x1x1x128xf32>
    %32 = arith.subf %30, %31 : vector<1x1x1x128xf32>
    %33 = vector.broadcast %28 : vector<1x1x1x128xf32> to vector<1x14x16x128xf32>
    %34 = arith.mulf %9, %33 : vector<1x14x16x128xf32>
    %35 = vector.broadcast %32 : vector<1x1x1x128xf32> to vector<1x14x16x128xf32>
    %36 = arith.addf %34, %35 : vector<1x14x16x128xf32>
    %cst_14 = arith.constant 0.000000e+00 : f32
    %37 = vector.broadcast %cst_14 : f32 to vector<1x14x16x128xf32>
    %38 = arith.maximumf %36, %37 : vector<1x14x16x128xf32>
    %cst_15 = arith.constant 0.000000e+00 : f32
    %39 = vector.broadcast %cst_15 : f32 to vector<1x2x32x128xf32>
    %c0_16 = arith.constant 0 : index
    %c0_17 = arith.constant 0 : index
    %c0_18 = arith.constant 0 : index
    %c0_19 = arith.constant 0 : index
    %40 = vector.load %arg9[%c0_16, %c0_17, %c0_18, %c0_19] : memref<1x18x32x128xf32, #tpu.memory_space<vmem>>, vector<1x2x32x128xf32>
    tpu.vector_store %arg9[%c0_16, %c0_17, %c0_18, %c0_19], %39 {strides = array<i32>} : memref<1x18x32x128xf32, #tpu.memory_space<vmem>>, vector<1x2x32x128xf32>,
    %cst_20 = arith.constant 0.000000e+00 : f32
    %41 = vector.broadcast %cst_20 : f32 to vector<1x2x32x128xf32>
    %c0_21 = arith.constant 0 : index
    %c16 = arith.constant 16 : index
    %c0_22 = arith.constant 0 : index
    %c0_23 = arith.constant 0 : index
    %42 = vector.load %arg9[%c0_21, %c16, %c0_22, %c0_23] : memref<1x18x32x128xf32, #tpu.memory_space<vmem>>, vector<1x2x32x128xf32>
    tpu.vector_store %arg9[%c0_21, %c16, %c0_22, %c0_23], %41 {strides = array<i32>} : memref<1x18x32x128xf32, #tpu.memory_space<vmem>>, vector<1x2x32x128xf32>,
    %cst_24 = arith.constant 0.000000e+00 : f32
    %43 = vector.broadcast %cst_24 : f32 to vector<1x14x2x128xf32>
    %c0_25 = arith.constant 0 : index
    %c2 = arith.constant 2 : index
    %c6 = arith.constant 6 : index
    %c0_26 = arith.constant 0 : index
    %44 = vector.load %arg9[%c0_25, %c2, %c6, %c0_26] : memref<1x18x32x128xf32, #tpu.memory_space<vmem>>, vector<1x14x2x128xf32>
    tpu.vector_store %arg9[%c0_25, %c2, %c6, %c0_26], %43 {strides = array<i32>} : memref<1x18x32x128xf32, #tpu.memory_space<vmem>>, vector<1x14x2x128xf32>,
    %c0_27 = arith.constant 0 : index
    %c2_28 = arith.constant 2 : index
    %c8 = arith.constant 8 : index
    %c0_29 = arith.constant 0 : index
    %45 = vector.load %arg9[%c0_27, %c2_28, %c8, %c0_29] : memref<1x18x32x128xf32, #tpu.memory_space<vmem>>, vector<1x14x16x128xf32>
    tpu.vector_store %arg9[%c0_27, %c2_28, %c8, %c0_29], %38 {strides = array<i32>} : memref<1x18x32x128xf32, #tpu.memory_space<vmem>>, vector<1x14x16x128xf32>,
    %cst_30 = arith.constant 0.000000e+00 : f32
    %46 = vector.broadcast %cst_30 : f32 to vector<1x14x4x128xf32>
    %c0_31 = arith.constant 0 : index
    %c2_32 = arith.constant 2 : index
    %c22 = arith.constant 22 : index
    %c0_33 = arith.constant 0 : index
    %47 = vector.load %arg9[%c0_31, %c2_32, %c22, %c0_33] : memref<1x18x32x128xf32, #tpu.memory_space<vmem>>, vector<1x14x4x128xf32>
    tpu.vector_store %arg9[%c0_31, %c2_32, %c22, %c0_33], %46 {strides = array<i32>} : memref<1x18x32x128xf32, #tpu.memory_space<vmem>>, vector<1x14x4x128xf32>,
    %cst_34 = arith.constant 0.000000e+00 : f32
    %48 = vector.broadcast %cst_34 : f32 to vector<1x14x16x128xf32>
    %c0_35 = arith.constant 0 : index
    %c0_36 = arith.constant 0 : index
    %c6_37 = arith.constant 6 : index
    %c0_38 = arith.constant 0 : index
    %49 = vector.load %arg9[%c0_35, %c0_36, %c6_37, %c0_38] : memref<1x18x32x128xf32, #tpu.memory_space<vmem>>, vector<1x18x16x128xf32>
    %c0_39 = arith.constant 0 : index
    %c0_40 = arith.constant 0 : index
    %c0_41 = arith.constant 0 : index
    %c0_42 = arith.constant 0 : index
    %50 = vector.load %arg10[%c0_39, %c0_40, %c0_41, %c0_42] : memref<1x18x16x128xf32, #tpu.memory_space<vmem>>, vector<1x18x16x128xf32>
    tpu.vector_store %arg10[%c0_39, %c0_40, %c0_41, %c0_42], %49 {strides = array<i32>} : memref<1x18x16x128xf32, #tpu.memory_space<vmem>>, vector<1x18x16x128xf32>,
    %c0_i32 = arith.constant 0 : i32
    %c5_i32 = arith.constant 5 : i32
    %51 = arith.muli %c0_i32, %c5_i32 : i32
    %c0_i32_43 = arith.constant 0 : i32
    %52 = arith.addi %51, %c0_i32_43 : i32
    %53 = arith.index_cast %52 : i32 to index
    %c0_44 = arith.constant 0 : index
    %c0_45 = arith.constant 0 : index
    %54 = vector.load %arg5[%53, %c0_44, %c0_45] : memref<25x1x128xf32, #tpu.memory_space<vmem>>, vector<1x1x128xf32>
    %55 = vector.shape_cast %54 : vector<1x1x128xf32> to vector<1x128xf32>
    %c0_46 = arith.constant 0 : index
    %56 = arith.index_cast %c0_i32 : i32 to index
    %c0_47 = arith.constant 0 : index
    %c0_48 = arith.constant 0 : index
    %57 = vector.load %arg10[%c0_46, %56, %c0_47, %c0_48] : memref<1x18x16x128xf32, #tpu.memory_space<vmem>>, vector<1x14x16x128xf32>
    %58 = vector.shape_cast %55 : vector<1x128xf32> to vector<1x1x1x128xf32>
    %59 = vector.broadcast %58 : vector<1x1x1x128xf32> to vector<1x14x16x128xf32>
    %60 = arith.mulf %57, %59 : vector<1x14x16x128xf32>
    %61 = arith.addf %48, %60 : vector<1x14x16x128xf32>
    %c1_i32 = arith.constant 1 : i32
    %c5_i32_49 = arith.constant 5 : i32
    %62 = arith.muli %c1_i32, %c5_i32_49 : i32
    %c0_i32_50 = arith.constant 0 : i32
    %63 = arith.addi %62, %c0_i32_50 : i32
    %64 = arith.index_cast %63 : i32 to index
    %c0_51 = arith.constant 0 : index
    %c0_52 = arith.constant 0 : index
    %65 = vector.load %arg5[%64, %c0_51, %c0_52] : memref<25x1x128xf32, #tpu.memory_space<vmem>>, vector<1x1x128xf32>
    %66 = vector.shape_cast %65 : vector<1x1x128xf32> to vector<1x128xf32>
    %c0_53 = arith.constant 0 : index
    %67 = arith.index_cast %c1_i32 : i32 to index
    %c0_54 = arith.constant 0 : index
    %c0_55 = arith.constant 0 : index
    %68 = vector.load %arg10[%c0_53, %67, %c0_54, %c0_55] : memref<1x18x16x128xf32, #tpu.memory_space<vmem>>, vector<1x14x16x128xf32>
    %69 = vector.shape_cast %66 : vector<1x128xf32> to vector<1x1x1x128xf32>
    %70 = vector.broadcast %69 : vector<1x1x1x128xf32> to vector<1x14x16x128xf32>
    %71 = arith.mulf %68, %70 : vector<1x14x16x128xf32>
    %72 = arith.addf %61, %71 : vector<1x14x16x128xf32>
    %c2_i32 = arith.constant 2 : i32
    %c5_i32_56 = arith.constant 5 : i32
    %73 = arith.muli %c2_i32, %c5_i32_56 : i32
    %c0_i32_57 = arith.constant 0 : i32
    %74 = arith.addi %73, %c0_i32_57 : i32
    %75 = arith.index_cast %74 : i32 to index
    %c0_58 = arith.constant 0 : index
    %c0_59 = arith.constant 0 : index
    %76 = vector.load %arg5[%75, %c0_58, %c0_59] : memref<25x1x128xf32, #tpu.memory_space<vmem>>, vector<1x1x128xf32>
    %77 = vector.shape_cast %76 : vector<1x1x128xf32> to vector<1x128xf32>
    %c0_60 = arith.constant 0 : index
    %78 = arith.index_cast %c2_i32 : i32 to index
    %c0_61 = arith.constant 0 : index
    %c0_62 = arith.constant 0 : index
    %79 = vector.load %arg10[%c0_60, %78, %c0_61, %c0_62] : memref<1x18x16x128xf32, #tpu.memory_space<vmem>>, vector<1x14x16x128xf32>
    %80 = vector.shape_cast %77 : vector<1x128xf32> to vector<1x1x1x128xf32>
    %81 = vector.broadcast %80 : vector<1x1x1x128xf32> to vector<1x14x16x128xf32>
    %82 = arith.mulf %79, %81 : vector<1x14x16x128xf32>
    %83 = arith.addf %72, %82 : vector<1x14x16x128xf32>
    %c3_i32 = arith.constant 3 : i32
    %c5_i32_63 = arith.constant 5 : i32
    %84 = arith.muli %c3_i32, %c5_i32_63 : i32
    %c0_i32_64 = arith.constant 0 : i32
    %85 = arith.addi %84, %c0_i32_64 : i32
    %86 = arith.index_cast %85 : i32 to index
    %c0_65 = arith.constant 0 : index
    %c0_66 = arith.constant 0 : index
    %87 = vector.load %arg5[%86, %c0_65, %c0_66] : memref<25x1x128xf32, #tpu.memory_space<vmem>>, vector<1x1x128xf32>
    %88 = vector.shape_cast %87 : vector<1x1x128xf32> to vector<1x128xf32>
    %c0_67 = arith.constant 0 : index
    %89 = arith.index_cast %c3_i32 : i32 to index
    %c0_68 = arith.constant 0 : index
    %c0_69 = arith.constant 0 : index
    %90 = vector.load %arg10[%c0_67, %89, %c0_68, %c0_69] : memref<1x18x16x128xf32, #tpu.memory_space<vmem>>, vector<1x14x16x128xf32>
    %91 = vector.shape_cast %88 : vector<1x128xf32> to vector<1x1x1x128xf32>
    %92 = vector.broadcast %91 : vector<1x1x1x128xf32> to vector<1x14x16x128xf32>
    %93 = arith.mulf %90, %92 : vector<1x14x16x128xf32>
    %94 = arith.addf %83, %93 : vector<1x14x16x128xf32>
    %c4_i32 = arith.constant 4 : i32
    %c5_i32_70 = arith.constant 5 : i32
    %95 = arith.muli %c4_i32, %c5_i32_70 : i32
    %c0_i32_71 = arith.constant 0 : i32
    %96 = arith.addi %95, %c0_i32_71 : i32
    %97 = arith.index_cast %96 : i32 to index
    %c0_72 = arith.constant 0 : index
    %c0_73 = arith.constant 0 : index
    %98 = vector.load %arg5[%97, %c0_72, %c0_73] : memref<25x1x128xf32, #tpu.memory_space<vmem>>, vector<1x1x128xf32>
    %99 = vector.shape_cast %98 : vector<1x1x128xf32> to vector<1x128xf32>
    %c0_74 = arith.constant 0 : index
    %100 = arith.index_cast %c4_i32 : i32 to index
    %c0_75 = arith.constant 0 : index
    %c0_76 = arith.constant 0 : index
    %101 = vector.load %arg10[%c0_74, %100, %c0_75, %c0_76] : memref<1x18x16x128xf32, #tpu.memory_space<vmem>>, vector<1x14x16x128xf32>
    %102 = vector.shape_cast %99 : vector<1x128xf32> to vector<1x1x1x128xf32>
    %103 = vector.broadcast %102 : vector<1x1x1x128xf32> to vector<1x14x16x128xf32>
    %104 = arith.mulf %101, %103 : vector<1x14x16x128xf32>
    %105 = arith.addf %94, %104 : vector<1x14x16x128xf32>
    %c5_i32_77 = arith.constant 5 : i32
    %c0_78 = arith.constant 0 : index
    %c0_79 = arith.constant 0 : index
    %c7 = arith.constant 7 : index
    %c0_80 = arith.constant 0 : index
    %106 = vector.load %arg9[%c0_78, %c0_79, %c7, %c0_80] : memref<1x18x32x128xf32, #tpu.memory_space<vmem>>, vector<1x18x16x128xf32>
    %c0_81 = arith.constant 0 : index
    %c0_82 = arith.constant 0 : index
    %c0_83 = arith.constant 0 : index
    %c0_84 = arith.constant 0 : index
    %107 = vector.load %arg10[%c0_81, %c0_82, %c0_83, %c0_84] : memref<1x18x16x128xf32, #tpu.memory_space<vmem>>, vector<1x18x16x128xf32>
    tpu.vector_store %arg10[%c0_81, %c0_82, %c0_83, %c0_84], %106 {strides = array<i32>} : memref<1x18x16x128xf32, #tpu.memory_space<vmem>>, vector<1x18x16x128xf32>,
    %c0_i32_85 = arith.constant 0 : i32
    %c5_i32_86 = arith.constant 5 : i32
    %108 = arith.muli %c0_i32_85, %c5_i32_86 : i32
    %c1_i32_87 = arith.constant 1 : i32
    %109 = arith.addi %108, %c1_i32_87 : i32
    %110 = arith.index_cast %109 : i32 to index
    %c0_88 = arith.constant 0 : index
    %c0_89 = arith.constant 0 : index
    %111 = vector.load %arg5[%110, %c0_88, %c0_89] : memref<25x1x128xf32, #tpu.memory_space<vmem>>, vector<1x1x128xf32>
    %112 = vector.shape_cast %111 : vector<1x1x128xf32> to vector<1x128xf32>
    %c0_90 = arith.constant 0 : index
    %113 = arith.index_cast %c0_i32_85 : i32 to index
    %c0_91 = arith.constant 0 : index
    %c0_92 = arith.constant 0 : index
    %114 = vector.load %arg10[%c0_90, %113, %c0_91, %c0_92] : memref<1x18x16x128xf32, #tpu.memory_space<vmem>>, vector<1x14x16x128xf32>
    %115 = vector.shape_cast %112 : vector<1x128xf32> to vector<1x1x1x128xf32>
    %116 = vector.broadcast %115 : vector<1x1x1x128xf32> to vector<1x14x16x128xf32>
    %117 = arith.mulf %114, %116 : vector<1x14x16x128xf32>
    %118 = arith.addf %105, %117 : vector<1x14x16x128xf32>
    %c1_i32_93 = arith.constant 1 : i32
    %c5_i32_94 = arith.constant 5 : i32
    %119 = arith.muli %c1_i32_93, %c5_i32_94 : i32
    %c1_i32_95 = arith.constant 1 : i32
    %120 = arith.addi %119, %c1_i32_95 : i32
    %121 = arith.index_cast %120 : i32 to index
    %c0_96 = arith.constant 0 : index
    %c0_97 = arith.constant 0 : index
    %122 = vector.load %arg5[%121, %c0_96, %c0_97] : memref<25x1x128xf32, #tpu.memory_space<vmem>>, vector<1x1x128xf32>
    %123 = vector.shape_cast %122 : vector<1x1x128xf32> to vector<1x128xf32>
    %c0_98 = arith.constant 0 : index
    %124 = arith.index_cast %c1_i32_93 : i32 to index
    %c0_99 = arith.constant 0 : index
    %c0_100 = arith.constant 0 : index
    %125 = vector.load %arg10[%c0_98, %124, %c0_99, %c0_100] : memref<1x18x16x128xf32, #tpu.memory_space<vmem>>, vector<1x14x16x128xf32>
    %126 = vector.shape_cast %123 : vector<1x128xf32> to vector<1x1x1x128xf32>
    %127 = vector.broadcast %126 : vector<1x1x1x128xf32> to vector<1x14x16x128xf32>
    %128 = arith.mulf %125, %127 : vector<1x14x16x128xf32>
    %129 = arith.addf %118, %128 : vector<1x14x16x128xf32>
    %c2_i32_101 = arith.constant 2 : i32
    %c5_i32_102 = arith.constant 5 : i32
    %130 = arith.muli %c2_i32_101, %c5_i32_102 : i32
    %c1_i32_103 = arith.constant 1 : i32
    %131 = arith.addi %130, %c1_i32_103 : i32
    %132 = arith.index_cast %131 : i32 to index
    %c0_104 = arith.constant 0 : index
    %c0_105 = arith.constant 0 : index
    %133 = vector.load %arg5[%132, %c0_104, %c0_105] : memref<25x1x128xf32, #tpu.memory_space<vmem>>, vector<1x1x128xf32>
    %134 = vector.shape_cast %133 : vector<1x1x128xf32> to vector<1x128xf32>
    %c0_106 = arith.constant 0 : index
    %135 = arith.index_cast %c2_i32_101 : i32 to index
    %c0_107 = arith.constant 0 : index
    %c0_108 = arith.constant 0 : index
    %136 = vector.load %arg10[%c0_106, %135, %c0_107, %c0_108] : memref<1x18x16x128xf32, #tpu.memory_space<vmem>>, vector<1x14x16x128xf32>
    %137 = vector.shape_cast %134 : vector<1x128xf32> to vector<1x1x1x128xf32>
    %138 = vector.broadcast %137 : vector<1x1x1x128xf32> to vector<1x14x16x128xf32>
    %139 = arith.mulf %136, %138 : vector<1x14x16x128xf32>
    %140 = arith.addf %129, %139 : vector<1x14x16x128xf32>
    %c3_i32_109 = arith.constant 3 : i32
    %c5_i32_110 = arith.constant 5 : i32
    %141 = arith.muli %c3_i32_109, %c5_i32_110 : i32
    %c1_i32_111 = arith.constant 1 : i32
    %142 = arith.addi %141, %c1_i32_111 : i32
    %143 = arith.index_cast %142 : i32 to index
    %c0_112 = arith.constant 0 : index
    %c0_113 = arith.constant 0 : index
    %144 = vector.load %arg5[%143, %c0_112, %c0_113] : memref<25x1x128xf32, #tpu.memory_space<vmem>>, vector<1x1x128xf32>
    %145 = vector.shape_cast %144 : vector<1x1x128xf32> to vector<1x128xf32>
    %c0_114 = arith.constant 0 : index
    %146 = arith.index_cast %c3_i32_109 : i32 to index
    %c0_115 = arith.constant 0 : index
    %c0_116 = arith.constant 0 : index
    %147 = vector.load %arg10[%c0_114, %146, %c0_115, %c0_116] : memref<1x18x16x128xf32, #tpu.memory_space<vmem>>, vector<1x14x16x128xf32>
    %148 = vector.shape_cast %145 : vector<1x128xf32> to vector<1x1x1x128xf32>
    %149 = vector.broadcast %148 : vector<1x1x1x128xf32> to vector<1x14x16x128xf32>
    %150 = arith.mulf %147, %149 : vector<1x14x16x128xf32>
    %151 = arith.addf %140, %150 : vector<1x14x16x128xf32>
    %c4_i32_117 = arith.constant 4 : i32
    %c5_i32_118 = arith.constant 5 : i32
    %152 = arith.muli %c4_i32_117, %c5_i32_118 : i32
    %c1_i32_119 = arith.constant 1 : i32
    %153 = arith.addi %152, %c1_i32_119 : i32
    %154 = arith.index_cast %153 : i32 to index
    %c0_120 = arith.constant 0 : index
    %c0_121 = arith.constant 0 : index
    %155 = vector.load %arg5[%154, %c0_120, %c0_121] : memref<25x1x128xf32, #tpu.memory_space<vmem>>, vector<1x1x128xf32>
    %156 = vector.shape_cast %155 : vector<1x1x128xf32> to vector<1x128xf32>
    %c0_122 = arith.constant 0 : index
    %157 = arith.index_cast %c4_i32_117 : i32 to index
    %c0_123 = arith.constant 0 : index
    %c0_124 = arith.constant 0 : index
    %158 = vector.load %arg10[%c0_122, %157, %c0_123, %c0_124] : memref<1x18x16x128xf32, #tpu.memory_space<vmem>>, vector<1x14x16x128xf32>
    %159 = vector.shape_cast %156 : vector<1x128xf32> to vector<1x1x1x128xf32>
    %160 = vector.broadcast %159 : vector<1x1x1x128xf32> to vector<1x14x16x128xf32>
    %161 = arith.mulf %158, %160 : vector<1x14x16x128xf32>
    %162 = arith.addf %151, %161 : vector<1x14x16x128xf32>
    %c5_i32_125 = arith.constant 5 : i32
    %c0_126 = arith.constant 0 : index
    %c0_127 = arith.constant 0 : index
    %c8_128 = arith.constant 8 : index
    %c0_129 = arith.constant 0 : index
    %163 = vector.load %arg9[%c0_126, %c0_127, %c8_128, %c0_129] : memref<1x18x32x128xf32, #tpu.memory_space<vmem>>, vector<1x18x16x128xf32>
    %c0_130 = arith.constant 0 : index
    %c0_131 = arith.constant 0 : index
    %c0_132 = arith.constant 0 : index
    %c0_133 = arith.constant 0 : index
    %164 = vector.load %arg10[%c0_130, %c0_131, %c0_132, %c0_133] : memref<1x18x16x128xf32, #tpu.memory_space<vmem>>, vector<1x18x16x128xf32>
    tpu.vector_store %arg10[%c0_130, %c0_131, %c0_132, %c0_133], %163 {strides = array<i32>} : memref<1x18x16x128xf32, #tpu.memory_space<vmem>>, vector<1x18x16x128xf32>,
    %c0_i32_134 = arith.constant 0 : i32
    %c5_i32_135 = arith.constant 5 : i32
    %165 = arith.muli %c0_i32_134, %c5_i32_135 : i32
    %c2_i32_136 = arith.constant 2 : i32
    %166 = arith.addi %165, %c2_i32_136 : i32
    %167 = arith.index_cast %166 : i32 to index
    %c0_137 = arith.constant 0 : index
    %c0_138 = arith.constant 0 : index
    %168 = vector.load %arg5[%167, %c0_137, %c0_138] : memref<25x1x128xf32, #tpu.memory_space<vmem>>, vector<1x1x128xf32>
    %169 = vector.shape_cast %168 : vector<1x1x128xf32> to vector<1x128xf32>
    %c0_139 = arith.constant 0 : index
    %170 = arith.index_cast %c0_i32_134 : i32 to index
    %c0_140 = arith.constant 0 : index
    %c0_141 = arith.constant 0 : index
    %171 = vector.load %arg10[%c0_139, %170, %c0_140, %c0_141] : memref<1x18x16x128xf32, #tpu.memory_space<vmem>>, vector<1x14x16x128xf32>
    %172 = vector.shape_cast %169 : vector<1x128xf32> to vector<1x1x1x128xf32>
    %173 = vector.broadcast %172 : vector<1x1x1x128xf32> to vector<1x14x16x128xf32>
    %174 = arith.mulf %171, %173 : vector<1x14x16x128xf32>
    %175 = arith.addf %162, %174 : vector<1x14x16x128xf32>
    %c1_i32_142 = arith.constant 1 : i32
    %c5_i32_143 = arith.constant 5 : i32
    %176 = arith.muli %c1_i32_142, %c5_i32_143 : i32
    %c2_i32_144 = arith.constant 2 : i32
    %177 = arith.addi %176, %c2_i32_144 : i32
    %178 = arith.index_cast %177 : i32 to index
    %c0_145 = arith.constant 0 : index
    %c0_146 = arith.constant 0 : index
    %179 = vector.load %arg5[%178, %c0_145, %c0_146] : memref<25x1x128xf32, #tpu.memory_space<vmem>>, vector<1x1x128xf32>
    %180 = vector.shape_cast %179 : vector<1x1x128xf32> to vector<1x128xf32>
    %c0_147 = arith.constant 0 : index
    %181 = arith.index_cast %c1_i32_142 : i32 to index
    %c0_148 = arith.constant 0 : index
    %c0_149 = arith.constant 0 : index
    %182 = vector.load %arg10[%c0_147, %181, %c0_148, %c0_149] : memref<1x18x16x128xf32, #tpu.memory_space<vmem>>, vector<1x14x16x128xf32>
    %183 = vector.shape_cast %180 : vector<1x128xf32> to vector<1x1x1x128xf32>
    %184 = vector.broadcast %183 : vector<1x1x1x128xf32> to vector<1x14x16x128xf32>
    %185 = arith.mulf %182, %184 : vector<1x14x16x128xf32>
    %186 = arith.addf %175, %185 : vector<1x14x16x128xf32>
    %c2_i32_150 = arith.constant 2 : i32
    %c5_i32_151 = arith.constant 5 : i32
    %187 = arith.muli %c2_i32_150, %c5_i32_151 : i32
    %c2_i32_152 = arith.constant 2 : i32
    %188 = arith.addi %187, %c2_i32_152 : i32
    %189 = arith.index_cast %188 : i32 to index
    %c0_153 = arith.constant 0 : index
    %c0_154 = arith.constant 0 : index
    %190 = vector.load %arg5[%189, %c0_153, %c0_154] : memref<25x1x128xf32, #tpu.memory_space<vmem>>, vector<1x1x128xf32>
    %191 = vector.shape_cast %190 : vector<1x1x128xf32> to vector<1x128xf32>
    %c0_155 = arith.constant 0 : index
    %192 = arith.index_cast %c2_i32_150 : i32 to index
    %c0_156 = arith.constant 0 : index
    %c0_157 = arith.constant 0 : index
    %193 = vector.load %arg10[%c0_155, %192, %c0_156, %c0_157] : memref<1x18x16x128xf32, #tpu.memory_space<vmem>>, vector<1x14x16x128xf32>
    %194 = vector.shape_cast %191 : vector<1x128xf32> to vector<1x1x1x128xf32>
    %195 = vector.broadcast %194 : vector<1x1x1x128xf32> to vector<1x14x16x128xf32>
    %196 = arith.mulf %193, %195 : vector<1x14x16x128xf32>
    %197 = arith.addf %186, %196 : vector<1x14x16x128xf32>
    %c3_i32_158 = arith.constant 3 : i32
    %c5_i32_159 = arith.constant 5 : i32
    %198 = arith.muli %c3_i32_158, %c5_i32_159 : i32
    %c2_i32_160 = arith.constant 2 : i32
    %199 = arith.addi %198, %c2_i32_160 : i32
    %200 = arith.index_cast %199 : i32 to index
    %c0_161 = arith.constant 0 : index
    %c0_162 = arith.constant 0 : index
    %201 = vector.load %arg5[%200, %c0_161, %c0_162] : memref<25x1x128xf32, #tpu.memory_space<vmem>>, vector<1x1x128xf32>
    %202 = vector.shape_cast %201 : vector<1x1x128xf32> to vector<1x128xf32>
    %c0_163 = arith.constant 0 : index
    %203 = arith.index_cast %c3_i32_158 : i32 to index
    %c0_164 = arith.constant 0 : index
    %c0_165 = arith.constant 0 : index
    %204 = vector.load %arg10[%c0_163, %203, %c0_164, %c0_165] : memref<1x18x16x128xf32, #tpu.memory_space<vmem>>, vector<1x14x16x128xf32>
    %205 = vector.shape_cast %202 : vector<1x128xf32> to vector<1x1x1x128xf32>
    %206 = vector.broadcast %205 : vector<1x1x1x128xf32> to vector<1x14x16x128xf32>
    %207 = arith.mulf %204, %206 : vector<1x14x16x128xf32>
    %208 = arith.addf %197, %207 : vector<1x14x16x128xf32>
    %c4_i32_166 = arith.constant 4 : i32
    %c5_i32_167 = arith.constant 5 : i32
    %209 = arith.muli %c4_i32_166, %c5_i32_167 : i32
    %c2_i32_168 = arith.constant 2 : i32
    %210 = arith.addi %209, %c2_i32_168 : i32
    %211 = arith.index_cast %210 : i32 to index
    %c0_169 = arith.constant 0 : index
    %c0_170 = arith.constant 0 : index
    %212 = vector.load %arg5[%211, %c0_169, %c0_170] : memref<25x1x128xf32, #tpu.memory_space<vmem>>, vector<1x1x128xf32>
    %213 = vector.shape_cast %212 : vector<1x1x128xf32> to vector<1x128xf32>
    %c0_171 = arith.constant 0 : index
    %214 = arith.index_cast %c4_i32_166 : i32 to index
    %c0_172 = arith.constant 0 : index
    %c0_173 = arith.constant 0 : index
    %215 = vector.load %arg10[%c0_171, %214, %c0_172, %c0_173] : memref<1x18x16x128xf32, #tpu.memory_space<vmem>>, vector<1x14x16x128xf32>
    %216 = vector.shape_cast %213 : vector<1x128xf32> to vector<1x1x1x128xf32>
    %217 = vector.broadcast %216 : vector<1x1x1x128xf32> to vector<1x14x16x128xf32>
    %218 = arith.mulf %215, %217 : vector<1x14x16x128xf32>
    %219 = arith.addf %208, %218 : vector<1x14x16x128xf32>
    %c5_i32_174 = arith.constant 5 : i32
    %c0_175 = arith.constant 0 : index
    %c0_176 = arith.constant 0 : index
    %c9 = arith.constant 9 : index
    %c0_177 = arith.constant 0 : index
    %220 = vector.load %arg9[%c0_175, %c0_176, %c9, %c0_177] : memref<1x18x32x128xf32, #tpu.memory_space<vmem>>, vector<1x18x16x128xf32>
    %c0_178 = arith.constant 0 : index
    %c0_179 = arith.constant 0 : index
    %c0_180 = arith.constant 0 : index
    %c0_181 = arith.constant 0 : index
    %221 = vector.load %arg10[%c0_178, %c0_179, %c0_180, %c0_181] : memref<1x18x16x128xf32, #tpu.memory_space<vmem>>, vector<1x18x16x128xf32>
    tpu.vector_store %arg10[%c0_178, %c0_179, %c0_180, %c0_181], %220 {strides = array<i32>} : memref<1x18x16x128xf32, #tpu.memory_space<vmem>>, vector<1x18x16x128xf32>,
    %c0_i32_182 = arith.constant 0 : i32
    %c5_i32_183 = arith.constant 5 : i32
    %222 = arith.muli %c0_i32_182, %c5_i32_183 : i32
    %c3_i32_184 = arith.constant 3 : i32
    %223 = arith.addi %222, %c3_i32_184 : i32
    %224 = arith.index_cast %223 : i32 to index
    %c0_185 = arith.constant 0 : index
    %c0_186 = arith.constant 0 : index
    %225 = vector.load %arg5[%224, %c0_185, %c0_186] : memref<25x1x128xf32, #tpu.memory_space<vmem>>, vector<1x1x128xf32>
    %226 = vector.shape_cast %225 : vector<1x1x128xf32> to vector<1x128xf32>
    %c0_187 = arith.constant 0 : index
    %227 = arith.index_cast %c0_i32_182 : i32 to index
    %c0_188 = arith.constant 0 : index
    %c0_189 = arith.constant 0 : index
    %228 = vector.load %arg10[%c0_187, %227, %c0_188, %c0_189] : memref<1x18x16x128xf32, #tpu.memory_space<vmem>>, vector<1x14x16x128xf32>
    %229 = vector.shape_cast %226 : vector<1x128xf32> to vector<1x1x1x128xf32>
    %230 = vector.broadcast %229 : vector<1x1x1x128xf32> to vector<1x14x16x128xf32>
    %231 = arith.mulf %228, %230 : vector<1x14x16x128xf32>
    %232 = arith.addf %219, %231 : vector<1x14x16x128xf32>
    %c1_i32_190 = arith.constant 1 : i32
    %c5_i32_191 = arith.constant 5 : i32
    %233 = arith.muli %c1_i32_190, %c5_i32_191 : i32
    %c3_i32_192 = arith.constant 3 : i32
    %234 = arith.addi %233, %c3_i32_192 : i32
    %235 = arith.index_cast %234 : i32 to index
    %c0_193 = arith.constant 0 : index
    %c0_194 = arith.constant 0 : index
    %236 = vector.load %arg5[%235, %c0_193, %c0_194] : memref<25x1x128xf32, #tpu.memory_space<vmem>>, vector<1x1x128xf32>
    %237 = vector.shape_cast %236 : vector<1x1x128xf32> to vector<1x128xf32>
    %c0_195 = arith.constant 0 : index
    %238 = arith.index_cast %c1_i32_190 : i32 to index
    %c0_196 = arith.constant 0 : index
    %c0_197 = arith.constant 0 : index
    %239 = vector.load %arg10[%c0_195, %238, %c0_196, %c0_197] : memref<1x18x16x128xf32, #tpu.memory_space<vmem>>, vector<1x14x16x128xf32>
    %240 = vector.shape_cast %237 : vector<1x128xf32> to vector<1x1x1x128xf32>
    %241 = vector.broadcast %240 : vector<1x1x1x128xf32> to vector<1x14x16x128xf32>
    %242 = arith.mulf %239, %241 : vector<1x14x16x128xf32>
    %243 = arith.addf %232, %242 : vector<1x14x16x128xf32>
    %c2_i32_198 = arith.constant 2 : i32
    %c5_i32_199 = arith.constant 5 : i32
    %244 = arith.muli %c2_i32_198, %c5_i32_199 : i32
    %c3_i32_200 = arith.constant 3 : i32
    %245 = arith.addi %244, %c3_i32_200 : i32
    %246 = arith.index_cast %245 : i32 to index
    %c0_201 = arith.constant 0 : index
    %c0_202 = arith.constant 0 : index
    %247 = vector.load %arg5[%246, %c0_201, %c0_202] : memref<25x1x128xf32, #tpu.memory_space<vmem>>, vector<1x1x128xf32>
    %248 = vector.shape_cast %247 : vector<1x1x128xf32> to vector<1x128xf32>
    %c0_203 = arith.constant 0 : index
    %249 = arith.index_cast %c2_i32_198 : i32 to index
    %c0_204 = arith.constant 0 : index
    %c0_205 = arith.constant 0 : index
    %250 = vector.load %arg10[%c0_203, %249, %c0_204, %c0_205] : memref<1x18x16x128xf32, #tpu.memory_space<vmem>>, vector<1x14x16x128xf32>
    %251 = vector.shape_cast %248 : vector<1x128xf32> to vector<1x1x1x128xf32>
    %252 = vector.broadcast %251 : vector<1x1x1x128xf32> to vector<1x14x16x128xf32>
    %253 = arith.mulf %250, %252 : vector<1x14x16x128xf32>
    %254 = arith.addf %243, %253 : vector<1x14x16x128xf32>
    %c3_i32_206 = arith.constant 3 : i32
    %c5_i32_207 = arith.constant 5 : i32
    %255 = arith.muli %c3_i32_206, %c5_i32_207 : i32
    %c3_i32_208 = arith.constant 3 : i32
    %256 = arith.addi %255, %c3_i32_208 : i32
    %257 = arith.index_cast %256 : i32 to index
    %c0_209 = arith.constant 0 : index
    %c0_210 = arith.constant 0 : index
    %258 = vector.load %arg5[%257, %c0_209, %c0_210] : memref<25x1x128xf32, #tpu.memory_space<vmem>>, vector<1x1x128xf32>
    %259 = vector.shape_cast %258 : vector<1x1x128xf32> to vector<1x128xf32>
    %c0_211 = arith.constant 0 : index
    %260 = arith.index_cast %c3_i32_206 : i32 to index
    %c0_212 = arith.constant 0 : index
    %c0_213 = arith.constant 0 : index
    %261 = vector.load %arg10[%c0_211, %260, %c0_212, %c0_213] : memref<1x18x16x128xf32, #tpu.memory_space<vmem>>, vector<1x14x16x128xf32>
    %262 = vector.shape_cast %259 : vector<1x128xf32> to vector<1x1x1x128xf32>
    %263 = vector.broadcast %262 : vector<1x1x1x128xf32> to vector<1x14x16x128xf32>
    %264 = arith.mulf %261, %263 : vector<1x14x16x128xf32>
    %265 = arith.addf %254, %264 : vector<1x14x16x128xf32>
    %c4_i32_214 = arith.constant 4 : i32
    %c5_i32_215 = arith.constant 5 : i32
    %266 = arith.muli %c4_i32_214, %c5_i32_215 : i32
    %c3_i32_216 = arith.constant 3 : i32
    %267 = arith.addi %266, %c3_i32_216 : i32
    %268 = arith.index_cast %267 : i32 to index
    %c0_217 = arith.constant 0 : index
    %c0_218 = arith.constant 0 : index
    %269 = vector.load %arg5[%268, %c0_217, %c0_218] : memref<25x1x128xf32, #tpu.memory_space<vmem>>, vector<1x1x128xf32>
    %270 = vector.shape_cast %269 : vector<1x1x128xf32> to vector<1x128xf32>
    %c0_219 = arith.constant 0 : index
    %271 = arith.index_cast %c4_i32_214 : i32 to index
    %c0_220 = arith.constant 0 : index
    %c0_221 = arith.constant 0 : index
    %272 = vector.load %arg10[%c0_219, %271, %c0_220, %c0_221] : memref<1x18x16x128xf32, #tpu.memory_space<vmem>>, vector<1x14x16x128xf32>
    %273 = vector.shape_cast %270 : vector<1x128xf32> to vector<1x1x1x128xf32>
    %274 = vector.broadcast %273 : vector<1x1x1x128xf32> to vector<1x14x16x128xf32>
    %275 = arith.mulf %272, %274 : vector<1x14x16x128xf32>
    %276 = arith.addf %265, %275 : vector<1x14x16x128xf32>
    %c5_i32_222 = arith.constant 5 : i32
    %c0_223 = arith.constant 0 : index
    %c0_224 = arith.constant 0 : index
    %c10 = arith.constant 10 : index
    %c0_225 = arith.constant 0 : index
    %277 = vector.load %arg9[%c0_223, %c0_224, %c10, %c0_225] : memref<1x18x32x128xf32, #tpu.memory_space<vmem>>, vector<1x18x16x128xf32>
    %c0_226 = arith.constant 0 : index
    %c0_227 = arith.constant 0 : index
    %c0_228 = arith.constant 0 : index
    %c0_229 = arith.constant 0 : index
    %278 = vector.load %arg10[%c0_226, %c0_227, %c0_228, %c0_229] : memref<1x18x16x128xf32, #tpu.memory_space<vmem>>, vector<1x18x16x128xf32>
    tpu.vector_store %arg10[%c0_226, %c0_227, %c0_228, %c0_229], %277 {strides = array<i32>} : memref<1x18x16x128xf32, #tpu.memory_space<vmem>>, vector<1x18x16x128xf32>,
    %c0_i32_230 = arith.constant 0 : i32
    %c5_i32_231 = arith.constant 5 : i32
    %279 = arith.muli %c0_i32_230, %c5_i32_231 : i32
    %c4_i32_232 = arith.constant 4 : i32
    %280 = arith.addi %279, %c4_i32_232 : i32
    %281 = arith.index_cast %280 : i32 to index
    %c0_233 = arith.constant 0 : index
    %c0_234 = arith.constant 0 : index
    %282 = vector.load %arg5[%281, %c0_233, %c0_234] : memref<25x1x128xf32, #tpu.memory_space<vmem>>, vector<1x1x128xf32>
    %283 = vector.shape_cast %282 : vector<1x1x128xf32> to vector<1x128xf32>
    %c0_235 = arith.constant 0 : index
    %284 = arith.index_cast %c0_i32_230 : i32 to index
    %c0_236 = arith.constant 0 : index
    %c0_237 = arith.constant 0 : index
    %285 = vector.load %arg10[%c0_235, %284, %c0_236, %c0_237] : memref<1x18x16x128xf32, #tpu.memory_space<vmem>>, vector<1x14x16x128xf32>
    %286 = vector.shape_cast %283 : vector<1x128xf32> to vector<1x1x1x128xf32>
    %287 = vector.broadcast %286 : vector<1x1x1x128xf32> to vector<1x14x16x128xf32>
    %288 = arith.mulf %285, %287 : vector<1x14x16x128xf32>
    %289 = arith.addf %276, %288 : vector<1x14x16x128xf32>
    %c1_i32_238 = arith.constant 1 : i32
    %c5_i32_239 = arith.constant 5 : i32
    %290 = arith.muli %c1_i32_238, %c5_i32_239 : i32
    %c4_i32_240 = arith.constant 4 : i32
    %291 = arith.addi %290, %c4_i32_240 : i32
    %292 = arith.index_cast %291 : i32 to index
    %c0_241 = arith.constant 0 : index
    %c0_242 = arith.constant 0 : index
    %293 = vector.load %arg5[%292, %c0_241, %c0_242] : memref<25x1x128xf32, #tpu.memory_space<vmem>>, vector<1x1x128xf32>
    %294 = vector.shape_cast %293 : vector<1x1x128xf32> to vector<1x128xf32>
    %c0_243 = arith.constant 0 : index
    %295 = arith.index_cast %c1_i32_238 : i32 to index
    %c0_244 = arith.constant 0 : index
    %c0_245 = arith.constant 0 : index
    %296 = vector.load %arg10[%c0_243, %295, %c0_244, %c0_245] : memref<1x18x16x128xf32, #tpu.memory_space<vmem>>, vector<1x14x16x128xf32>
    %297 = vector.shape_cast %294 : vector<1x128xf32> to vector<1x1x1x128xf32>
    %298 = vector.broadcast %297 : vector<1x1x1x128xf32> to vector<1x14x16x128xf32>
    %299 = arith.mulf %296, %298 : vector<1x14x16x128xf32>
    %300 = arith.addf %289, %299 : vector<1x14x16x128xf32>
    %c2_i32_246 = arith.constant 2 : i32
    %c5_i32_247 = arith.constant 5 : i32
    %301 = arith.muli %c2_i32_246, %c5_i32_247 : i32
    %c4_i32_248 = arith.constant 4 : i32
    %302 = arith.addi %301, %c4_i32_248 : i32
    %303 = arith.index_cast %302 : i32 to index
    %c0_249 = arith.constant 0 : index
    %c0_250 = arith.constant 0 : index
    %304 = vector.load %arg5[%303, %c0_249, %c0_250] : memref<25x1x128xf32, #tpu.memory_space<vmem>>, vector<1x1x128xf32>
    %305 = vector.shape_cast %304 : vector<1x1x128xf32> to vector<1x128xf32>
    %c0_251 = arith.constant 0 : index
    %306 = arith.index_cast %c2_i32_246 : i32 to index
    %c0_252 = arith.constant 0 : index
    %c0_253 = arith.constant 0 : index
    %307 = vector.load %arg10[%c0_251, %306, %c0_252, %c0_253] : memref<1x18x16x128xf32, #tpu.memory_space<vmem>>, vector<1x14x16x128xf32>
    %308 = vector.shape_cast %305 : vector<1x128xf32> to vector<1x1x1x128xf32>
    %309 = vector.broadcast %308 : vector<1x1x1x128xf32> to vector<1x14x16x128xf32>
    %310 = arith.mulf %307, %309 : vector<1x14x16x128xf32>
    %311 = arith.addf %300, %310 : vector<1x14x16x128xf32>
    %c3_i32_254 = arith.constant 3 : i32
    %c5_i32_255 = arith.constant 5 : i32
    %312 = arith.muli %c3_i32_254, %c5_i32_255 : i32
    %c4_i32_256 = arith.constant 4 : i32
    %313 = arith.addi %312, %c4_i32_256 : i32
    %314 = arith.index_cast %313 : i32 to index
    %c0_257 = arith.constant 0 : index
    %c0_258 = arith.constant 0 : index
    %315 = vector.load %arg5[%314, %c0_257, %c0_258] : memref<25x1x128xf32, #tpu.memory_space<vmem>>, vector<1x1x128xf32>
    %316 = vector.shape_cast %315 : vector<1x1x128xf32> to vector<1x128xf32>
    %c0_259 = arith.constant 0 : index
    %317 = arith.index_cast %c3_i32_254 : i32 to index
    %c0_260 = arith.constant 0 : index
    %c0_261 = arith.constant 0 : index
    %318 = vector.load %arg10[%c0_259, %317, %c0_260, %c0_261] : memref<1x18x16x128xf32, #tpu.memory_space<vmem>>, vector<1x14x16x128xf32>
    %319 = vector.shape_cast %316 : vector<1x128xf32> to vector<1x1x1x128xf32>
    %320 = vector.broadcast %319 : vector<1x1x1x128xf32> to vector<1x14x16x128xf32>
    %321 = arith.mulf %318, %320 : vector<1x14x16x128xf32>
    %322 = arith.addf %311, %321 : vector<1x14x16x128xf32>
    %c4_i32_262 = arith.constant 4 : i32
    %c5_i32_263 = arith.constant 5 : i32
    %323 = arith.muli %c4_i32_262, %c5_i32_263 : i32
    %c4_i32_264 = arith.constant 4 : i32
    %324 = arith.addi %323, %c4_i32_264 : i32
    %325 = arith.index_cast %324 : i32 to index
    %c0_265 = arith.constant 0 : index
    %c0_266 = arith.constant 0 : index
    %326 = vector.load %arg5[%325, %c0_265, %c0_266] : memref<25x1x128xf32, #tpu.memory_space<vmem>>, vector<1x1x128xf32>
    %327 = vector.shape_cast %326 : vector<1x1x128xf32> to vector<1x128xf32>
    %c0_267 = arith.constant 0 : index
    %328 = arith.index_cast %c4_i32_262 : i32 to index
    %c0_268 = arith.constant 0 : index
    %c0_269 = arith.constant 0 : index
    %329 = vector.load %arg10[%c0_267, %328, %c0_268, %c0_269] : memref<1x18x16x128xf32, #tpu.memory_space<vmem>>, vector<1x14x16x128xf32>
    %330 = vector.shape_cast %327 : vector<1x128xf32> to vector<1x1x1x128xf32>
    %331 = vector.broadcast %330 : vector<1x1x1x128xf32> to vector<1x14x16x128xf32>
    %332 = arith.mulf %329, %331 : vector<1x14x16x128xf32>
    %333 = arith.addf %322, %332 : vector<1x14x16x128xf32>
    %c5_i32_270 = arith.constant 5 : i32
    %334 = vector.broadcast %4 : vector<1x1x16x128xf32> to vector<1x14x16x128xf32>
    %335 = arith.mulf %333, %334 : vector<1x14x16x128xf32>
    %cst_271 = arith.constant dense<0.000000e+00> : vector<128xf32>
    %336 = vector.multi_reduction <add>, %335, %cst_271 [0, 1, 2] : vector<1x14x16x128xf32> to vector<128xf32>
    %337 = vector.shape_cast %336 : vector<128xf32> to vector<1x1x1x128xf32>
    %cst_272 = arith.constant 0.00510204071 : f32
    %338 = vector.broadcast %cst_272 : f32 to vector<1x1x1x128xf32>
    %339 = arith.mulf %337, %338 : vector<1x1x1x128xf32>
    %340 = vector.broadcast %339 : vector<1x1x1x128xf32> to vector<1x14x16x128xf32>
    %341 = arith.subf %333, %340 : vector<1x14x16x128xf32>
    %342 = vector.broadcast %4 : vector<1x1x16x128xf32> to vector<1x14x16x128xf32>
    %343 = arith.mulf %341, %342 : vector<1x14x16x128xf32>
    %344 = arith.mulf %343, %343 : vector<1x14x16x128xf32>
    %cst_273 = arith.constant dense<0.000000e+00> : vector<128xf32>
    %345 = vector.multi_reduction <add>, %344, %cst_273 [0, 1, 2] : vector<1x14x16x128xf32> to vector<128xf32>
    %346 = vector.shape_cast %345 : vector<128xf32> to vector<1x1x1x128xf32>
    %cst_274 = arith.constant 0.00510204071 : f32
    %347 = vector.broadcast %cst_274 : f32 to vector<1x1x1x128xf32>
    %348 = arith.mulf %346, %347 : vector<1x1x1x128xf32>
    %c0_275 = arith.constant 0 : index
    %c0_276 = arith.constant 0 : index
    %349 = vector.load %arg6[%c0_275, %c0_276] : memref<1x128xf32, #tpu.memory_space<vmem>>, vector<1x128xf32>
    %350 = vector.shape_cast %349 : vector<1x128xf32> to vector<1x1x1x128xf32>
    %cst_277 = arith.constant 1.000000e-03 : f32
    %351 = vector.broadcast %cst_277 : f32 to vector<1x1x1x128xf32>
    %352 = arith.addf %348, %351 : vector<1x1x1x128xf32>
    %353 = math.rsqrt %352 : vector<1x1x1x128xf32>
    %354 = arith.mulf %350, %353 : vector<1x1x1x128xf32>
    %c0_278 = arith.constant 0 : index
    %c0_279 = arith.constant 0 : index
    %355 = vector.load %arg7[%c0_278, %c0_279] : memref<1x128xf32, #tpu.memory_space<vmem>>, vector<1x128xf32>
    %356 = vector.shape_cast %355 : vector<1x128xf32> to vector<1x1x1x128xf32>
    %357 = arith.mulf %339, %354 : vector<1x1x1x128xf32>
    %358 = arith.subf %356, %357 : vector<1x1x1x128xf32>
    %359 = vector.broadcast %354 : vector<1x1x1x128xf32> to vector<1x14x16x128xf32>
    %360 = arith.mulf %333, %359 : vector<1x14x16x128xf32>
    %361 = vector.broadcast %358 : vector<1x1x1x128xf32> to vector<1x14x16x128xf32>
    %362 = arith.addf %360, %361 : vector<1x14x16x128xf32>
    %c0_280 = arith.constant 0 : index
    %c0_281 = arith.constant 0 : index
    %c0_282 = arith.constant 0 : index
    %c0_283 = arith.constant 0 : index
    %363 = vector.load %arg8[%c0_280, %c0_281, %c0_282, %c0_283] : memref<1x14x16x128xf32, #tpu.memory_space<vmem>>, vector<1x14x16x128xf32>
    tpu.vector_store %arg8[%c0_280, %c0_281, %c0_282, %c0_283], %362 {strides = array<i32>} : memref<1x14x16x128xf32, #tpu.memory_space<vmem>>, vector<1x14x16x128xf32>,
    return
  }
  func.func @transform_0(%arg0: i32) -> (i32, i32, i32, i32) {
    %c0_i32 = arith.constant 0 : i32
    %c0_i32_0 = arith.constant 0 : i32
    %c0_i32_1 = arith.constant 0 : i32
    %c0_i32_2 = arith.constant 0 : i32
    %c0_i32_3 = arith.constant 0 : i32
    return %c0_i32, %c0_i32_0, %c0_i32_1, %c0_i32_2 : i32, i32, i32, i32
  }
  func.func @transform_1(%arg0: i32) -> (i32, i32) {
    %c0_i32 = arith.constant 0 : i32
    %c0_i32_0 = arith.constant 0 : i32
    return %c0_i32, %arg0 : i32, i32
  }
  func.func @transform_2(%arg0: i32) -> (i32, i32) {
    %c0_i32 = arith.constant 0 : i32
    %c0_i32_0 = arith.constant 0 : i32
    return %c0_i32, %arg0 : i32, i32
  }
  func.func @transform_3(%arg0: i32) -> (i32, i32) {
    %c0_i32 = arith.constant 0 : i32
    %c0_i32_0 = arith.constant 0 : i32
    return %c0_i32, %arg0 : i32, i32
  }
  func.func @transform_4(%arg0: i32) -> (i32, i32, i32) {
    %c0_i32 = arith.constant 0 : i32
    %c0_i32_0 = arith.constant 0 : i32
    %c0_i32_1 = arith.constant 0 : i32
    return %c0_i32, %c0_i32_0, %arg0 : i32, i32, i32
  }
  func.func @transform_5(%arg0: i32) -> (i32, i32) {
    %c0_i32 = arith.constant 0 : i32
    %c0_i32_0 = arith.constant 0 : i32
    return %c0_i32, %arg0 : i32, i32
  }
  func.func @transform_6(%arg0: i32) -> (i32, i32) {
    %c0_i32 = arith.constant 0 : i32
    %c0_i32_0 = arith.constant 0 : i32
    return %c0_i32, %arg0 : i32, i32
  }
  func.func @transform_7(%arg0: i32) -> (i32, i32, i32, i32) {
    %c0_i32 = arith.constant 0 : i32
    %c0_i32_0 = arith.constant 0 : i32
    %c0_i32_1 = arith.constant 0 : i32
    %c0_i32_2 = arith.constant 0 : i32
    return %c0_i32, %c0_i32_0, %c0_i32_1, %arg0 : i32, i32, i32, i32
  }
}

</mosaic_0001>

<bundles_post_ra>
// kernel: run_module.1
= control target key start
LH: loop header
LB: loop body
LE: loop exit
PB: predicated region body
PF: predicated region fallthrough
CT: control target
= control target key end

     0   :  { %s4457_s24 = smov 0   ;;  %s4459_s25 = smov 0   ;;  %s7315_s0 = inlined_call_operand.vmem [shape: f32[1,14,16,64], index: 0, kind: input, shape index: {}]   ;;  %s7316_s1 = inlined_call_operand.vmem [shape: f32[64,384], index: 1, kind: input, shape index: {}]   ;;  %s7317_s2 = inlined_call_operand.vmem [shape: f32[1,384], index: 2, kind: input, shape index: {}]   ;;  %s7318_s3 = inlined_call_operand.vmem [shape: f32[1,384], index: 3, kind: input, shape index: {}]   ;;  %s7319_s4 = inlined_call_operand.vmem [shape: f32[25,1,384], index: 4, kind: input, shape index: {}]   ;;  %s7320_s5 = inlined_call_operand.vmem [shape: f32[1,384], index: 5, kind: input, shape index: {}]   ;;  %s7321_s6 = inlined_call_operand.vmem [shape: f32[1,384], index: 6, kind: input, shape index: {}]   ;;  %s7322_s7 = inlined_call_operand.vmem [shape: f32[1,14,16,384], index: 7, kind: output, shape index: {}]  }
   0x1   :  { %s4461_s26 = smov 0  }
   0x2 LB: > { %s4473_s27 = sadd.s32 4294967295, %s4414_s26   ;;  %s4476_s28 = sadd.s32 1, %s4414_s26   ;;  %s4414_s26 = sphi %s4461_s26, %s8241_s26   ;;  %s4410_s25 = sphi %s4459_s25, %s8240_s25   ;;  %s4406_s24 = sphi %s4457_s24, %s8239_s24  }
   0x3   : > { %s42_s29 = ssub.s32 %s4414_s26, %s4476_s28  ;;  %s45_s30 = sadd.s32 1, %s4410_s25 }
   0x4   : > { %p43_p0 = scmp.eq.s32.totalorder %s42_s29, 0  ;;  %p52_p1 = scmp.ne.s32.totalorder %s4410_s25, %s4406_s24 }
   0x5   : > { %p53_p2 = scmp.eq.s32.totalorder %s4414_s26, 0  ;;  %p212_p3 = scmp.eq.s32.totalorder %s4473_s27, 2 }
   0x6   : > { %s4486_s8 = scalar_select %p43_p0, %s4410_s25, %s45_s30  }
   0x7   : > { %p4488_p4 = por %p53_p2, %p52_p1  ;;  %p4492_p5 = por %p212_p3, %p52_p1 }
   0x8   : > { %p4249_p6 = scmp.ge.s32.totalorder %s4414_s26, 3 }
   0xa   : > { %237 = sbr.rel (%p4249_p6) target bundleno = 56 (0x38), region = 20 }
   0xf   : > { %240 = sbr.rel (!%p4488_p4) target bundleno = 27 (0x1b), region = 24  ;;  %s242_s11 = sand.u32 (%p4488_p4), 1, %s4410_s25  }
  0x10   : > { %s4251_s12 = sshll.u32 (%p4488_p4), %s4414_s26, 3  ;;  %s4250_s13 = sshll.u32 (%p4488_p4), %s242_s11, 6 }
  0x11   : > { %s246_s16 = scalar_lea.vmem (%p4488_p4), %s7316_s1, %s4251_s12  ;;  %s244_s17 = scalar_lea.vmem (%p4488_p4), [#allocation4], %s4250_s13 }
  0x12   : > { %v289_v0 = vld [vmem:[%s246_s16] sm:$0xff] (%p4488_p4)  ;;  %v291_v1 = vld [vmem:[%s246_s16 + $0x18] sm:$0xff] (%p4488_p4)  ;;  %v293_v2 = vld [vmem:[%s246_s16 + $0x30] sm:$0xff] (%p4488_p4) }
  0x13   : > { %290 = vst [vmem:[%s244_s17] sm:$0xff] (%p4488_p4), %v289_v0  ;;  %v295_v3 = vld [vmem:[%s246_s16 + $0x48] sm:$0xff] (%p4488_p4)  ;;  %v297_v4 = vld [vmem:[%s246_s16 + $0x60] sm:$0xff] (%p4488_p4)  ;;  %v299_v5 = vld [vmem:[%s246_s16 + $0x78] sm:$0xff] (%p4488_p4) }
  0x14   : > { %292 = vst [vmem:[%s244_s17 + $0x8] sm:$0xff] %v291_v1  ;;  %v301_v6 = vld [vmem:[%s246_s16 + $0x90] sm:$0xff]  ;;  %v303_v7 = vld [vmem:[%s246_s16 + $0xa8] sm:$0xff] }
  0x15   : > { %294 = vst [vmem:[%s244_s17 + $0x10] sm:$0xff] %v293_v2 }
  0x16   : > { %296 = vst [vmem:[%s244_s17 + $0x18] sm:$0xff] %v295_v3 }
  0x17   : > { %298 = vst [vmem:[%s244_s17 + $0x20] sm:$0xff] %v297_v4 }
  0x18   : > { %300 = vst [vmem:[%s244_s17 + $0x28] sm:$0xff] %v299_v5 }
  0x19   : > { %302 = vst [vmem:[%s244_s17 + $0x30] sm:$0xff] %v301_v6 }
  0x1a   : > { %304 = vst [vmem:[%s244_s17 + $0x38] sm:$0xff] %v303_v7 }
  0x1b PF: > { %322 = sbr.rel (!%p4488_p4) target bundleno = 56 (0x38), region = 70  ;;  %s324_s18 = sand.u32 (%p4488_p4), 1, %s4410_s25  }
  0x1c   : > { %s4511_s21 = scalar_lea.vmem (%p4488_p4), %s7319_s4, %s4414_s26  ;;  %s4334_s22 = smul.u32 (%p4488_p4), 25, %s324_s18 }
  0x1d   : > { %v344_v8 = vld [vmem:[%s4511_s21] sm:$0x1] (%p4488_p4)  ;;  %v346_v9 = vld [vmem:[%s4511_s21 + $0x3] sm:$0x1] (%p4488_p4)  ;;  %v348_v10 = vld [vmem:[%s4511_s21 + $0x6] sm:$0x1] (%p4488_p4) }
  0x1e   : > { %s4516_s23 = scalar_lea.vmem (%p4488_p4), [#allocation5], %s4334_s22  ;;  %v350_v11 = vld [vmem:[%s4511_s21 + $0x9] sm:$0x1] (%p4488_p4)  ;;  %v352_v12 = vld [vmem:[%s4511_s21 + $0xc] sm:$0x1] (%p4488_p4) }
  0x1f   : > { %345 = vst [vmem:[%s4516_s23] sm:$0x1] (%p4488_p4), %v344_v8  ;;  %v354_v13 = vld [vmem:[%s4511_s21 + $0xf] sm:$0x1] (%p4488_p4)  ;;  %v356_v14 = vld [vmem:[%s4511_s21 + $0x12] sm:$0x1] (%p4488_p4) }
  0x20   : > { %347 = vst [vmem:[%s4516_s23 + $0x1] sm:$0x1] %v346_v9  ;;  %v358_v15 = vld [vmem:[%s4511_s21 + $0x15] sm:$0x1]  ;;  %v360_v16 = vld [vmem:[%s4511_s21 + $0x18] sm:$0x1] }
  0x21   : > { %349 = vst [vmem:[%s4516_s23 + $0x2] sm:$0x1] %v348_v10  ;;  %v362_v17 = vld [vmem:[%s4511_s21 + $0x1b] sm:$0x1]  ;;  %v364_v18 = vld [vmem:[%s4511_s21 + $0x1e] sm:$0x1] }
  0x22   : > { %351 = vst [vmem:[%s4516_s23 + $0x3] sm:$0x1] %v350_v11  ;;  %v366_v19 = vld [vmem:[%s4511_s21 + $0x21] sm:$0x1]  ;;  %v368_v20 = vld [vmem:[%s4511_s21 + $0x24] sm:$0x1] }
  0x23   : > { %353 = vst [vmem:[%s4516_s23 + $0x4] sm:$0x1] %v352_v12  ;;  %v370_v21 = vld [vmem:[%s4511_s21 + $0x27] sm:$0x1]  ;;  %v372_v22 = vld [vmem:[%s4511_s21 + $0x2a] sm:$0x1] }
  0x24   : > { %355 = vst [vmem:[%s4516_s23 + $0x5] sm:$0x1] %v354_v13  ;;  %v374_v23 = vld [vmem:[%s4511_s21 + $0x2d] sm:$0x1]  ;;  %v376_v24 = vld [vmem:[%s4511_s21 + $0x30] sm:$0x1] }
  0x25   : > { %357 = vst [vmem:[%s4516_s23 + $0x6] sm:$0x1] %v356_v14  ;;  %v378_v25 = vld [vmem:[%s4511_s21 + $0x33] sm:$0x1]  ;;  %v380_v26 = vld [vmem:[%s4511_s21 + $0x36] sm:$0x1] }
  0x26   : > { %359 = vst [vmem:[%s4516_s23 + $0x7] sm:$0x1] %v358_v15  ;;  %v382_v27 = vld [vmem:[%s4511_s21 + $0x39] sm:$0x1]  ;;  %v384_v28 = vld [vmem:[%s4511_s21 + $0x3c] sm:$0x1] }
  0x27   : > { %361 = vst [vmem:[%s4516_s23 + $0x8] sm:$0x1] %v360_v16  ;;  %v386_v29 = vld [vmem:[%s4511_s21 + $0x3f] sm:$0x1]  ;;  %v388_v30 = vld [vmem:[%s4511_s21 + $0x42] sm:$0x1] }
  0x28   : > { %363 = vst [vmem:[%s4516_s23 + $0x9] sm:$0x1] %v362_v17  ;;  %v390_v31 = vld [vmem:[%s4511_s21 + $0x45] sm:$0x1]  ;;  %v392_v32 = vld [vmem:[%s4511_s21 + $0x48] sm:$0x1] }
  0x29   : > { %365 = vst [vmem:[%s4516_s23 + $0xa] sm:$0x1] %v364_v18 }
  0x2a   : > { %367 = vst [vmem:[%s4516_s23 + $0xb] sm:$0x1] %v366_v19 }
  0x2b   : > { %369 = vst [vmem:[%s4516_s23 + $0xc] sm:$0x1] %v368_v20 }
  0x2c   : > { %371 = vst [vmem:[%s4516_s23 + $0xd] sm:$0x1] %v370_v21 }
  0x2d   : > { %373 = vst [vmem:[%s4516_s23 + $0xe] sm:$0x1] %v372_v22 }
  0x2e   : > { %375 = vst [vmem:[%s4516_s23 + $0xf] sm:$0x1] %v374_v23 }
  0x2f   : > { %377 = vst [vmem:[%s4516_s23 + $0x10] sm:$0x1] %v376_v24 }
  0x30   : > { %379 = vst [vmem:[%s4516_s23 + $0x11] sm:$0x1] %v378_v25 }
  0x31   : > { %381 = vst [vmem:[%s4516_s23 + $0x12] sm:$0x1] %v380_v26 }
  0x32   : > { %383 = vst [vmem:[%s4516_s23 + $0x13] sm:$0x1] %v382_v27 }
  0x33   : > { %385 = vst [vmem:[%s4516_s23 + $0x14] sm:$0x1] %v384_v28 }
  0x34   : > { %387 = vst [vmem:[%s4516_s23 + $0x15] sm:$0x1] %v386_v29 }
  0x35   : > { %389 = vst [vmem:[%s4516_s23 + $0x16] sm:$0x1] %v388_v30 }
  0x36   : > { %391 = vst [vmem:[%s4516_s23 + $0x17] sm:$0x1] %v390_v31 }
  0x37   : > { %393 = vst [vmem:[%s4516_s23 + $0x18] sm:$0x1] %v392_v32 }
  0x38 PF: > { %p4252_p7 = scmp.ge.s32.totalorder %s4414_s26, 1  ;;  %p478_p8 = scmp.lt.s32.totalorder %s4414_s26, 4 }
  0x3a   : > { %p479_p9 = pnand %p4252_p7, %p478_p8 }
  0x3c   : > { %482 = sbr.rel (%p479_p9) target bundleno = 1027 (0x403), region = 119 }
  0x41   : > { %s4568_s29 = sand.u32 1, %s4406_s24   ;;  %v559_v41 = vld [vmem:[%s7315_s0] sm:$0xff]  ;;  %vm595_vm0 = vcmask 523264   ;;  %v566_v42 = vld [vmem:[%s7315_s0 + $0x38] sm:$0xff]  ;;  %v573_v43 = vld [vmem:[%s7315_s0 + $0x70] sm:$0xff]  ;;  %p538_p10 = scmp.lt.s32.totalorder %s4473_s27, 2 }
  0x42   : > { %s4253_s30 = sshll.u32 %s4568_s29, 6  ;;  %s4335_s9 = smul.u32 25, %s4568_s29  ;;  %v580_v44 = vld [vmem:[%s7315_s0 + $0xa8] sm:$0xff]  ;;  %v567_v46 = vld [vmem:[%s7315_s0 + $0x40] sm:$0xff]  ;;  %v574_v47 = vld [vmem:[%s7315_s0 + $0x78] sm:$0xff] }
  0x43   : > { %s4572_s11 = scalar_lea.vmem [#allocation4], %s4253_s30  ;;  %v560_v45 = vld [vmem:[%s7315_s0 + $0x8] sm:$0xff]  ;;  %v581_v48 = vld [vmem:[%s7315_s0 + $0xb0] sm:$0xff]  ;;  %v575_v51 = vld [vmem:[%s7315_s0 + $0x80] sm:$0xff]  ;;  %s4336_s15 = smul.u32 224, %s4568_s29 }
  0x44   : > { %v594_v33 = vld [vmem:[%s4572_s11 + $0x38] sm:$0xff]  ;;  %v593_v34 = vld [vmem:[%s4572_s11 + $0x30] sm:$0xff]  ;;  %s4576_s12 = scalar_lea.vmem [#allocation5], %s4335_s9  ;;  %v592_v35 = vld [vmem:[%s4572_s11 + $0x28] sm:$0xff]  ;;  %s4307_s16 = sshll.u32 (%p4492_p5), %s4473_s27, 3 }
  0x45   : > { %688 = vmatpush.msra.mxu0 %v594_v33  ;;  %4310 = vmatpush.msra.mxu1 %v594_v33  ;;  %v591_v36 = vld [vmem:[%s4572_s11 + $0x20] sm:$0xff]  ;;  %v590_v37 = vld [vmem:[%s4572_s11 + $0x18] sm:$0xff]  ;;  %v589_v38 = vld [vmem:[%s4572_s11 + $0x10] sm:$0xff]  ;;  %s4887_s19 = scalar_select %p538_p10, %s4473_s27, 2 }
  0x46   : > { %4311 = vmatpush.msra.mxu2 %v594_v33  ;;  %4312 = vmatpush.msra.mxu3 %v594_v33  ;;  %v588_v39 = vld [vmem:[%s4572_s11 + $0x8] sm:$0xff]  ;;  %v587_v40 = vld [vmem:[%s4572_s11] sm:$0xff]  ;;  %v561_v49 = vld [vmem:[%s7315_s0 + $0x10] sm:$0xff]  ;;  %s7146_s29 = scalar_lea.vmem [#allocation6], %s4336_s15 }
  0x47   : > { %689 = vmatpush.msra.mxu0 %v593_v34  ;;  %4313 = vmatpush.msra.mxu1 %v593_v34  ;;  %v568_v50 = vld [vmem:[%s7315_s0 + $0x48] sm:$0xff]  ;;  %v582_v52 = vld [vmem:[%s7315_s0 + $0xb8] sm:$0xff]  ;;  %v569_v54 = vld [vmem:[%s7315_s0 + $0x50] sm:$0xff]  ;;  %s540_s22 = scalar_lea.vmem %s7317_s2, %s4887_s19  ;;  %s543_s9 = scalar_lea.vmem %s7318_s3, %s4887_s19 }
  0x48   : > { %4314 = vmatpush.msra.mxu2 %v593_v34  ;;  %4315 = vmatpush.msra.mxu3 %v593_v34  ;;  %v562_v53 = vld [vmem:[%s7315_s0 + $0x18] sm:$0xff]  ;;  %v576_v55 = vld [vmem:[%s7315_s0 + $0x88] sm:$0xff]  ;;  %v583_v56 = vld [vmem:[%s7315_s0 + $0xc0] sm:$0xff]  ;;  %s546_s24 = scalar_lea.vmem %s7320_s5, %s4887_s19  ;;  %s549_s14 = scalar_lea.vmem %s7321_s6, %s4887_s19 }
  0x49   : > { %690 = vmatpush.msra.mxu0 %v592_v35  ;;  %4316 = vmatpush.msra.mxu1 %v592_v35  ;;  %v563_v57 = vld [vmem:[%s7315_s0 + $0x20] sm:$0xff]  ;;  %v570_v58 = vld [vmem:[%s7315_s0 + $0x58] sm:$0xff]  ;;  %v577_v59 = vld [vmem:[%s7315_s0 + $0x90] sm:$0xff]  ;;  %s7249_s19 = scalar_lea.vmem (%p4492_p5), %s7322_s7, %s4307_s16 }
  0x4a   : > { %4317 = vmatpush.msra.mxu2 %v592_v35  ;;  %4318 = vmatpush.msra.mxu3 %v592_v35  ;;  %v584_v60 = vld [vmem:[%s7315_s0 + $0xc8] sm:$0xff]  ;;  %v571_v62 = vld [vmem:[%s7315_s0 + $0x60] sm:$0xff]  ;;  %v578_v63 = vld [vmem:[%s7315_s0 + $0x98] sm:$0xff] }
  0x4b   : > { %691 = vmatpush.msra.mxu0 %v591_v36  ;;  %4319 = vmatpush.msra.mxu1 %v591_v36  ;;  %v564_v61 = vld [vmem:[%s7315_s0 + $0x28] sm:$0xff]  ;;  %v585_v0 = vld [vmem:[%s7315_s0 + $0xd0] sm:$0xff]  ;;  %v579_v3 = vld [vmem:[%s7315_s0 + $0xa0] sm:$0xff] }
  0x4c   : > { %4320 = vmatpush.msra.mxu2 %v591_v36  ;;  %4321 = vmatpush.msra.mxu3 %v591_v36  ;;  %v565_v1 = vld [vmem:[%s7315_s0 + $0x30] sm:$0xff]  ;;  %v572_v2 = vld [vmem:[%s7315_s0 + $0x68] sm:$0xff]  ;;  %v586_v4 = vld [vmem:[%s7315_s0 + $0xd8] sm:$0xff] }
  0x4d   : > { %692 = vmatpush.msra.mxu0 %v590_v37  ;;  %4322 = vmatpush.msra.mxu1 %v590_v37 }
  0x4e   : > { %4323 = vmatpush.msra.mxu2 %v590_v37  ;;  %4324 = vmatpush.msra.mxu3 %v590_v37  ;;  %v4416_v37 = vmov 0.0  }
  0x4f   : > { %693 = vmatpush.msra.mxu0 %v589_v38  ;;  %4325 = vmatpush.msra.mxu1 %v589_v38  ;;  %1039 = vst [vmem:[#allocation2] sm:$0xff] %v4416_v37 }
  0x50   : > { %4326 = vmatpush.msra.mxu2 %v589_v38  ;;  %4327 = vmatpush.msra.mxu3 %v589_v38  ;;  %1040 = vst [vmem:[#allocation2 + $0x8] sm:$0xff] %v4416_v37 }
  0x51   : > { %694 = vmatpush.msra.mxu0 %v588_v39  ;;  %4328 = vmatpush.msra.mxu1 %v588_v39  ;;  %1041 = vst [vmem:[#allocation2 + $0x10] sm:$0xff] %v4416_v37 }
  0x52   : > { %4329 = vmatpush.msra.mxu2 %v588_v39  ;;  %4330 = vmatpush.msra.mxu3 %v588_v39  ;;  %1042 = vst [vmem:[#allocation2 + $0x18] sm:$0xff] %v4416_v37 }
  0x53   : > { %695 = vmatpush.msra.mxu0 %v587_v40  ;;  %4331 = vmatpush.msra.mxu1 %v587_v40  ;;  %1043 = vst [vmem:[#allocation2 + $0x20] sm:$0xff] %v4416_v37 }
  0x54   : > { %4255 = vmatmul.msk.f32.vlgmr.msra.gmra.mxu0 %vm595_vm0, %v559_v41  ;;  %4262 = vmatmul.msk.f32.vlgmr.msra.gmra.mxu1 %vm595_vm0, %v566_v42  ;;  %1044 = vst [vmem:[#allocation2 + $0x28] sm:$0xff] %v4416_v37 }
  0x55   : > { %4332 = vmatpush.msra.mxu2 %v587_v40  ;;  %4333 = vmatpush.msra.mxu3 %v587_v40  ;;  %1045 = vst [vmem:[#allocation2 + $0x30] sm:$0xff] %v4416_v37 }
  0x56   : > { %4269 = vmatmul.msk.f32.vlgmr.msra.gmra.mxu2 %vm595_vm0, %v573_v43  ;;  %4276 = vmatmul.msk.f32.vlgmr.msra.gmra.mxu3 %vm595_vm0, %v580_v44  ;;  %1046 = vst [vmem:[#allocation2 + $0x38] sm:$0xff] %v4416_v37 }
  0x57   : > { %1048 = vst [vmem:[#allocation2 + $0x200] sm:$0xff] %v4416_v37 }
  0x58   : > { %1049 = vst [vmem:[#allocation2 + $0x208] sm:$0xff] %v4416_v37 }
  0x59   : > { %1050 = vst [vmem:[#allocation2 + $0x210] sm:$0xff] %v4416_v37 }
  0x5a   : > { %1051 = vst [vmem:[#allocation2 + $0x218] sm:$0xff] %v4416_v37 }
  0x5b   : > { %1052 = vst [vmem:[#allocation2 + $0x220] sm:$0xff] %v4416_v37 }
  0x5c   : > { %4256 = vmatmul.msk.f32.gmra.mxu0 %vm595_vm0, %v560_v45  ;;  %4263 = vmatmul.msk.f32.gmra.mxu1 %vm595_vm0, %v567_v46  ;;  %1053 = vst [vmem:[#allocation2 + $0x228] sm:$0xff] %v4416_v37 }
  0x5d   : > { %1054 = vst [vmem:[#allocation2 + $0x230] sm:$0xff] %v4416_v37 }
  0x5e   : > { %4270 = vmatmul.msk.f32.gmra.mxu2 %vm595_vm0, %v574_v47  ;;  %4277 = vmatmul.msk.f32.gmra.mxu3 %vm595_vm0, %v581_v48  ;;  %1055 = vst [vmem:[#allocation2 + $0x238] sm:$0xff] %v4416_v37 }
  0x5f   : > { %1057 = vst [vmem:[#allocation2 + $0x46] sm:$0x3] %v4416_v37 }
  0x60   : > { %1058 = vst [vmem:[#allocation2 + $0x66] sm:$0x3] %v4416_v37 }
  0x61   : > { %1059 = vst [vmem:[#allocation2 + $0x86] sm:$0x3] %v4416_v37 }
  0x62   : > { %1060 = vst [vmem:[#allocation2 + $0xa6] sm:$0x3] %v4416_v37 }
  0x63   : > { %1061 = vst [vmem:[#allocation2 + $0xc6] sm:$0x3] %v4416_v37 }
  0x64   : > { %4257 = vmatmul.msk.f32.gmra.mxu0 %vm595_vm0, %v561_v49  ;;  %4264 = vmatmul.msk.f32.gmra.mxu1 %vm595_vm0, %v568_v50  ;;  %1062 = vst [vmem:[#allocation2 + $0xe6] sm:$0x3] %v4416_v37 }
  0x65   : > { %1063 = vst [vmem:[#allocation2 + $0x106] sm:$0x3] %v4416_v37 }
  0x66   : > { %4271 = vmatmul.msk.f32.gmra.mxu2 %vm595_vm0, %v575_v51  ;;  %4278 = vmatmul.msk.f32.gmra.mxu3 %vm595_vm0, %v582_v52  ;;  %1064 = vst [vmem:[#allocation2 + $0x126] sm:$0x3] %v4416_v37 }
  0x67   : > { %1065 = vst [vmem:[#allocation2 + $0x146] sm:$0x3] %v4416_v37 }
  0x68   : > { %1066 = vst [vmem:[#allocation2 + $0x166] sm:$0x3] %v4416_v37 }
  0x69   : > { %1067 = vst [vmem:[#allocation2 + $0x186] sm:$0x3] %v4416_v37 }
  0x6a   : > { %1068 = vst [vmem:[#allocation2 + $0x1a6] sm:$0x3] %v4416_v37 }
  0x6b   : > { %1069 = vst [vmem:[#allocation2 + $0x1c6] sm:$0x3] %v4416_v37 }
  0x6c   : > { %4258 = vmatmul.msk.f32.gmra.mxu0 %vm595_vm0, %v562_v53  ;;  %4265 = vmatmul.msk.f32.gmra.mxu1 %vm595_vm0, %v569_v54  ;;  %1070 = vst [vmem:[#allocation2 + $0x1e6] sm:$0x3] %v4416_v37 }
  0x6e   : > { %4272 = vmatmul.msk.f32.gmra.mxu2 %vm595_vm0, %v576_v55  ;;  %4279 = vmatmul.msk.f32.gmra.mxu3 %vm595_vm0, %v583_v56 }
  0x74   : > { %4259 = vmatmul.msk.f32.gmra.mxu0 %vm595_vm0, %v563_v57  ;;  %4266 = vmatmul.msk.f32.gmra.mxu1 %vm595_vm0, %v570_v58 }
  0x76   : > { %4273 = vmatmul.msk.f32.gmra.mxu2 %vm595_vm0, %v577_v59  ;;  %4280 = vmatmul.msk.f32.gmra.mxu3 %vm595_vm0, %v584_v60 }
  0x7c   : > { %4260 = vmatmul.msk.f32.gmra.mxu0 %vm595_vm0, %v564_v61  ;;  %4267 = vmatmul.msk.f32.gmra.mxu1 %vm595_vm0, %v571_v62 }
  0x7e   : > { %4274 = vmatmul.msk.f32.gmra.mxu2 %vm595_vm0, %v578_v63  ;;  %4281 = vmatmul.msk.f32.gmra.mxu3 %vm595_vm0, %v585_v0  ;;  %v550_v0 = vlaneseq }
  0x84   : > { %4261 = vmatmul.msk.f32.gmra.mxu0 %vm595_vm0, %v565_v1  ;;  %4268 = vmatmul.msk.f32.gmra.mxu1 %vm595_vm0, %v572_v2 }
  0x86   : > { %4275 = vmatmul.msk.f32.gmra.mxu2 %vm595_vm0, %v579_v3  ;;  %4282 = vmatmul.msk.f32.gmra.mxu3 %vm595_vm0, %v586_v4  ;;  %v551_v3 = vshrl.u32 %v550_v0, 7 }
  0xd1   : > { %v4696_v5 = vpop.f32.mrf.mxu0  ;;  %v4698_v6 = vpop.f32.mrf.mxu1 }
  0xd9   : > { %v4700_v7 = vpop.f32.mrf.mxu0  ;;  %v4702_v8 = vpop.f32.mrf.mxu1 }
  0xda   : > { %v4704_v9 = vpop.f32.mrf.mxu2  ;;  %v4714_v14 = vpop.f32.mrf.mxu3  ;;  %v781_v19 = vadd.f32 %v4700_v7, %v4696_v5 }
  0xe1   : > { %v4706_v10 = vpop.f32.mrf.mxu0  ;;  %v4708_v11 = vpop.f32.mrf.mxu1 }
  0xe2   : > { %v4712_v13 = vpop.f32.mrf.mxu2  ;;  %v4722_v18 = vpop.f32.mrf.mxu3  ;;  %v782_v22 = vadd.f32 %v781_v19, %v4706_v10  ;;  %v552_v19 = vadd.s32 8, %v551_v3 }
  0xe4   : > { %vm554_vm1 = vcmp.lt.s32.totalorder %v552_v19, 14 }
  0xe9   : > { %v4710_v12 = vpop.f32.mrf.mxu0  ;;  %v4716_v15 = vpop.f32.mrf.mxu1 }
  0xea   : > { %v4720_v17 = vpop.f32.mrf.mxu2  ;;  %v783_v23 = vadd.f32 %v782_v22, %v4710_v12  ;;  %v4738_v28 = vpop.f32.mrf.mxu3 }
  0xf1   : > { %v4718_v16 = vpop.f32.mrf.mxu0  ;;  %v4728_v21 = vpop.f32.mrf.mxu1 }
  0xf2   : > { %v4732_v24 = vpop.f32.mrf.mxu2  ;;  %v784_v25 = vadd.f32 %v783_v23, %v4718_v16  ;;  %v4749_v36 = vpop.f32.mrf.mxu3 }
  0xf9   : > { %v4726_v20 = vpop.f32.mrf.mxu0  ;;  %v4741_v30 = vpop.f32.mrf.mxu1 }
  0xfa   : > { %v785_v26 = vadd.f32 %v784_v25, %v4726_v20  ;;  %v4745_v33 = vpop.f32.mrf.mxu2  ;;  %v4770_v45 = vpop.f32.mrf.mxu3  ;;  %v4815_v25 = vsel %vm554_vm1, 1.0, %v4416_v37 }
  0xfb   : > { %7589 = vst [vmem:[#allocation7_spill] sm:$0xff] %v4815_v25 }
 0x101   : > { %v4736_v27 = vpop.f32.mrf.mxu0  ;;  %v4754_v39 = vpop.f32.mrf.mxu1 }
 0x102   : > { %v786_v29 = vadd.f32 %v785_v26, %v4736_v27  ;;  %v4762_v42 = vpop.f32.mrf.mxu2  ;;  %v4789_v52 = vpop.f32.mrf.mxu3 }
 0x104   : > { %v787_v31 = vadd.f32 %v786_v29, %v4698_v6 }
 0x106   : > { %v788_v32 = vadd.f32 %v787_v31, %v4702_v8 }
 0x108   : > { %v789_v34 = vadd.f32 %v788_v32, %v4708_v11 }
 0x10a   : > { %v790_v35 = vadd.f32 %v789_v34, %v4716_v15  ;;  %v4781_v49 = vpop.f32.mrf.mxu2  ;;  %v4806_v58 = vpop.f32.mrf.mxu3 }
 0x10c   : > { %v791_v38 = vadd.f32 %v790_v35, %v4728_v21 }
 0x10e   : > { %v792_v40 = vadd.f32 %v791_v38, %v4741_v30 }
 0x110   : > { %v793_v41 = vadd.f32 %v792_v40, %v4754_v39 }
 0x112   : > { %v794_v43 = vadd.f32 %v793_v41, %v4704_v9 }
 0x114   : > { %v795_v44 = vadd.f32 %v794_v43, %v4712_v13 }
 0x116   : > { %v796_v46 = vadd.f32 %v795_v44, %v4720_v17 }
 0x118   : > { %v797_v47 = vadd.f32 %v796_v46, %v4732_v24 }
 0x11a   : > { %v798_v48 = vadd.f32 %v797_v47, %v4745_v33 }
 0x11c   : > { %v799_v50 = vadd.f32 %v798_v48, %v4762_v42 }
 0x11e   : > { %v800_v51 = vadd.f32 %v799_v50, %v4781_v49 }
 0x120   : > { %v801_v53 = vadd.f32 %v800_v51, %v4714_v14 }
 0x122   : > { %v802_v54 = vadd.f32 %v801_v53, %v4722_v18 }
 0x124   : > { %v803_v55 = vadd.f32 %v802_v54, %v4738_v28 }
 0x126   : > { %v804_v56 = vadd.f32 %v803_v55, %v4749_v36 }
 0x128   : > { %v805_v57 = vadd.f32 %v804_v56, %v4770_v45 }
 0x12a   : > { %v806_v59 = vadd.f32 %v805_v57, %v4789_v52 }
 0x12c   : > { %v807_v60 = vadd.f32 %v806_v59, %v4806_v58 }
 0x12e   : > { %v808_v61 = vrot.slane %v807_v60, 4 }
 0x130   : > { %v809_v62 = vadd.f32 %v808_v61, %v807_v60 }
 0x132   : > { %v810_v63 = vrot.slane %v809_v62, 2 }
 0x134   : > { %v811_v1 = vadd.f32 %v810_v63, %v809_v62 }
 0x136   : > { %v812_v2 = vrot.slane %v811_v1, 1 }
 0x138   : > { %v813_v4 = vadd.f32 %v812_v2, %v811_v1 }
 0x13a   : > { %v4810_v22 = vmul.f32 0.0051020407, %v813_v4 }
 0x13c   : > { %v816_v23 = vsub.f32 %v4700_v7, %v4810_v22  ;;  %v815_v29 = vsub.f32 %v4696_v5, %v4810_v22  ;;  %v818_v31 = vsub.f32 %v4710_v12, %v4810_v22  ;;  %v817_v32 = vsub.f32 %v4706_v10, %v4810_v22 }
 0x13d   : > { %v820_v35 = vsub.f32 %v4726_v20, %v4810_v22  ;;  %v819_v41 = vsub.f32 %v4718_v16, %v4810_v22  ;;  %v822_v46 = vsub.f32 %v4698_v6, %v4810_v22  ;;  %v821_v51 = vsub.f32 %v4736_v27, %v4810_v22 }
 0x13e   : > { %v844_v26 = vmul.f32 %v4815_v25, %v816_v23  ;;  %v846_v38 = vmul.f32 %v4815_v25, %v818_v31  ;;  %v871_v40 = vmul.f32 %v815_v29, %v815_v29  ;;  %v873_v43 = vmul.f32 %v817_v32, %v817_v32 }
 0x13f   : > { %v848_v47 = vmul.f32 %v4815_v25, %v820_v35  ;;  %v875_v53 = vmul.f32 %v819_v41, %v819_v41  ;;  %v824_v55 = vsub.f32 %v4708_v11, %v4810_v22  ;;  %v850_v56 = vmul.f32 %v4815_v25, %v822_v46 }
 0x140   : > { %v872_v34 = vmul.f32 %v844_v26, %v844_v26  ;;  %v874_v48 = vmul.f32 %v846_v38, %v846_v38  ;;  %v823_v60 = vsub.f32 %v4702_v8, %v4810_v22  ;;  %v877_v61 = vmul.f32 %v821_v51, %v821_v51 }
 0x141   : > { %v876_v57 = vmul.f32 %v848_v47, %v848_v47  ;;  %v826_v63 = vsub.f32 %v4728_v21, %v4810_v22  ;;  %v852_v0 = vmul.f32 %v4815_v25, %v824_v55  ;;  %v878_v1 = vmul.f32 %v850_v56, %v850_v56 }
 0x142   : > { %v899_v44 = vadd.f32 %v872_v34, %v871_v40  ;;  %v825_v3 = vsub.f32 %v4716_v15, %v4810_v22  ;;  %v879_v4 = vmul.f32 %v823_v60, %v823_v60  ;;  %v828_v23 = vsub.f32 %v4754_v39, %v4810_v22 }
 0x143   : > { %v854_v26 = vmul.f32 %v4815_v25, %v826_v63  ;;  %v880_v29 = vmul.f32 %v852_v0, %v852_v0  ;;  %v827_v32 = vsub.f32 %v4741_v30, %v4810_v22  ;;  %v830_v38 = vsub.f32 %v4712_v13, %v4810_v22 }
 0x144   : > { %v900_v50 = vadd.f32 %v899_v44, %v873_v43  ;;  %v881_v34 = vmul.f32 %v825_v3, %v825_v3  ;;  %v856_v40 = vmul.f32 %v4815_v25, %v828_v23  ;;  %v829_v44 = vsub.f32 %v4704_v9, %v4810_v22 }
 0x145   : > { %v882_v41 = vmul.f32 %v854_v26, %v854_v26  ;;  %v883_v46 = vmul.f32 %v827_v32, %v827_v32 }
 0x146   : > { %v901_v54 = vadd.f32 %v900_v50, %v874_v48  ;;  %v832_v48 = vsub.f32 %v4732_v24, %v4810_v22  ;;  %v858_v50 = vmul.f32 %v4815_v25, %v830_v38  ;;  %v884_v51 = vmul.f32 %v856_v40, %v856_v40 }
 0x147   : > { %v885_v55 = vmul.f32 %v829_v44, %v829_v44 }
 0x148   : > { %v902_v59 = vadd.f32 %v901_v54, %v875_v53  ;;  %v831_v54 = vsub.f32 %v4720_v17, %v4810_v22  ;;  %v886_v60 = vmul.f32 %v858_v50, %v858_v50 }
 0x14a   : > { %v903_v62 = vadd.f32 %v902_v59, %v876_v57  ;;  %v834_v57 = vsub.f32 %v4762_v42, %v4810_v22  ;;  %v860_v59 = vmul.f32 %v4815_v25, %v832_v48  ;;  %v887_v63 = vmul.f32 %v831_v54, %v831_v54 }
 0x14c   : > { %v904_v2 = vadd.f32 %v903_v62, %v877_v61  ;;  %v833_v62 = vsub.f32 %v4745_v33, %v4810_v22  ;;  %v888_v3 = vmul.f32 %v860_v59, %v860_v59 }
 0x14e   : > { %v905_v19 = vadd.f32 %v904_v2, %v878_v1  ;;  %v836_v1 = vsub.f32 %v4714_v14, %v4810_v22  ;;  %v862_v2 = vmul.f32 %v4815_v25, %v834_v57  ;;  %v889_v23 = vmul.f32 %v833_v62, %v833_v62 }
 0x150   : > { %v906_v31 = vadd.f32 %v905_v19, %v879_v4  ;;  %v835_v19 = vsub.f32 %v4781_v49, %v4810_v22  ;;  %v890_v32 = vmul.f32 %v862_v2, %v862_v2 }
 0x152   : > { %v907_v35 = vadd.f32 %v906_v31, %v880_v29  ;;  %v838_v29 = vsub.f32 %v4738_v28, %v4810_v22  ;;  %v864_v31 = vmul.f32 %v4815_v25, %v836_v1  ;;  %v891_v38 = vmul.f32 %v835_v19, %v835_v19 }
 0x154   : > { %v908_v43 = vadd.f32 %v907_v35, %v881_v34  ;;  %v837_v35 = vsub.f32 %v4722_v18, %v4810_v22  ;;  %v892_v44 = vmul.f32 %v864_v31, %v864_v31 }
 0x156   : > { %v909_v47 = vadd.f32 %v908_v43, %v882_v41  ;;  %v840_v41 = vsub.f32 %v4770_v45, %v4810_v22  ;;  %v866_v43 = vmul.f32 %v4815_v25, %v838_v29  ;;  %v893_v48 = vmul.f32 %v837_v35, %v837_v35 }
 0x158   : > { %v910_v53 = vadd.f32 %v909_v47, %v883_v46  ;;  %v839_v47 = vsub.f32 %v4749_v36, %v4810_v22  ;;  %v894_v54 = vmul.f32 %v866_v43, %v866_v43 }
 0x15a   : > { %v911_v56 = vadd.f32 %v910_v53, %v884_v51  ;;  %v842_v51 = vsub.f32 %v4806_v58, %v4810_v22  ;;  %v868_v53 = vmul.f32 %v4815_v25, %v840_v41  ;;  %v895_v57 = vmul.f32 %v839_v47, %v839_v47 }
 0x15c   : > { %v912_v61 = vadd.f32 %v911_v56, %v885_v55  ;;  %v841_v56 = vsub.f32 %v4789_v52, %v4810_v22 }
 0x15e   : > { %v913_v0 = vadd.f32 %v912_v61, %v886_v60  ;;  %v870_v60 = vmul.f32 %v4815_v25, %v842_v51  ;;  %v896_v61 = vmul.f32 %v868_v53, %v868_v53  ;;  %v946_v51 = vld [vmem:[%s543_s9] sm:$0x1] }
 0x160   : > { %v914_v4 = vadd.f32 %v913_v0, %v887_v63  ;;  %v897_v63 = vmul.f32 %v841_v56, %v841_v56  ;;  %v898_v1 = vmul.f32 %v870_v60, %v870_v60 }
 0x162   : > { %v915_v26 = vadd.f32 %v914_v4, %v888_v3 }
 0x164   : > { %v916_v34 = vadd.f32 %v915_v26, %v889_v23 }
 0x166   : > { %v917_v40 = vadd.f32 %v916_v34, %v890_v32 }
 0x168   : > { %v918_v46 = vadd.f32 %v917_v40, %v891_v38 }
 0x16a   : > { %v919_v50 = vadd.f32 %v918_v46, %v892_v44  ;;  %v933_v44 = vld [vmem:[%s540_s22] sm:$0x1] }
 0x16c   : > { %v920_v55 = vadd.f32 %v919_v50, %v893_v48 }
 0x16e   : > { %v921_v59 = vadd.f32 %v920_v55, %v894_v54 }
 0x170   : > { %v922_v62 = vadd.f32 %v921_v59, %v895_v57 }
 0x172   : > { %v923_v0 = vadd.f32 %v922_v62, %v896_v61 }
 0x174   : > { %v924_v2 = vadd.f32 %v923_v0, %v897_v63 }
 0x176   : > { %v925_v3 = vadd.f32 %v924_v2, %v898_v1 }
 0x178   : > { %v926_v4 = vrot.slane %v925_v3, 4 }
 0x17a   : > { %v927_v19 = vadd.f32 %v926_v4, %v925_v3 }
 0x17c   : > { %v928_v23 = vrot.slane %v927_v19, 2 }
 0x17e   : > { %v929_v26 = vadd.f32 %v928_v23, %v927_v19 }
 0x180   : > { %v930_v29 = vrot.slane %v929_v26, 1 }
 0x182   : > { %v931_v31 = vadd.f32 %v930_v29, %v929_v26 }
 0x184   : > { %v932_v32 = vmul.f32 0.0051020407, %v931_v31 }
 0x186   : > { %v934_v34 = vadd.f32 0.001, %v932_v32 }
 0x188   : > { %4387 = vrsqrt.f32 %v934_v34  ;;  %vm941_vm3 = vweird.f32 %v934_v34 }
 0x18e   : > { %v4388_v35 = vpop.eup %4387 }
 0x18f   : > { %v936_v38 = vmul.f32 %v4388_v35, %v934_v34  ;;  %vm942_vm2 = vweird.f32 %v4388_v35 }
 0x190   : > { %vm943_vm4 = vmor %vm941_vm3, %vm942_vm2 }
 0x191   : > { %v937_v40 = vmul.f32 %v4388_v35, %v936_v38 }
 0x193   : > { %v938_v41 = vmul.f32 0.5, %v937_v40 }
 0x195   : > { %v939_v43 = vsub.f32 1.5, %v938_v41 }
 0x197   : > { %v940_v46 = vmul.f32 %v4388_v35, %v939_v43 }
 0x199   : > { %v944_v47 = vsel %vm943_vm4, %v4388_v35, %v940_v46 }
 0x19a   : > { %v945_v48 = vmul.f32 %v944_v47, %v933_v44 }
 0x19c   : > { %v947_v50 = vmul.f32 %v945_v48, %v4810_v22  ;;  %v4898_v54 = vperm.slane %v945_v48, 0 }
 0x19e   : > { %v948_v53 = vsub.f32 %v946_v51, %v947_v50  ;;  %v952_v56 = vmul.f32 %v4898_v54, %v4696_v5  ;;  %v953_v57 = vmul.f32 %v4898_v54, %v4700_v7  ;;  %v954_v59 = vmul.f32 %v4898_v54, %v4706_v10 }
 0x19f   : > { %v955_v60 = vmul.f32 %v4898_v54, %v4710_v12  ;;  %v956_v22 = vmul.f32 %v4898_v54, %v4718_v16  ;;  %v957_v5 = vmul.f32 %v4898_v54, %v4726_v20  ;;  %v958_v10 = vmul.f32 %v4898_v54, %v4736_v27 }
 0x1a0   : > { %v4900_v55 = vperm.slane %v948_v53, 0  ;;  %v959_v12 = vmul.f32 %v4898_v54, %v4698_v6  ;;  %v960_v16 = vmul.f32 %v4898_v54, %v4702_v8  ;;  %v961_v19 = vmul.f32 %v4898_v54, %v4708_v11 }
 0x1a1   : > { %v962_v26 = vmul.f32 %v4898_v54, %v4716_v15  ;;  %v963_v8 = vmul.f32 %v4898_v54, %v4728_v21  ;;  %v964_v11 = vmul.f32 %v4898_v54, %v4741_v30  ;;  %v965_v15 = vmul.f32 %v4898_v54, %v4754_v39 }
 0x1a2   : > { %v983_v61 = vadd.f32 %v4900_v55, %v952_v56  ;;  %v984_v62 = vadd.f32 %v4900_v55, %v953_v57  ;;  %v985_v63 = vadd.f32 %v4900_v55, %v954_v59  ;;  %v986_v7 = vadd.f32 %v4900_v55, %v955_v60 }
 0x1a3   : > { %v987_v0 = vadd.f32 %v4900_v55, %v956_v22  ;;  %v988_v1 = vadd.f32 %v4900_v55, %v957_v5  ;;  %v989_v2 = vadd.f32 %v4900_v55, %v958_v10  ;;  %v990_v27 = vadd.f32 %v4900_v55, %v959_v12 }
 0x1a4   : > { %v1011_v3 = vmax.f32 %v983_v61, 0.0  ;;  %v1012_v4 = vmax.f32 %v984_v62, 0.0  ;;  %v1013_v20 = vmax.f32 %v985_v63, 0.0  ;;  %v1014_v23 = vmax.f32 %v986_v7, 0.0 }
 0x1a5   : > { %v991_v6 = vadd.f32 %v4900_v55, %v960_v16  ;;  %v1015_v29 = vmax.f32 %v987_v0, 0.0  ;;  %v992_v31 = vadd.f32 %v4900_v55, %v961_v19  ;;  %v1016_v32 = vmax.f32 %v988_v1, 0.0 }
 0x1a6   : > { %1071 = vst [vmem:[#allocation2 + $0x48] sm:$0xff] %v1011_v3  ;;  %v993_v34 = vadd.f32 %v4900_v55, %v962_v26  ;;  %v1017_v35 = vmax.f32 %v989_v2, 0.0  ;;  %v994_v38 = vadd.f32 %v4900_v55, %v963_v8  ;;  %v1018_v40 = vmax.f32 %v990_v27, 0.0  ;;  %v1114_v8 = vld [vmem:[#allocation2 + $0xe] sm:$0xff] }
 0x1a7   : > { %1072 = vst [vmem:[#allocation2 + $0x50] sm:$0xff] %v1012_v4  ;;  %v966_v21 = vmul.f32 %v4898_v54, %v4704_v9  ;;  %v995_v41 = vadd.f32 %v4900_v55, %v964_v11  ;;  %v1019_v43 = vmax.f32 %v991_v6, 0.0  ;;  %v967_v30 = vmul.f32 %v4898_v54, %v4712_v13 }
 0x1a8   : > { %1073 = vst [vmem:[#allocation2 + $0x68] sm:$0xff] %v1013_v20  ;;  %v996_v44 = vadd.f32 %v4900_v55, %v965_v15  ;;  %v1020_v46 = vmax.f32 %v992_v31, 0.0  ;;  %v968_v39 = vmul.f32 %v4898_v54, %v4720_v17  ;;  %v1021_v48 = vmax.f32 %v993_v34, 0.0  ;;  %v1115_v31 = vld [vmem:[#allocation2 + $0x26] sm:$0xff] }
 0x1a9   : > { %1074 = vst [vmem:[#allocation2 + $0x70] sm:$0xff] %v1014_v23  ;;  %v997_v47 = vadd.f32 %v4900_v55, %v966_v21  ;;  %v969_v9 = vmul.f32 %v4898_v54, %v4732_v24  ;;  %v998_v50 = vadd.f32 %v4900_v55, %v967_v30  ;;  %v1022_v51 = vmax.f32 %v994_v38, 0.0 }
 0x1aa   : > { %1075 = vst [vmem:[#allocation2 + $0x88] sm:$0xff] %v1015_v29  ;;  %v970_v13 = vmul.f32 %v4898_v54, %v4745_v33  ;;  %v999_v53 = vadd.f32 %v4900_v55, %v968_v39  ;;  %v1023_v56 = vmax.f32 %v995_v41, 0.0  ;;  %v971_v17 = vmul.f32 %v4898_v54, %v4762_v42 }
 0x1ab   : > { %1076 = vst [vmem:[#allocation2 + $0x90] sm:$0xff] %v1016_v32  ;;  %v1000_v57 = vadd.f32 %v4900_v55, %v969_v9  ;;  %v1024_v59 = vmax.f32 %v996_v44, 0.0  ;;  %v972_v24 = vmul.f32 %v4898_v54, %v4781_v49  ;;  %v1025_v22 = vmax.f32 %v997_v47, 0.0  ;;  %v1116_v32 = vld [vmem:[#allocation2 + $0x2e] sm:$0xff] }
 0x1ac   : > { %1077 = vst [vmem:[#allocation2 + $0xa8] sm:$0xff] %v1017_v35  ;;  %v1001_v60 = vadd.f32 %v4900_v55, %v970_v13  ;;  %v973_v33 = vmul.f32 %v4898_v54, %v4714_v14  ;;  %v1002_v61 = vadd.f32 %v4900_v55, %v971_v17  ;;  %v1026_v62 = vmax.f32 %v998_v50, 0.0 }
 0x1ad   : > { %1078 = vst [vmem:[#allocation2 + $0xb0] sm:$0xff] %v1018_v40  ;;  %v974_v42 = vmul.f32 %v4898_v54, %v4722_v18  ;;  %v1003_v63 = vadd.f32 %v4900_v55, %v972_v24  ;;  %v1027_v5 = vmax.f32 %v999_v53, 0.0  ;;  %v975_v49 = vmul.f32 %v4898_v54, %v4738_v28  ;;  %v5006_v11 = vld [vmem:[#allocation2 + $0x46] sm:$0xff] }
 0x1ae   : > { %1079 = vst [vmem:[#allocation2 + $0xc8] sm:$0xff] %v1019_v43  ;;  %v1004_v7 = vadd.f32 %v4900_v55, %v973_v33  ;;  %v1028_v10 = vmax.f32 %v1000_v57, 0.0  ;;  %v976_v14 = vmul.f32 %v4898_v54, %v4749_v36  ;;  %v1029_v12 = vmax.f32 %v1001_v60, 0.0  ;;  %v5008_v34 = vld [vmem:[#allocation2 + $0x4e] sm:$0xff] }
 0x1af   : > { %1080 = vst [vmem:[#allocation2 + $0xd0] sm:$0xff] %v1020_v46  ;;  %v1005_v0 = vadd.f32 %v4900_v55, %v974_v42  ;;  %v977_v18 = vmul.f32 %v4898_v54, %v4770_v45  ;;  %v1006_v16 = vadd.f32 %v4900_v55, %v975_v49  ;;  %v1030_v1 = vmax.f32 %v1002_v61, 0.0  ;;  %v5010_v35 = vld [vmem:[#allocation2 + $0x66] sm:$0xff] }
 0x1b0   : > { %1081 = vst [vmem:[#allocation2 + $0xe8] sm:$0xff] %v1021_v48  ;;  %v978_v28 = vmul.f32 %v4898_v54, %v4789_v52  ;;  %v1007_v2 = vadd.f32 %v4900_v55, %v976_v14  ;;  %v1031_v3 = vmax.f32 %v1003_v63, 0.0  ;;  %v979_v36 = vmul.f32 %v4898_v54, %v4806_v58  ;;  %v5001_v58 = vld [vmem:[%s4576_s12] ss:$0 sm:$0xff]  ;;  %v5004_v54 = vld [vmem:[%s4576_s12 + $0x5] ss:$0 sm:$0xff] }
 0x1b1   : > { %1082 = vst [vmem:[#allocation2 + $0xf0] sm:$0xff] %v1022_v51  ;;  %v1008_v4 = vadd.f32 %v4900_v55, %v977_v18  ;;  %v1032_v20 = vmax.f32 %v1004_v7, 0.0  ;;  %v1033_v19 = vmax.f32 %v1005_v0, 0.0  ;;  %v1034_v23 = vmax.f32 %v1006_v16, 0.0  ;;  %v5012_v15 = vld [vmem:[#allocation2 + $0x6e] sm:$0xff]  ;;  %v5014_v38 = vld [vmem:[#allocation2 + $0x86] sm:$0xff] }
 0x1b2   : > { %1083 = vst [vmem:[#allocation2 + $0x108] sm:$0xff] %v1023_v56  ;;  %v1009_v45 = vadd.f32 %v4900_v55, %v978_v28  ;;  %v1010_v27 = vadd.f32 %v4900_v55, %v979_v36  ;;  %v1035_v52 = vmax.f32 %v1007_v2, 0.0  ;;  %v1113_v55 = vld [vmem:[#allocation2 + $0x6] sm:$0xff]  ;;  %v5016_v40 = vld [vmem:[#allocation2 + $0x8e] sm:$0xff]  ;;  %v1218_v21 = vmul.f32 %v5001_v58, %v1114_v8 }
 0x1b3   : > { %1084 = vst [vmem:[#allocation2 + $0x110] sm:$0xff] %v1024_v59  ;;  %v1036_v26 = vmax.f32 %v1008_v4, 0.0  ;;  %v5020_v41 = vld [vmem:[#allocation2 + $0xa6] sm:$0xff]  ;;  %v1219_v43 = vmul.f32 %v5001_v58, %v1115_v31  ;;  %v1220_v30 = vmul.f32 %v5001_v58, %v1116_v32  ;;  %v1221_v44 = vmul.f32 %v5001_v58, %v5006_v11 }
 0x1b4   : > { %1085 = vst [vmem:[#allocation2 + $0x128] sm:$0xff] %v1025_v22  ;;  %v1037_v6 = vmax.f32 %v1009_v45, 0.0  ;;  %v1038_v29 = vmax.f32 %v1010_v27, 0.0  ;;  %v1307_v46 = vmul.f32 %v5004_v54, %v1115_v31  ;;  %v5027_v39 = vld [vmem:[#allocation2 + $0xae] sm:$0xff]  ;;  %v1222_v47 = vmul.f32 %v5001_v58, %v5008_v34  ;;  %v5099_v45 = vld [vmem:[%s4576_s12 + $0xa] ss:$0 sm:$0xff] }
 0x1b5   : > { %1086 = vst [vmem:[#allocation2 + $0x130] sm:$0xff] %v1026_v62  ;;  %v1223_v48 = vmul.f32 %v5001_v58, %v5010_v35  ;;  %v1224_v9 = vmul.f32 %v5001_v58, %v5012_v15  ;;  %v1308_v50 = vmul.f32 %v5004_v54, %v1116_v32  ;;  %v5036_v51 = vld [vmem:[#allocation2 + $0xc6] sm:$0xff]  ;;  %v1225_v13 = vmul.f32 %v5001_v58, %v5014_v38 }
 0x1b6   : > { %1087 = vst [vmem:[#allocation2 + $0x148] sm:$0xff] %v1027_v5  ;;  %v1226_v53 = vmul.f32 %v5001_v58, %v5016_v40  ;;  %v1309_v56 = vmul.f32 %v5004_v54, %v5006_v11  ;;  %v1310_v17 = vmul.f32 %v5004_v54, %v5008_v34  ;;  %v5046_v57 = vld [vmem:[#allocation2 + $0xce] sm:$0xff]  ;;  %v1227_v59 = vmul.f32 %v5001_v58, %v5020_v41 }
 0x1b7   : > { %1088 = vst [vmem:[#allocation2 + $0x150] sm:$0xff] %v1028_v10  ;;  %v1311_v24 = vmul.f32 %v5004_v54, %v5010_v35  ;;  %v1312_v60 = vmul.f32 %v5004_v54, %v5012_v15  ;;  %v1313_v22 = vmul.f32 %v5004_v54, %v5014_v38  ;;  %v5056_v33 = vld [vmem:[#allocation2 + $0xe6] sm:$0xff]  ;;  %v1228_v62 = vmul.f32 %v5001_v58, %v5027_v39 }
 0x1b8   : > { %1089 = vst [vmem:[#allocation2 + $0x168] sm:$0xff] %v1029_v12  ;;  %v5058_v61 = vld [vmem:[#allocation2 + $0xee] sm:$0xff]  ;;  %v1314_v42 = vmul.f32 %v5004_v54, %v5016_v40  ;;  %v1315_v63 = vmul.f32 %v5004_v54, %v5020_v41  ;;  %v1316_v5 = vmul.f32 %v5004_v54, %v5027_v39  ;;  %v1229_v7 = vmul.f32 %v5001_v58, %v5036_v51 }
 0x1b9   : > { %1090 = vst [vmem:[#allocation2 + $0x170] sm:$0xff] %v1030_v1  ;;  %v5068_v49 = vld [vmem:[#allocation2 + $0x106] sm:$0xff]  ;;  %v1317_v10 = vmul.f32 %v5004_v54, %v5036_v51  ;;  %v5076_v0 = vadd.f32 %v1308_v50, %v1218_v21  ;;  %v1230_v18 = vmul.f32 %v5001_v58, %v5046_v57  ;;  %v1318_v16 = vmul.f32 %v5004_v54, %v5046_v57 }
 0x1ba   : > { %1091 = vst [vmem:[#allocation2 + $0x188] sm:$0xff] %v1031_v3  ;;  %v5078_v12 = vld [vmem:[#allocation2 + $0x10e] sm:$0xff]  ;;  %v5084_v1 = vadd.f32 %v1309_v56, %v1219_v43  ;;  %v5086_v28 = vadd.f32 %v1310_v17, %v1220_v30  ;;  %v1319_v3 = vmul.f32 %v5004_v54, %v5056_v33  ;;  %v1320_v36 = vmul.f32 %v5004_v54, %v5058_v61 }
 0x1bb   : > { %1092 = vst [vmem:[#allocation2 + $0x190] sm:$0xff] %v1032_v20  ;;  %v5088_v2 = vld [vmem:[#allocation2 + $0x126] sm:$0xff]  ;;  %v5094_v4 = vadd.f32 %v1311_v24, %v1221_v44  ;;  %v5096_v20 = vadd.f32 %v1312_v60, %v1222_v47  ;;  %v1231_v27 = vmul.f32 %v5001_v58, %v5056_v33  ;;  %v5117_v8 = vadd.f32 %v1315_v63, %v1225_v13 }
 0x1bc   : > { %1093 = vst [vmem:[#allocation2 + $0x1a8] sm:$0xff] %v1033_v19  ;;  %v5101_v19 = vld [vmem:[#allocation2 + $0x12e] sm:$0xff]  ;;  %v5119_v31 = vadd.f32 %v1316_v5, %v1226_v53  ;;  %v1323_v21 = vmul.f32 %v5004_v54, %v5088_v2  ;;  %v5127_v43 = vadd.f32 %v1317_v10, %v1227_v59  ;;  %v5129_v30 = vadd.f32 %v1318_v16, %v1228_v62 }
 0x1bd   : > { %1094 = vst [vmem:[#allocation2 + $0x1b0] sm:$0xff] %v1034_v23  ;;  %v1321_v23 = vmul.f32 %v5004_v54, %v5068_v49  ;;  %v1234_v44 = vmul.f32 %v5001_v58, %v5078_v12  ;;  %v5135_v47 = vadd.f32 %v1319_v3, %v1229_v7  ;;  %v1235_v50 = vmul.f32 %v5001_v58, %v5088_v2 }
 0x1be   : > { %1095 = vst [vmem:[#allocation2 + $0x1c8] sm:$0xff] %v1035_v52  ;;  %v5107_v52 = vadd.f32 %v1313_v22, %v1223_v48  ;;  %v5121_v32 = vld [vmem:[#allocation2 + $0x14e] sm:$0xff]  ;;  %v5137_v48 = vadd.f32 %v1320_v36, %v1230_v18  ;;  %v5149_v56 = vmul.f32 %v5099_v45, %v5006_v11  ;;  %v1236_v59 = vmul.f32 %v5001_v58, %v5101_v19 }
 0x1bf   : > { %1096 = vst [vmem:[#allocation2 + $0x1d0] sm:$0xff] %v1036_v26  ;;  %v5109_v26 = vadd.f32 %v1314_v42, %v1224_v9  ;;  %v5139_v9 = vld [vmem:[#allocation2 + $0x166] sm:$0xff]  ;;  %v5145_v53 = vadd.f32 %v1321_v23, %v1231_v27  ;;  %v1326_v24 = vmul.f32 %v5004_v54, %v5121_v32  ;;  %v5161_v22 = vmul.f32 %v5099_v45, %v5008_v34 }
 0x1c0   : > { %1097 = vst [vmem:[#allocation2 + $0x1e8] sm:$0xff] %v1037_v6  ;;  %v5111_v6 = vld [vmem:[#allocation2 + $0x146] sm:$0xff]  ;;  %v5151_v17 = vld [vmem:[#allocation2 + $0x16e] sm:$0xff]  ;;  %v1238_v63 = vmul.f32 %v5001_v58, %v5121_v32  ;;  %v1399_v7 = vmul.f32 %v5099_v45, %v5010_v35  ;;  %v1239_v34 = vmul.f32 %v5001_v58, %v5139_v9  ;;  %v1327_v16 = vmul.f32 %v5004_v54, %v5139_v9 }
 0x1c1   : > { %1098 = vst [vmem:[#allocation2 + $0x1f0] sm:$0xff] %v1038_v29  ;;  %v1232_v29 = vmul.f32 %v5001_v58, %v5058_v61  ;;  %v1325_v13 = vmul.f32 %v5004_v54, %v5111_v6  ;;  %v5163_v62 = vld [vmem:[#allocation2 + $0x186] sm:$0xff]  ;;  %v1237_v11 = vmul.f32 %v5001_v58, %v5111_v6  ;;  %v1400_v36 = vmul.f32 %v5099_v45, %v5012_v15 }
 0x1c2   : > { %1099 = vst [vmem:[#allocation2 + $0x56] sm:$0xf] %v4416_v37  ;;  %v5165_v42 = vld [vmem:[#allocation2 + $0x18e] sm:$0xff]  ;;  %v1240_v23 = vmul.f32 %v5001_v58, %v5151_v17  ;;  %v1354_v25 = vadd.f32 %v1326_v24, %v1236_v59 }
 0x1c3   : > { %1100 = vst [vmem:[#allocation2 + $0x76] sm:$0xf] %v4416_v37  ;;  %v5175_v10 = vld [vmem:[#allocation2 + $0x1a6] sm:$0xff]  ;;  %v1355_v24 = vadd.f32 %v1327_v16, %v1237_v11  ;;  %v1406_v11 = vmul.f32 %v5099_v45, %v5046_v57 }
 0x1c4   : > { %1101 = vst [vmem:[#allocation2 + $0x96] sm:$0xf] %v4416_v37  ;;  %v5177_v18 = vld [vmem:[#allocation2 + $0x1ae] sm:$0xff] }
 0x1c5   : > { %1102 = vst [vmem:[#allocation2 + $0xb6] sm:$0xf] %v4416_v37  ;;  %v5187_v27 = vld [vmem:[#allocation2 + $0x1c6] sm:$0xff] }
 0x1c6   : > { %1103 = vst [vmem:[#allocation2 + $0xd6] sm:$0xf] %v4416_v37  ;;  %v1333_v59 = vmul.f32 %v5004_v54, %v5187_v27 }
 0x1c7   : > { %1104 = vst [vmem:[#allocation2 + $0xf6] sm:$0xf] %v4416_v37 }
 0x1c8   : > { %1105 = vst [vmem:[#allocation2 + $0x116] sm:$0xf] %v4416_v37 }
 0x1c9   : > { %1106 = vst [vmem:[#allocation2 + $0x136] sm:$0xf] %v4416_v37 }
 0x1ca   : > { %1107 = vst [vmem:[#allocation2 + $0x156] sm:$0xf] %v4416_v37 }
 0x1cb   : > { %1108 = vst [vmem:[#allocation2 + $0x176] sm:$0xf] %v4416_v37 }
 0x1cc   : > { %1109 = vst [vmem:[#allocation2 + $0x196] sm:$0xf] %v4416_v37 }
 0x1cd   : > { %1110 = vst [vmem:[#allocation2 + $0x1b6] sm:$0xf] %v4416_v37 }
 0x1ce   : > { %1111 = vst [vmem:[#allocation2 + $0x1d6] sm:$0xf] %v4416_v37 }
 0x1cf   : > { %1112 = vst [vmem:[#allocation2 + $0x1f6] sm:$0xf] %v4416_v37  ;;  %v1217_v37 = vmul.f32 %v5001_v58, %v1113_v55  ;;  %v1322_v55 = vmul.f32 %v5004_v54, %v5078_v12 }
 0x1d0   : > { %7590 = vst [vmem:[#allocation8_spill] sm:$0xff] %v5010_v35  ;;  %v1241_v35 = vmul.f32 %v5001_v58, %v5163_v62 }
 0x1d1   : > { %7591 = vst [vmem:[#allocation9_spill] sm:$0xff] %v5012_v15  ;;  %v5074_v14 = vadd.f32 %v1307_v46, %v1217_v37  ;;  %v1233_v37 = vmul.f32 %v5001_v58, %v5068_v49  ;;  %v1324_v46 = vmul.f32 %v5004_v54, %v5101_v19  ;;  %v5157_v60 = vadd.f32 %v1322_v55, %v1232_v29 }
 0x1d2   : > { %7592 = vst [vmem:[#allocation10_spill] sm:$0xff] %v5014_v38  ;;  %v1328_v29 = vmul.f32 %v5004_v54, %v5151_v17  ;;  %v5193_v55 = vadd.f32 %v1325_v13, %v1235_v50  ;;  %v1402_v15 = vmul.f32 %v5099_v45, %v5016_v40  ;;  %v1242_v50 = vmul.f32 %v5001_v58, %v5165_v42 }
 0x1d3   : > { %7593 = vst [vmem:[#allocation11_spill] sm:$0xff] %v5016_v40  ;;  %v5171_v5 = vadd.f32 %v1323_v21, %v1233_v37  ;;  %v5183_v3 = vadd.f32 %v1324_v46, %v1234_v44  ;;  %v1401_v37 = vmul.f32 %v5099_v45, %v5014_v38  ;;  %v5197_v21 = vld [vmem:[#allocation2 + $0x1ce] sm:$0xff]  ;;  %v1329_v44 = vmul.f32 %v5004_v54, %v5163_v62 }
 0x1d4   : > { %7594 = vst [vmem:[#allocation12_spill] sm:$0xff] %v5020_v41  ;;  %v1330_v46 = vmul.f32 %v5004_v54, %v5165_v42  ;;  %v1331_v13 = vmul.f32 %v5004_v54, %v5175_v10  ;;  %v1332_v38 = vmul.f32 %v5004_v54, %v5177_v18  ;;  %v1403_v40 = vmul.f32 %v5099_v45, %v5020_v41 }
 0x1d5   : > { %7595 = vst [vmem:[#allocation13_spill] sm:$0xff] %v5027_v39 }
 0x1d6   : > { %7596 = vst [vmem:[#allocation14_spill] sm:$0xff] %v5036_v51  ;;  %v1359_v16 = vadd.f32 %v1331_v13, %v1241_v35  ;;  %v1360_v41 = vadd.f32 %v1332_v38, %v1242_v50  ;;  %v5241_v35 = vld [vmem:[#allocation2 + $0x1ee] sm:$0xff]  ;;  %v1414_v50 = vmul.f32 %v5099_v45, %v5121_v32  ;;  %v1415_v13 = vmul.f32 %v5099_v45, %v5139_v9 }
 0x1d7   : > { %7597 = vst [vmem:[#allocation15_spill] sm:$0xff] %v5046_v57 }
 0x1d8   : > { %7598 = vst [vmem:[#allocation16_spill] sm:$0xff] %v5056_v33 }
 0x1d9   : > { %7599 = vst [vmem:[#allocation17_spill] sm:$0xff] %v5058_v61 }
 0x1da   : > { %7600 = vst [vmem:[#allocation18_spill] sm:$0xff] %v5068_v49 }
 0x1db   : > { %7601 = vst [vmem:[#allocation19_spill] sm:$0xff] %v5078_v12 }
 0x1dc   : > { %7602 = vst [vmem:[#allocation20_spill] sm:$0xff] %v5088_v2 }
 0x1dd   : > { %7603 = vst [vmem:[#allocation21_spill] sm:$0xff] %v5101_v19 }
 0x1de   : > { %7604 = vst [vmem:[#allocation22_spill] sm:$0xff] %v5111_v6 }
 0x1df   : > { %7605 = vst [vmem:[#allocation23_spill] sm:$0xff] %v5121_v32  ;;  %v1421_v32 = vmul.f32 %v5099_v45, %v5187_v27 }
 0x1e0   : > { %7606 = vst [vmem:[#allocation24_spill] sm:$0xff] %v5129_v30  ;;  %v1405_v30 = vmul.f32 %v5099_v45, %v5036_v51 }
 0x1e1   : > { %7607 = vst [vmem:[#allocation25_spill] sm:$0xff] %v5135_v47  ;;  %v1358_v47 = vadd.f32 %v1330_v46, %v1240_v23  ;;  %v1411_v23 = vmul.f32 %v5099_v45, %v5088_v2  ;;  %v1412_v46 = vmul.f32 %v5099_v45, %v5101_v19  ;;  %v1417_v2 = vmul.f32 %v5099_v45, %v5163_v62 }
 0x1e2   : > { %7608 = vst [vmem:[#allocation26_spill] sm:$0xff] %v5137_v48  ;;  %v1357_v48 = vadd.f32 %v1329_v44, %v1239_v34  ;;  %v1410_v34 = vmul.f32 %v5099_v45, %v5078_v12  ;;  %v5239_v44 = vld [vmem:[#allocation2 + $0x1e6] sm:$0xff]  ;;  %v1428_v19 = vadd.f32 %v1400_v36, %v5086_v28  ;;  %v1431_v12 = vadd.f32 %v1403_v40, %v5107_v52 }
 0x1e3   : > { %7609 = vst [vmem:[#allocation27_spill] sm:$0xff] %v5139_v9  ;;  %v1422_v9 = vmul.f32 %v5099_v45, %v5197_v21 }
 0x1e4   : > { %7610 = vst [vmem:[#allocation28_spill] sm:$0xff] %v5145_v53  ;;  %v1404_v53 = vmul.f32 %v5099_v45, %v5027_v39 }
 0x1e5   : > { %7611 = vst [vmem:[#allocation29_spill] sm:$0xff] %v5151_v17 }
 0x1e6   : > { %7612 = vst [vmem:[#allocation30_spill] sm:$0xff] %v5157_v60  ;;  %v1356_v60 = vadd.f32 %v1328_v29, %v1238_v63  ;;  %v1409_v29 = vmul.f32 %v5099_v45, %v5068_v49 }
 0x1e7   : > { %7613 = vst [vmem:[#allocation31_spill] sm:$0xff] %v5163_v62  ;;  %v1424_v62 = vmul.f32 %v5099_v45, %v5241_v35 }
 0x1e8   : > { %7614 = vst [vmem:[#allocation32_spill] sm:$0xff] %v5165_v42 }
 0x1e9   : > { %7615 = vst [vmem:[#allocation33_spill] sm:$0xff] %v5171_v5  ;;  %v1334_v5 = vmul.f32 %v5004_v54, %v5197_v21  ;;  %v1408_v54 = vmul.f32 %v5099_v45, %v5058_v61  ;;  %v7626_v28 = vld [vmem:[#allocation26_spill] sm:$0xff] }
 0x1ea   : > { %7616 = vst [vmem:[#allocation34_spill] sm:$0xff] %v5175_v10  ;;  %v1438_v36 = vadd.f32 %v1410_v34, %v7626_v28  ;;  %v7632_v34 = vld [vmem:[#allocation8_spill] sm:$0xff] }
 0x1eb   : > { %7617 = vst [vmem:[#allocation35_spill] sm:$0xff] %v5177_v18 }
 0x1ec   : > { %7618 = vst [vmem:[#allocation36_spill] sm:$0xff] %v5183_v3  ;;  %v1244_v3 = vmul.f32 %v5001_v58, %v5177_v18 }
 0x1ed   : > { %7619 = vst [vmem:[#allocation37_spill] sm:$0xff] %v5187_v27  ;;  %v1429_v27 = vadd.f32 %v1401_v37, %v5094_v4  ;;  %v7627_v4 = vld [vmem:[#allocation28_spill] sm:$0xff] }
 0x1ee   : > { %7620 = vst [vmem:[#allocation38_spill] sm:$0xff] %v5193_v55  ;;  %v1243_v55 = vmul.f32 %v5001_v58, %v5175_v10  ;;  %v1407_v58 = vmul.f32 %v5099_v45, %v5056_v33  ;;  %v1362_v38 = vadd.f32 %v1334_v5, %v1244_v3  ;;  %v1418_v5 = vmul.f32 %v5099_v45, %v5165_v42 }
 0x1ef   : > { %7621 = vst [vmem:[#allocation39_spill] sm:$0xff] %v5197_v21  ;;  %v1419_v3 = vmul.f32 %v5099_v45, %v5175_v10  ;;  %v1425_v42 = vadd.f32 %v5149_v56, %v5074_v14  ;;  %v1426_v10 = vadd.f32 %v5161_v22, %v5076_v0  ;;  %v1430_v21 = vadd.f32 %v1402_v15, %v5096_v20  ;;  %v4365_v14 = vld [vmem:[%s4576_s12 + $0xf] ss:$0 sm:$0xff]  ;;  %v7624_v0 = vld [vmem:[#allocation24_spill] sm:$0xff] }
 0x1f0   : > { %v1361_v63 = vadd.f32 %v1333_v59, %v1243_v55  ;;  %7622 = vst [vmem:[#allocation40_spill] sm:$0xff] %v5239_v44  ;;  %v1413_v55 = vmul.f32 %v5099_v45, %v5111_v6  ;;  %v1416_v59 = vmul.f32 %v5099_v45, %v5151_v17  ;;  %v1420_v6 = vmul.f32 %v5099_v45, %v5177_v18  ;;  %v7628_v15 = vld [vmem:[#allocation30_spill] sm:$0xff]  ;;  %v7629_v40 = vld [vmem:[#allocation33_spill] sm:$0xff] }
 0x1f1   : > { %7623 = vst [vmem:[#allocation41_spill] sm:$0xff] %v5241_v35  ;;  %v1423_v17 = vmul.f32 %v5099_v45, %v5239_v44  ;;  %v1427_v18 = vadd.f32 %v1399_v7, %v5084_v1  ;;  %v1432_v44 = vadd.f32 %v1404_v53, %v5109_v26  ;;  %v1433_v45 = vadd.f32 %v1405_v30, %v5117_v8  ;;  %v7625_v1 = vld [vmem:[#allocation25_spill] sm:$0xff] }
 0x1f2   : > { %v1434_v35 = vadd.f32 %v1406_v11, %v5119_v31  ;;  %v1435_v56 = vadd.f32 %v1407_v58, %v5127_v43  ;;  %v1436_v22 = vadd.f32 %v1408_v54, %v7624_v0  ;;  %v1437_v7 = vadd.f32 %v1409_v29, %v7625_v1 }
 0x1f3   : > { %v1439_v37 = vadd.f32 %v1411_v23, %v7627_v4  ;;  %v1440_v20 = vadd.f32 %v1412_v46, %v7628_v15  ;;  %v1441_v52 = vadd.f32 %v1413_v55, %v7629_v40  ;;  %v7630_v26 = vld [vmem:[#allocation36_spill] sm:$0xff]  ;;  %v1444_v31 = vadd.f32 %v1416_v59, %v1354_v25  ;;  %v7633_v23 = vld [vmem:[#allocation9_spill] sm:$0xff]  ;;  %v7634_v46 = vld [vmem:[#allocation10_spill] sm:$0xff] }
 0x1f4   : > { %v1442_v53 = vadd.f32 %v1414_v50, %v7630_v26  ;;  %v1445_v11 = vadd.f32 %v1417_v2, %v1355_v24  ;;  %v1446_v49 = vadd.f32 %v1418_v5, %v1356_v60  ;;  %v1447_v43 = vadd.f32 %v1419_v3, %v1357_v48  ;;  %v7635_v55 = vld [vmem:[#allocation11_spill] sm:$0xff]  ;;  %v7636_v50 = vld [vmem:[#allocation12_spill] sm:$0xff]  ;;  %v7640_v24 = vld [vmem:[#allocation21_spill] sm:$0xff] }
 0x1f5   : > { %v7631_v8 = vld [vmem:[#allocation38_spill] sm:$0xff]  ;;  %v1448_v58 = vadd.f32 %v1420_v6, %v1358_v47  ;;  %v1449_v54 = vadd.f32 %v1421_v32, %v1359_v16  ;;  %v1450_v0 = vadd.f32 %v1422_v9, %v1360_v41  ;;  %v1451_v29 = vadd.f32 %v1423_v17, %v1361_v63  ;;  %v7638_v9 = vld [vmem:[#allocation19_spill] sm:$0xff]  ;;  %v7639_v60 = vld [vmem:[#allocation20_spill] sm:$0xff] }
 0x1f6   : > { %v1443_v30 = vadd.f32 %v1415_v13, %v7631_v8  ;;  %v1452_v1 = vadd.f32 %v1424_v62, %v1362_v38  ;;  %v1487_v28 = vmul.f32 %v4365_v14, %v7632_v34  ;;  %v1488_v4 = vmul.f32 %v4365_v14, %v7633_v23  ;;  %v7637_v47 = vld [vmem:[#allocation18_spill] sm:$0xff]  ;;  %v7644_v5 = vld [vmem:[#allocation23_spill] sm:$0xff]  ;;  %v7646_v23 = vld [vmem:[#allocation29_spill] sm:$0xff] }
 0x1f7   : > { %v1489_v15 = vmul.f32 %v4365_v14, %v7634_v46  ;;  %v1490_v40 = vmul.f32 %v4365_v14, %v7635_v55  ;;  %v1491_v26 = vmul.f32 %v4365_v14, %v7636_v50  ;;  %v1492_v25 = vmul.f32 %v4365_v14, %v5027_v39  ;;  %v5305_v63 = vld [vmem:[#allocation2 + $0x206] sm:$0xff]  ;;  %v5307_v38 = vld [vmem:[#allocation2 + $0x20e] sm:$0xff] }
 0x1f8   : > { %v1493_v2 = vmul.f32 %v4365_v14, %v5036_v51  ;;  %v1494_v6 = vmul.f32 %v4365_v14, %v5046_v57  ;;  %v1495_v41 = vmul.f32 %v4365_v14, %v5056_v33  ;;  %v1496_v32 = vmul.f32 %v4365_v14, %v5058_v61  ;;  %7641 = vst [vmem:[#allocation24_spill] sm:$0xff] %v5305_v63  ;;  %v7643_v13 = vld [vmem:[#allocation22_spill] sm:$0xff]  ;;  %v7645_v8 = vld [vmem:[#allocation27_spill] sm:$0xff]  ;;  %v7648_v57 = vld [vmem:[#allocation32_spill] sm:$0xff] }
 0x1f9   : > { %v1497_v48 = vmul.f32 %v4365_v14, %v7637_v47  ;;  %v1498_v17 = vmul.f32 %v4365_v14, %v7638_v9  ;;  %v1499_v62 = vmul.f32 %v4365_v14, %v7639_v60  ;;  %v1500_v16 = vmul.f32 %v4365_v14, %v7640_v24  ;;  %7642 = vst [vmem:[#allocation25_spill] sm:$0xff] %v5307_v38  ;;  %v7647_v33 = vld [vmem:[#allocation31_spill] sm:$0xff]  ;;  %v7649_v51 = vld [vmem:[#allocation34_spill] sm:$0xff]  ;;  %v7651_v50 = vld [vmem:[#allocation37_spill] sm:$0xff] }
 0x1fa   : > { %v1501_v59 = vmul.f32 %v4365_v14, %v7643_v13  ;;  %v1502_v3 = vmul.f32 %v4365_v14, %v7644_v5  ;;  %v1503_v34 = vmul.f32 %v4365_v14, %v7645_v8  ;;  %v1504_v61 = vmul.f32 %v4365_v14, %v7646_v23  ;;  %v7650_v39 = vld [vmem:[#allocation35_spill] sm:$0xff]  ;;  %v7653_v13 = vld [vmem:[#allocation40_spill] sm:$0xff]  ;;  %v7654_v5 = vld [vmem:[#allocation41_spill] sm:$0xff] }
 0x1fb   : > { %v1505_v47 = vmul.f32 %v4365_v14, %v7647_v33  ;;  %v1506_v9 = vmul.f32 %v4365_v14, %v7648_v57  ;;  %v1507_v60 = vmul.f32 %v4365_v14, %v7649_v51  ;;  %v1508_v24 = vmul.f32 %v4365_v14, %v7650_v39  ;;  %v7652_v46 = vld [vmem:[#allocation39_spill] sm:$0xff] }
 0x1fc   : > { %v1509_v55 = vmul.f32 %v4365_v14, %v7651_v50  ;;  %v1510_v38 = vmul.f32 %v4365_v14, %v7652_v46  ;;  %v1511_v63 = vmul.f32 %v4365_v14, %v7653_v13  ;;  %v1512_v8 = vmul.f32 %v4365_v14, %v7654_v5 }
 0x1fd   : > { %v1515_v39 = vadd.f32 %v1487_v28, %v1425_v42  ;;  %v1516_v50 = vadd.f32 %v1488_v4, %v1426_v10  ;;  %v1517_v46 = vadd.f32 %v1489_v15, %v1427_v18  ;;  %v1518_v13 = vadd.f32 %v1490_v40, %v1428_v19  ;;  %v4366_v4 = vld [vmem:[%s4576_s12 + $0x14] ss:$0 sm:$0xff] }
 0x1fe   : > { %v1519_v5 = vadd.f32 %v1491_v26, %v1429_v27  ;;  %v1523_v28 = vadd.f32 %v1495_v41, %v1433_v45  ;;  %v1524_v42 = vadd.f32 %v1496_v32, %v1434_v35  ;;  %v1525_v10 = vadd.f32 %v1497_v48, %v1435_v56  ;;  %v7672_v32 = vld [vmem:[#allocation20_spill] sm:$0xff]  ;;  %v7673_v48 = vld [vmem:[#allocation21_spill] sm:$0xff] }
 0x1ff   : > { %v7655_v23 = vld [vmem:[#allocation24_spill] sm:$0xff]  ;;  %v1526_v15 = vadd.f32 %v1498_v17, %v1436_v22  ;;  %v1527_v18 = vadd.f32 %v1499_v62, %v1437_v7  ;;  %v1528_v19 = vadd.f32 %v1500_v16, %v1438_v36  ;;  %v1529_v40 = vadd.f32 %v1501_v59, %v1439_v37  ;;  %v7663_v37 = vld [vmem:[#allocation11_spill] sm:$0xff]  ;;  %v7674_v17 = vld [vmem:[#allocation22_spill] sm:$0xff] }
 0x200   : > { %v1513_v33 = vmul.f32 %v4365_v14, %v7655_v23  ;;  %v7656_v57 = vld [vmem:[#allocation25_spill] sm:$0xff]  ;;  %v1520_v23 = vadd.f32 %v1492_v25, %v1430_v21  ;;  %v1530_v26 = vadd.f32 %v1502_v3, %v1440_v20  ;;  %v1531_v27 = vadd.f32 %v1503_v34, %v1441_v52  ;;  %v7664_v52 = vld [vmem:[#allocation12_spill] sm:$0xff]  ;;  %v7675_v62 = vld [vmem:[#allocation23_spill] sm:$0xff] }
 0x201   : > { %v1514_v51 = vmul.f32 %v4365_v14, %v7656_v57  ;;  %v1521_v14 = vadd.f32 %v1493_v2, %v1431_v12  ;;  %v1522_v57 = vadd.f32 %v1494_v6, %v1432_v44  ;;  %v1532_v21 = vadd.f32 %v1504_v61, %v1442_v53  ;;  %v7662_v61 = vld [vmem:[#allocation10_spill] sm:$0xff]  ;;  %v7677_v3 = vld [vmem:[#allocation29_spill] sm:$0xff]  ;;  %v7678_v34 = vld [vmem:[#allocation31_spill] sm:$0xff] }
 0x202   : > { %v5324_v25 = vadd.f32 %v1505_v47, %v1443_v30  ;;  %v5326_v2 = vadd.f32 %v1506_v9, %v1444_v31  ;;  %v5328_v12 = vadd.f32 %v1507_v60, %v1445_v11  ;;  %v5330_v6 = vadd.f32 %v1508_v24, %v1446_v49  ;;  %v7665_v49 = vld [vmem:[#allocation13_spill] sm:$0xff]  ;;  %v7666_v31 = vld [vmem:[#allocation14_spill] sm:$0xff] }
 0x203   : > { %v5332_v44 = vadd.f32 %v1509_v55, %v1447_v43  ;;  %v5334_v35 = vadd.f32 %v1510_v38, %v1448_v58  ;;  %v5336_v45 = vadd.f32 %v1511_v63, %v1449_v54  ;;  %v5338_v56 = vadd.f32 %v1512_v8, %v1450_v0  ;;  %v7667_v43 = vld [vmem:[#allocation15_spill] sm:$0xff]  ;;  %v7668_v54 = vld [vmem:[#allocation16_spill] sm:$0xff]  ;;  %v7669_v0 = vld [vmem:[#allocation17_spill] sm:$0xff] }
 0x204   : > { %v5340_v22 = vadd.f32 %v1513_v33, %v1451_v29  ;;  %v5342_v7 = vadd.f32 %v1514_v51, %v1452_v1  ;;  %v1577_v36 = vmul.f32 %v4366_v4, %v7662_v61  ;;  %v1578_v20 = vmul.f32 %v4366_v4, %v7663_v37  ;;  %v7670_v33 = vld [vmem:[#allocation18_spill] sm:$0xff]  ;;  %v7671_v51 = vld [vmem:[#allocation19_spill] sm:$0xff]  ;;  %v7679_v37 = vld [vmem:[#allocation32_spill] sm:$0xff] }
 0x205   : > { %7657 = vst [vmem:[#allocation26_spill] sm:$0xff] %v5334_v35  ;;  %v1579_v53 = vmul.f32 %v4366_v4, %v7664_v52  ;;  %v1580_v30 = vmul.f32 %v4366_v4, %v7665_v49  ;;  %v1581_v11 = vmul.f32 %v4366_v4, %v7666_v31  ;;  %v1582_v58 = vmul.f32 %v4366_v4, %v7667_v43  ;;  %v1147_v16 = vld [vmem:[#allocation2 + $0x226] sm:$0xff]  ;;  %v1148_v63 = vld [vmem:[#allocation2 + $0x22e] sm:$0xff] }
 0x206   : > { %7658 = vst [vmem:[#allocation28_spill] sm:$0xff] %v5336_v45  ;;  %v1583_v55 = vmul.f32 %v4366_v4, %v7668_v54  ;;  %v1584_v41 = vmul.f32 %v4366_v4, %v7669_v0  ;;  %v1585_v29 = vmul.f32 %v4366_v4, %v7670_v33  ;;  %v1586_v1 = vmul.f32 %v4366_v4, %v7671_v51  ;;  %v7676_v38 = vld [vmem:[#allocation27_spill] sm:$0xff]  ;;  %v7680_v49 = vld [vmem:[#allocation34_spill] sm:$0xff]  ;;  %v7682_v0 = vld [vmem:[#allocation37_spill] sm:$0xff] }
 0x207   : > { %7659 = vst [vmem:[#allocation30_spill] sm:$0xff] %v5338_v56  ;;  %v1587_v47 = vmul.f32 %v4366_v4, %v7672_v32  ;;  %v1588_v9 = vmul.f32 %v4366_v4, %v7673_v48  ;;  %v1589_v60 = vmul.f32 %v4366_v4, %v7674_v17  ;;  %v1590_v24 = vmul.f32 %v4366_v4, %v7675_v62  ;;  %v7681_v43 = vld [vmem:[#allocation35_spill] sm:$0xff]  ;;  %v7684_v48 = vld [vmem:[#allocation40_spill] sm:$0xff]  ;;  %v7685_v62 = vld [vmem:[#allocation41_spill] sm:$0xff] }
 0x208   : > { %7660 = vst [vmem:[#allocation33_spill] sm:$0xff] %v5340_v22  ;;  %v1591_v59 = vmul.f32 %v4366_v4, %v7676_v38  ;;  %v1592_v8 = vmul.f32 %v4366_v4, %v7677_v3  ;;  %v1593_v61 = vmul.f32 %v4366_v4, %v7678_v34  ;;  %v1594_v52 = vmul.f32 %v4366_v4, %v7679_v37  ;;  %v7683_v51 = vld [vmem:[#allocation39_spill] sm:$0xff]  ;;  %v7686_v38 = vld [vmem:[#allocation24_spill] sm:$0xff]  ;;  %v7687_v3 = vld [vmem:[#allocation25_spill] sm:$0xff] }
 0x209   : > { %7661 = vst [vmem:[#allocation36_spill] sm:$0xff] %v5342_v7  ;;  %v1595_v31 = vmul.f32 %v4366_v4, %v7680_v49  ;;  %v1596_v54 = vmul.f32 %v4366_v4, %v7681_v43  ;;  %v1597_v33 = vmul.f32 %v4366_v4, %v7682_v0  ;;  %v1598_v32 = vmul.f32 %v4366_v4, %v7683_v51 }
 0x20a   : > { %v1599_v17 = vmul.f32 %v4366_v4, %v7684_v48  ;;  %v1600_v7 = vmul.f32 %v4366_v4, %v7685_v62  ;;  %v1601_v22 = vmul.f32 %v4366_v4, %v7686_v38  ;;  %v1602_v56 = vmul.f32 %v4366_v4, %v7687_v3  ;;  %v5489_v3 = vld [vmem:[#allocation2 + $0x167] sm:$0xff] }
 0x20b   : > { %v1603_v34 = vmul.f32 %v4366_v4, %v1147_v16  ;;  %v1604_v45 = vmul.f32 %v4366_v4, %v1148_v63  ;;  %v5370_v37 = vadd.f32 %v1577_v36, %v1515_v39  ;;  %v5372_v49 = vadd.f32 %v1578_v20, %v1516_v50  ;;  %v5391_v39 = vld [vmem:[%s4576_s12 + $0x1] ss:$0 sm:$0xff]  ;;  %v1633_v4 = vld [vmem:[#allocation2 + $0x7] sm:$0xff]  ;;  %v1634_v36 = vld [vmem:[#allocation2 + $0xf] sm:$0xff]  ;;  %7716 = vst [vmem:[#allocation37_spill] sm:$0xff] %v5489_v3 }
 0x20c   : > { %v5374_v43 = vadd.f32 %v1579_v53, %v1517_v46  ;;  %v5376_v0 = vadd.f32 %v1580_v30, %v1518_v13  ;;  %v5378_v51 = vadd.f32 %v1581_v11, %v1519_v5  ;;  %v5380_v48 = vadd.f32 %v1582_v58, %v1520_v23  ;;  %v5401_v23 = vld [vmem:[#allocation2 + $0x47] sm:$0xff]  ;;  %v5431_v20 = vld [vmem:[#allocation2 + $0x4f] sm:$0xff] }
 0x20d   : > { %v5382_v35 = vadd.f32 %v1583_v55, %v1521_v14  ;;  %v5384_v62 = vadd.f32 %v1584_v41, %v1522_v57  ;;  %v5386_v38 = vadd.f32 %v1585_v29, %v1523_v28  ;;  %v5388_v16 = vadd.f32 %v1586_v1, %v1524_v42  ;;  %7688 = vst [vmem:[#allocation38_spill] sm:$0xff] %v5401_v23  ;;  %v5433_v53 = vld [vmem:[#allocation2 + $0xa7] sm:$0xff]  ;;  %v5449_v41 = vld [vmem:[#allocation2 + $0x6f] sm:$0xff] }
 0x20e   : > { %v5393_v50 = vadd.f32 %v1587_v47, %v1525_v10  ;;  %v5395_v46 = vadd.f32 %v1588_v9, %v1526_v15  ;;  %v5397_v13 = vadd.f32 %v1589_v60, %v1527_v18  ;;  %v5399_v5 = vadd.f32 %v1590_v24, %v1528_v19  ;;  %v5411_v10 = vld [vmem:[#allocation2 + $0x67] sm:$0xff]  ;;  %7693 = vst [vmem:[#allocation12_spill] sm:$0xff] %v5431_v20  ;;  %v5451_v29 = vld [vmem:[#allocation2 + $0x8f] sm:$0xff] }
 0x20f   : > { %v5403_v14 = vadd.f32 %v1591_v59, %v1529_v40  ;;  %v5405_v57 = vadd.f32 %v1592_v8, %v1530_v26  ;;  %v5407_v28 = vadd.f32 %v1593_v61, %v1531_v27  ;;  %v5409_v42 = vadd.f32 %v1594_v52, %v1532_v21  ;;  %7689 = vst [vmem:[#allocation8_spill] sm:$0xff] %v5411_v10  ;;  %v5413_v15 = vld [vmem:[#allocation2 + $0x87] sm:$0xff]  ;;  %v5429_v21 = vld [vmem:[#allocation2 + $0x2f] sm:$0xff] }
 0x210   : > { %7690 = vst [vmem:[#allocation9_spill] sm:$0xff] %v5413_v15  ;;  %v5416_v18 = vadd.f32 %v1595_v31, %v5324_v25  ;;  %v5419_v19 = vadd.f32 %v1596_v54, %v5326_v2  ;;  %v5422_v40 = vadd.f32 %v1597_v33, %v5328_v12  ;;  %v5425_v26 = vadd.f32 %v1598_v32, %v5330_v6  ;;  %v5427_v27 = vld [vmem:[#allocation2 + $0x27] sm:$0xff]  ;;  %v7697_v12 = vld [vmem:[#allocation28_spill] sm:$0xff]  ;;  %v5463_v24 = vld [vmem:[#allocation2 + $0xaf] sm:$0xff] }
 0x211   : > { %7691 = vst [vmem:[#allocation10_spill] sm:$0xff] %v5427_v27  ;;  %v5435_v30 = vld [vmem:[#allocation2 + $0xc7] sm:$0xff]  ;;  %v5438_v25 = vadd.f32 %v1599_v17, %v5332_v44  ;;  %v5444_v58 = vadd.f32 %v1601_v22, %v7697_v12  ;;  %v7706_v60 = vld [vmem:[#allocation36_spill] sm:$0xff]  ;;  %v5465_v22 = vld [vmem:[#allocation2 + $0xcf] sm:$0xff]  ;;  %v1738_v63 = vmul.f32 %v5391_v39, %v1633_v4  ;;  %v1739_v59 = vmul.f32 %v5391_v39, %v1634_v36 }
 0x212   : > { %7692 = vst [vmem:[#allocation11_spill] sm:$0xff] %v5429_v21  ;;  %v7696_v2 = vld [vmem:[#allocation26_spill] sm:$0xff]  ;;  %v7704_v9 = vld [vmem:[#allocation33_spill] sm:$0xff]  ;;  %v1741_v31 = vmul.f32 %v5391_v39, %v5429_v21  ;;  %v1742_v54 = vmul.f32 %v5391_v39, %v5401_v23  ;;  %v1743_v33 = vmul.f32 %v5391_v39, %v5431_v20  ;;  %v1745_v4 = vmul.f32 %v5391_v39, %v5449_v41 }
 0x213   : > { %7694 = vst [vmem:[#allocation13_spill] sm:$0xff] %v5433_v53  ;;  %v5441_v11 = vadd.f32 %v1600_v7, %v7696_v2  ;;  %v7698_v6 = vld [vmem:[#allocation30_spill] sm:$0xff]  ;;  %v5458_v44 = vadd.f32 %v1603_v34, %v7704_v9  ;;  %v5461_v7 = vadd.f32 %v1604_v45, %v7706_v60  ;;  %v1740_v45 = vmul.f32 %v5391_v39, %v5427_v27 }
 0x214   : > { %7695 = vst [vmem:[#allocation14_spill] sm:$0xff] %v5435_v30  ;;  %v5447_v55 = vadd.f32 %v1602_v56, %v7698_v6  ;;  %v5453_v1 = vld [vmem:[#allocation2 + $0xe7] sm:$0xff]  ;;  %v5471_v8 = vld [vmem:[#allocation2 + $0xef] sm:$0xff]  ;;  %v1744_v34 = vmul.f32 %v5391_v39, %v5411_v10  ;;  %v1746_v36 = vmul.f32 %v5391_v39, %v5413_v15  ;;  %v1747_v2 = vmul.f32 %v5391_v39, %v5451_v29 }
 0x215   : > { %7700 = vst [vmem:[#allocation16_spill] sm:$0xff] %v5449_v41  ;;  %v5455_v47 = vld [vmem:[#allocation2 + $0x107] sm:$0xff]  ;;  %v5473_v61 = vld [vmem:[#allocation2 + $0x10f] sm:$0xff]  ;;  %v1748_v60 = vmul.f32 %v5391_v39, %v5433_v53  ;;  %v1749_v10 = vmul.f32 %v5391_v39, %v5463_v24  ;;  %v1750_v41 = vmul.f32 %v5391_v39, %v5435_v30  ;;  %v1751_v15 = vmul.f32 %v5391_v39, %v5465_v22 }
 0x216   : > { %7699 = vst [vmem:[#allocation15_spill] sm:$0xff] %v5447_v55  ;;  %v5467_v56 = vld [vmem:[#allocation2 + $0x127] sm:$0xff]  ;;  %v5485_v32 = vld [vmem:[#allocation2 + $0x12f] sm:$0xff]  ;;  %v1752_v23 = vmul.f32 %v5391_v39, %v5453_v1  ;;  %v1753_v21 = vmul.f32 %v5391_v39, %v5471_v8  ;;  %v1754_v53 = vmul.f32 %v5391_v39, %v5455_v47  ;;  %v1774_v55 = vadd.f32 %v1746_v36, %v5386_v38 }
 0x217   : > { %7701 = vst [vmem:[#allocation17_spill] sm:$0xff] %v5451_v29  ;;  %v5475_v52 = vld [vmem:[#allocation2 + $0x147] sm:$0xff]  ;;  %v5487_v17 = vld [vmem:[#allocation2 + $0x14f] sm:$0xff]  ;;  %v1756_v30 = vmul.f32 %v5391_v39, %v5467_v56 }
 0x218   : > { %7702 = vst [vmem:[#allocation18_spill] sm:$0xff] %v5453_v1  ;;  %v5499_v12 = vld [vmem:[#allocation2 + $0x16f] sm:$0xff]  ;;  %v5501_v6 = vld [vmem:[#allocation2 + $0x187] sm:$0xff]  ;;  %v1758_v27 = vmul.f32 %v5391_v39, %v5475_v52  ;;  %v1759_v1 = vmul.f32 %v5391_v39, %v5487_v17 }
 0x219   : > { %7703 = vst [vmem:[#allocation19_spill] sm:$0xff] %v5455_v47  ;;  %v5503_v9 = vld [vmem:[#allocation2 + $0x18f] sm:$0xff]  ;;  %v5513_v20 = vld [vmem:[#allocation2 + $0x1a7] sm:$0xff]  ;;  %v1761_v47 = vmul.f32 %v5391_v39, %v5499_v12  ;;  %v1784_v38 = vadd.f32 %v1756_v30, %v5416_v18 }
 0x21a   : > { %7705 = vst [vmem:[#allocation20_spill] sm:$0xff] %v5458_v44  ;;  %v5515_v29 = vld [vmem:[#allocation2 + $0x1af] sm:$0xff]  ;;  %v1771_v44 = vadd.f32 %v1743_v33, %v5380_v48  ;;  %v1781_v48 = vadd.f32 %v1753_v21, %v5405_v57  ;;  %v5588_v36 = vld [vmem:[#allocation2 + $0x1c7] sm:$0xff] }
 0x21b   : > { %7707 = vst [vmem:[#allocation21_spill] sm:$0xff] %v5461_v7  ;;  %v1768_v7 = vadd.f32 %v1740_v45, %v5374_v43  ;;  %v1778_v43 = vadd.f32 %v1750_v41, %v5397_v13  ;;  %v7725_v21 = vld [vmem:[#allocation10_spill] sm:$0xff]  ;;  %v7729_v41 = vld [vmem:[#allocation8_spill] sm:$0xff] }
 0x21c   : > { %7708 = vst [vmem:[#allocation22_spill] sm:$0xff] %v5463_v24  ;;  %v1755_v24 = vmul.f32 %v5391_v39, %v5473_v61  ;;  %v7727_v30 = vld [vmem:[#allocation38_spill] sm:$0xff] }
 0x21d   : > { %7709 = vst [vmem:[#allocation23_spill] sm:$0xff] %v5465_v22  ;;  %v1757_v22 = vmul.f32 %v5391_v39, %v5485_v32 }
 0x21e   : > { %7710 = vst [vmem:[#allocation27_spill] sm:$0xff] %v5467_v56  ;;  %v1763_v56 = vmul.f32 %v5391_v39, %v5503_v9 }
 0x21f   : > { %7711 = vst [vmem:[#allocation29_spill] sm:$0xff] %v5471_v8  ;;  %v1760_v8 = vmul.f32 %v5391_v39, %v5489_v3  ;;  %v1767_v3 = vadd.f32 %v1739_v59, %v5372_v49  ;;  %v1777_v49 = vadd.f32 %v1749_v10, %v5395_v46  ;;  %v1787_v46 = vadd.f32 %v1759_v1, %v5425_v26  ;;  %v7730_v1 = vld [vmem:[#allocation16_spill] sm:$0xff]  ;;  %v7737_v33 = vld [vmem:[#allocation18_spill] sm:$0xff] }
 0x220   : > { %7712 = vst [vmem:[#allocation31_spill] sm:$0xff] %v5473_v61  ;;  %v1762_v61 = vmul.f32 %v5391_v39, %v5501_v6 }
 0x221   : > { %7713 = vst [vmem:[#allocation32_spill] sm:$0xff] %v5475_v52  ;;  %v1765_v52 = vmul.f32 %v5391_v39, %v5515_v29  ;;  %v1788_v13 = vadd.f32 %v1760_v8, %v5438_v25  ;;  %v7723_v10 = vld [vmem:[#allocation20_spill] sm:$0xff] }
 0x222   : > { %7714 = vst [vmem:[#allocation34_spill] sm:$0xff] %v5485_v32  ;;  %v1764_v32 = vmul.f32 %v5391_v39, %v5513_v20  ;;  %v1775_v39 = vadd.f32 %v1747_v2, %v5388_v16  ;;  %v1785_v16 = vadd.f32 %v1757_v22, %v5419_v19  ;;  %v5590_v2 = vld [vmem:[#allocation2 + $0x1cf] sm:$0xff] }
 0x223   : > { %7715 = vst [vmem:[#allocation35_spill] sm:$0xff] %v5487_v17  ;;  %v1766_v17 = vadd.f32 %v1738_v63, %v5370_v37  ;;  %v1776_v37 = vadd.f32 %v1748_v60, %v5393_v50  ;;  %v4368_v63 = vld [vmem:[%s4576_s12 + $0x6] ss:$0 sm:$0xff]  ;;  %v1786_v50 = vadd.f32 %v1758_v27, %v5422_v40  ;;  %v7734_v8 = vld [vmem:[#allocation22_spill] sm:$0xff]  ;;  %v7741_v60 = vld [vmem:[#allocation19_spill] sm:$0xff] }
 0x224   : > { %7717 = vst [vmem:[#allocation39_spill] sm:$0xff] %v5499_v12  ;;  %v1769_v12 = vadd.f32 %v1741_v31, %v5376_v0  ;;  %v1779_v0 = vadd.f32 %v1751_v15, %v5399_v5  ;;  %v1789_v5 = vadd.f32 %v1761_v47, %v5441_v11  ;;  %v7724_v15 = vld [vmem:[#allocation21_spill] sm:$0xff]  ;;  %v1827_v18 = vmul.f32 %v4368_v63, %v7725_v21  ;;  %v7728_v27 = vld [vmem:[#allocation12_spill] sm:$0xff]  ;;  %v7736_v31 = vld [vmem:[#allocation23_spill] sm:$0xff] }
 0x225   : > { %7718 = vst [vmem:[#allocation40_spill] sm:$0xff] %v5501_v6  ;;  %v1770_v6 = vadd.f32 %v1742_v54, %v5378_v51  ;;  %v1780_v51 = vadd.f32 %v1752_v23, %v5403_v14  ;;  %v1790_v23 = vadd.f32 %v1762_v61, %v5444_v58  ;;  %v7722_v14 = vld [vmem:[#allocation15_spill] sm:$0xff]  ;;  %v1829_v40 = vmul.f32 %v4368_v63, %v7727_v30  ;;  %v7731_v47 = vld [vmem:[#allocation9_spill] sm:$0xff] }
 0x226   : > { %7719 = vst [vmem:[#allocation41_spill] sm:$0xff] %v5503_v9  ;;  %v1772_v9 = vadd.f32 %v1744_v34, %v5382_v35  ;;  %v1782_v35 = vadd.f32 %v1754_v53, %v5407_v28  ;;  %v1791_v57 = vadd.f32 %v1763_v56, %v7722_v14  ;;  %v1792_v28 = vadd.f32 %v1764_v32, %v7723_v10  ;;  %v7726_v53 = vld [vmem:[#allocation11_spill] sm:$0xff]  ;;  %v7733_v56 = vld [vmem:[#allocation13_spill] sm:$0xff] }
 0x227   : > { %7720 = vst [vmem:[#allocation24_spill] sm:$0xff] %v5513_v20  ;;  %v1773_v20 = vadd.f32 %v1745_v4, %v5384_v62  ;;  %v1783_v62 = vadd.f32 %v1755_v24, %v5409_v42  ;;  %v1793_v42 = vadd.f32 %v1765_v52, %v7724_v15  ;;  %v1828_v19 = vmul.f32 %v4368_v63, %v7726_v53  ;;  %v7732_v24 = vld [vmem:[#allocation17_spill] sm:$0xff]  ;;  %v7735_v52 = vld [vmem:[#allocation14_spill] sm:$0xff]  ;;  %v7742_v10 = vld [vmem:[#allocation31_spill] sm:$0xff] }
 0x228   : > { %7721 = vst [vmem:[#allocation25_spill] sm:$0xff] %v5515_v29  ;;  %v1830_v26 = vmul.f32 %v4368_v63, %v7728_v27  ;;  %v1831_v25 = vmul.f32 %v4368_v63, %v7729_v41  ;;  %v1832_v11 = vmul.f32 %v4368_v63, %v7730_v1  ;;  %v1833_v58 = vmul.f32 %v4368_v63, %v7731_v47  ;;  %v7738_v34 = vld [vmem:[#allocation29_spill] sm:$0xff]  ;;  %v7743_v21 = vld [vmem:[#allocation27_spill] sm:$0xff] }
 0x229   : > { %v1834_v22 = vmul.f32 %v4368_v63, %v7732_v24  ;;  %v1835_v59 = vmul.f32 %v4368_v63, %v7733_v56  ;;  %v1836_v61 = vmul.f32 %v4368_v63, %v7734_v8  ;;  %v1837_v45 = vmul.f32 %v4368_v63, %v7735_v52  ;;  %7739 = vst [vmem:[#allocation26_spill] sm:$0xff] %v5588_v36  ;;  %v7744_v56 = vld [vmem:[#allocation34_spill] sm:$0xff]  ;;  %v7745_v24 = vld [vmem:[#allocation32_spill] sm:$0xff]  ;;  %v7747_v1 = vld [vmem:[#allocation37_spill] sm:$0xff] }
 0x22a   : > { %v1838_v54 = vmul.f32 %v4368_v63, %v7736_v31  ;;  %v1839_v32 = vmul.f32 %v4368_v63, %v7737_v33  ;;  %v1840_v4 = vmul.f32 %v4368_v63, %v7738_v34  ;;  %7740 = vst [vmem:[#allocation28_spill] sm:$0xff] %v5590_v2  ;;  %v1841_v14 = vmul.f32 %v4368_v63, %v7741_v60  ;;  %v7746_v47 = vld [vmem:[#allocation35_spill] sm:$0xff] }
 0x22b   : > { %v1842_v15 = vmul.f32 %v4368_v63, %v7742_v10  ;;  %v1843_v53 = vmul.f32 %v4368_v63, %v7743_v21  ;;  %v1844_v8 = vmul.f32 %v4368_v63, %v7744_v56  ;;  %v1845_v52 = vmul.f32 %v4368_v63, %v7745_v24  ;;  %v7748_v41 = vld [vmem:[#allocation39_spill] sm:$0xff] }
 0x22c   : > { %v1846_v31 = vmul.f32 %v4368_v63, %v7746_v47  ;;  %v1847_v33 = vmul.f32 %v4368_v63, %v7747_v1  ;;  %v1848_v34 = vmul.f32 %v4368_v63, %v7748_v41  ;;  %v7749_v27 = vld [vmem:[#allocation40_spill] sm:$0xff]  ;;  %v1855_v41 = vadd.f32 %v1827_v18, %v1766_v17 }
 0x22d   : > { %v1849_v30 = vmul.f32 %v4368_v63, %v7749_v27  ;;  %v7750_v36 = vld [vmem:[#allocation41_spill] sm:$0xff]  ;;  %v1856_v27 = vadd.f32 %v1828_v19, %v1767_v3  ;;  %v1863_v17 = vadd.f32 %v1835_v59, %v1774_v55  ;;  %v1864_v18 = vadd.f32 %v1836_v61, %v1775_v39 }
 0x22e   : > { %v1850_v2 = vmul.f32 %v4368_v63, %v7750_v36  ;;  %v7751_v60 = vld [vmem:[#allocation24_spill] sm:$0xff]  ;;  %v1857_v36 = vadd.f32 %v1829_v40, %v1768_v7  ;;  %v4369_v3 = vld [vmem:[%s4576_s12 + $0xb] ss:$0 sm:$0xff]  ;;  %v1865_v19 = vadd.f32 %v1837_v45, %v1776_v37  ;;  %v1866_v7 = vadd.f32 %v1838_v54, %v1777_v49 }
 0x22f   : > { %v1851_v29 = vmul.f32 %v4368_v63, %v7751_v60  ;;  %v7752_v10 = vld [vmem:[#allocation25_spill] sm:$0xff]  ;;  %v1858_v60 = vadd.f32 %v1830_v26, %v1769_v12  ;;  %v1867_v40 = vadd.f32 %v1839_v32, %v1778_v43  ;;  %v1868_v12 = vadd.f32 %v1840_v4, %v1779_v0  ;;  %v7755_v45 = vld [vmem:[#allocation38_spill] sm:$0xff]  ;;  %v7756_v54 = vld [vmem:[#allocation12_spill] sm:$0xff] }
 0x230   : > { %v1852_v21 = vmul.f32 %v4368_v63, %v7752_v10  ;;  %v7753_v56 = vld [vmem:[#allocation26_spill] sm:$0xff]  ;;  %v1859_v10 = vadd.f32 %v1831_v25, %v1770_v6  ;;  %v1869_v26 = vadd.f32 %v1841_v14, %v1780_v51  ;;  %v1870_v6 = vadd.f32 %v1842_v15, %v1781_v48  ;;  %v7757_v43 = vld [vmem:[#allocation8_spill] sm:$0xff] }
 0x231   : > { %v1853_v24 = vmul.f32 %v4368_v63, %v7753_v56  ;;  %v7754_v47 = vld [vmem:[#allocation28_spill] sm:$0xff]  ;;  %v1860_v56 = vadd.f32 %v1832_v11, %v1771_v44  ;;  %v1871_v25 = vadd.f32 %v1843_v53, %v1782_v35  ;;  %v1872_v11 = vadd.f32 %v1844_v8, %v1783_v62  ;;  %v7759_v35 = vld [vmem:[#allocation9_spill] sm:$0xff]  ;;  %v7767_v8 = vld [vmem:[#allocation19_spill] sm:$0xff] }
 0x232   : > { %v1854_v1 = vmul.f32 %v4368_v63, %v7754_v47  ;;  %v1861_v47 = vadd.f32 %v1833_v58, %v1772_v9  ;;  %v1862_v63 = vadd.f32 %v1834_v22, %v1773_v20  ;;  %v1873_v44 = vadd.f32 %v1845_v52, %v1784_v38  ;;  %v7758_v51 = vld [vmem:[#allocation16_spill] sm:$0xff]  ;;  %v7760_v38 = vld [vmem:[#allocation17_spill] sm:$0xff]  ;;  %v5623_v4 = vld [vmem:[#allocation2 + $0x1ef] sm:$0xff] }
 0x233   : > { %v1874_v9 = vadd.f32 %v1846_v31, %v1785_v16  ;;  %v1875_v58 = vadd.f32 %v1847_v33, %v1786_v50  ;;  %v1876_v20 = vadd.f32 %v1848_v34, %v1787_v46  ;;  %v1877_v22 = vadd.f32 %v1849_v30, %v1788_v13  ;;  %v7761_v50 = vld [vmem:[#allocation13_spill] sm:$0xff]  ;;  %v7762_v13 = vld [vmem:[#allocation22_spill] sm:$0xff]  ;;  %v7768_v31 = vld [vmem:[#allocation31_spill] sm:$0xff]  ;;  %7770 = vst [vmem:[#allocation33_spill] sm:$0xff] %v5623_v4 }
 0x234   : > { %v1878_v55 = vadd.f32 %v1850_v2, %v1789_v5  ;;  %v1879_v59 = vadd.f32 %v1851_v29, %v1790_v23  ;;  %v1880_v39 = vadd.f32 %v1852_v21, %v1791_v57  ;;  %v1881_v61 = vadd.f32 %v1853_v24, %v1792_v28  ;;  %v7763_v29 = vld [vmem:[#allocation14_spill] sm:$0xff]  ;;  %v7764_v57 = vld [vmem:[#allocation23_spill] sm:$0xff]  ;;  %v7773_v53 = vld [vmem:[#allocation32_spill] sm:$0xff] }
 0x235   : > { %v1882_v37 = vadd.f32 %v1854_v1, %v1793_v42  ;;  %v1916_v49 = vmul.f32 %v4369_v3, %v7755_v45  ;;  %v1917_v32 = vmul.f32 %v4369_v3, %v7756_v54  ;;  %v1918_v0 = vmul.f32 %v4369_v3, %v7757_v43  ;;  %v7765_v42 = vld [vmem:[#allocation18_spill] sm:$0xff]  ;;  %v7766_v1 = vld [vmem:[#allocation29_spill] sm:$0xff]  ;;  %v7771_v2 = vld [vmem:[#allocation27_spill] sm:$0xff] }
 0x236   : > { %v1919_v48 = vmul.f32 %v4369_v3, %v7758_v51  ;;  %v1920_v62 = vmul.f32 %v4369_v3, %v7759_v35  ;;  %v1921_v16 = vmul.f32 %v4369_v3, %v7760_v38  ;;  %v1922_v46 = vmul.f32 %v4369_v3, %v7761_v50  ;;  %v5621_v34 = vld [vmem:[#allocation2 + $0x1e7] sm:$0xff]  ;;  %v7774_v54 = vld [vmem:[#allocation35_spill] sm:$0xff]  ;;  %v7777_v50 = vld [vmem:[#allocation40_spill] sm:$0xff] }
 0x237   : > { %v1923_v5 = vmul.f32 %v4369_v3, %v7762_v13  ;;  %v1924_v23 = vmul.f32 %v4369_v3, %v7763_v29  ;;  %v1925_v28 = vmul.f32 %v4369_v3, %v7764_v57  ;;  %v1926_v30 = vmul.f32 %v4369_v3, %v7765_v42  ;;  %7769 = vst [vmem:[#allocation30_spill] sm:$0xff] %v5621_v34  ;;  %v7772_v15 = vld [vmem:[#allocation34_spill] sm:$0xff]  ;;  %v7775_v29 = vld [vmem:[#allocation37_spill] sm:$0xff]  ;;  %v7776_v13 = vld [vmem:[#allocation39_spill] sm:$0xff] }
 0x238   : > { %v1927_v24 = vmul.f32 %v4369_v3, %v7766_v1  ;;  %v1928_v52 = vmul.f32 %v4369_v3, %v7767_v8  ;;  %v1929_v33 = vmul.f32 %v4369_v3, %v7768_v31  ;;  %v1930_v14 = vmul.f32 %v4369_v3, %v7771_v2  ;;  %v7778_v38 = vld [vmem:[#allocation41_spill] sm:$0xff]  ;;  %v7779_v35 = vld [vmem:[#allocation24_spill] sm:$0xff]  ;;  %v7781_v2 = vld [vmem:[#allocation26_spill] sm:$0xff] }
 0x239   : > { %v1931_v21 = vmul.f32 %v4369_v3, %v7772_v15  ;;  %v1932_v45 = vmul.f32 %v4369_v3, %v7773_v53  ;;  %v1933_v57 = vmul.f32 %v4369_v3, %v7774_v54  ;;  %v1934_v42 = vmul.f32 %v4369_v3, %v7775_v29  ;;  %v7780_v43 = vld [vmem:[#allocation25_spill] sm:$0xff]  ;;  %v7782_v15 = vld [vmem:[#allocation28_spill] sm:$0xff] }
 0x23a   : > { %v1935_v1 = vmul.f32 %v4369_v3, %v7776_v13  ;;  %v1936_v8 = vmul.f32 %v4369_v3, %v7777_v50  ;;  %v1937_v31 = vmul.f32 %v4369_v3, %v7778_v38  ;;  %v1938_v51 = vmul.f32 %v4369_v3, %v7779_v35  ;;  %v7784_v13 = vld [vmem:[#allocation33_spill] sm:$0xff] }
 0x23b   : > { %v1939_v4 = vmul.f32 %v4369_v3, %v7780_v43  ;;  %v1940_v34 = vmul.f32 %v4369_v3, %v7781_v2  ;;  %v1941_v53 = vmul.f32 %v4369_v3, %v7782_v15  ;;  %v1943_v50 = vmul.f32 %v4369_v3, %v7784_v13 }
 0x23c   : > { %v1944_v38 = vadd.f32 %v1916_v49, %v1855_v41  ;;  %v1945_v35 = vadd.f32 %v1917_v32, %v1856_v27  ;;  %v1946_v43 = vadd.f32 %v1918_v0, %v1857_v36  ;;  %v1947_v2 = vadd.f32 %v1919_v48, %v1858_v60  ;;  %v4370_v27 = vld [vmem:[%s4576_s12 + $0x10] ss:$0 sm:$0xff] }
 0x23d   : > { %v1948_v15 = vadd.f32 %v1920_v62, %v1859_v10  ;;  %v1951_v13 = vadd.f32 %v1923_v5, %v1862_v63  ;;  %v1952_v41 = vadd.f32 %v1924_v23, %v1863_v17  ;;  %v1953_v49 = vadd.f32 %v1925_v28, %v1864_v18 }
 0x23e   : > { %v7783_v54 = vld [vmem:[#allocation30_spill] sm:$0xff]  ;;  %v1954_v32 = vadd.f32 %v1926_v30, %v1865_v19  ;;  %v1955_v0 = vadd.f32 %v1927_v24, %v1866_v7  ;;  %v1956_v36 = vadd.f32 %v1928_v52, %v1867_v40  ;;  %v1957_v48 = vadd.f32 %v1929_v33, %v1868_v12  ;;  %v7785_v30 = vld [vmem:[#allocation8_spill] sm:$0xff]  ;;  %v7787_v52 = vld [vmem:[#allocation9_spill] sm:$0xff] }
 0x23f   : > { %v1942_v29 = vmul.f32 %v4369_v3, %v7783_v54  ;;  %v1949_v54 = vadd.f32 %v1921_v16, %v1860_v56  ;;  %v1950_v3 = vadd.f32 %v1922_v46, %v1861_v47  ;;  %v1958_v60 = vadd.f32 %v1930_v14, %v1869_v26  ;;  %v7786_v24 = vld [vmem:[#allocation16_spill] sm:$0xff]  ;;  %v7788_v26 = vld [vmem:[#allocation17_spill] sm:$0xff] }
 0x240   : > { %v1959_v10 = vadd.f32 %v1931_v21, %v1870_v6  ;;  %v1960_v62 = vadd.f32 %v1932_v45, %v1871_v25  ;;  %v1961_v16 = vadd.f32 %v1933_v57, %v1872_v11  ;;  %v1962_v56 = vadd.f32 %v1934_v42, %v1873_v44  ;;  %v7789_v25 = vld [vmem:[#allocation13_spill] sm:$0xff]  ;;  %v7790_v44 = vld [vmem:[#allocation22_spill] sm:$0xff]  ;;  %v7797_v42 = vld [vmem:[#allocation27_spill] sm:$0xff] }
 0x241   : > { %v1963_v46 = vadd.f32 %v1935_v1, %v1874_v9  ;;  %v1964_v47 = vadd.f32 %v1936_v8, %v1875_v58  ;;  %v1965_v5 = vadd.f32 %v1937_v31, %v1876_v20  ;;  %v1966_v63 = vadd.f32 %v1938_v51, %v1877_v22  ;;  %v7791_v58 = vld [vmem:[#allocation14_spill] sm:$0xff]  ;;  %v7792_v22 = vld [vmem:[#allocation23_spill] sm:$0xff]  ;;  %v7803_v45 = vld [vmem:[#allocation37_spill] sm:$0xff] }
 0x242   : > { %v1967_v17 = vadd.f32 %v1939_v4, %v1878_v55  ;;  %v1968_v23 = vadd.f32 %v1940_v34, %v1879_v59  ;;  %v1969_v18 = vadd.f32 %v1941_v53, %v1880_v39  ;;  %v1970_v28 = vadd.f32 %v1942_v29, %v1881_v61  ;;  %v7793_v59 = vld [vmem:[#allocation18_spill] sm:$0xff]  ;;  %v7794_v61 = vld [vmem:[#allocation29_spill] sm:$0xff]  ;;  %v7795_v51 = vld [vmem:[#allocation19_spill] sm:$0xff] }
 0x243   : > { %v1971_v19 = vadd.f32 %v1943_v50, %v1882_v37  ;;  %v2005_v7 = vmul.f32 %v4370_v27, %v7785_v30  ;;  %v2006_v40 = vmul.f32 %v4370_v27, %v7786_v24  ;;  %v2007_v12 = vmul.f32 %v4370_v27, %v7787_v52  ;;  %v7796_v29 = vld [vmem:[#allocation31_spill] sm:$0xff]  ;;  %v7798_v8 = vld [vmem:[#allocation34_spill] sm:$0xff]  ;;  %v7801_v4 = vld [vmem:[#allocation32_spill] sm:$0xff] }
 0x244   : > { %v2008_v6 = vmul.f32 %v4370_v27, %v7788_v26  ;;  %v2009_v11 = vmul.f32 %v4370_v27, %v7789_v25  ;;  %v2010_v9 = vmul.f32 %v4370_v27, %v7790_v44  ;;  %v2011_v20 = vmul.f32 %v4370_v27, %v7791_v58  ;;  %v5654_v33 = vld [vmem:[#allocation2 + $0x207] sm:$0xff]  ;;  %v5656_v34 = vld [vmem:[#allocation2 + $0x20f] sm:$0xff]  ;;  %v7807_v58 = vld [vmem:[#allocation24_spill] sm:$0xff] }
 0x245   : > { %v2012_v55 = vmul.f32 %v4370_v27, %v7792_v22  ;;  %v2013_v39 = vmul.f32 %v4370_v27, %v7793_v59  ;;  %v2014_v37 = vmul.f32 %v4370_v27, %v7794_v61  ;;  %v2015_v50 = vmul.f32 %v4370_v27, %v7795_v51  ;;  %7799 = vst [vmem:[#allocation36_spill] sm:$0xff] %v5654_v33  ;;  %v7802_v21 = vld [vmem:[#allocation35_spill] sm:$0xff]  ;;  %v7805_v59 = vld [vmem:[#allocation40_spill] sm:$0xff]  ;;  %v7806_v22 = vld [vmem:[#allocation41_spill] sm:$0xff] }
 0x246   : > { %v2016_v57 = vmul.f32 %v4370_v27, %v7796_v29  ;;  %v2017_v1 = vmul.f32 %v4370_v27, %v7797_v42  ;;  %v2018_v31 = vmul.f32 %v4370_v27, %v7798_v8  ;;  %7800 = vst [vmem:[#allocation15_spill] sm:$0xff] %v5656_v34  ;;  %v2019_v14 = vmul.f32 %v4370_v27, %v7801_v4  ;;  %v7804_v24 = vld [vmem:[#allocation39_spill] sm:$0xff]  ;;  %v7808_v44 = vld [vmem:[#allocation25_spill] sm:$0xff]  ;;  %v7809_v25 = vld [vmem:[#allocation26_spill] sm:$0xff] }
 0x247   : > { %v2020_v53 = vmul.f32 %v4370_v27, %v7802_v21  ;;  %v2021_v30 = vmul.f32 %v4370_v27, %v7803_v45  ;;  %v2022_v61 = vmul.f32 %v4370_v27, %v7804_v24  ;;  %v2023_v51 = vmul.f32 %v4370_v27, %v7805_v59  ;;  %v7810_v52 = vld [vmem:[#allocation28_spill] sm:$0xff]  ;;  %v7811_v4 = vld [vmem:[#allocation30_spill] sm:$0xff]  ;;  %v7812_v21 = vld [vmem:[#allocation33_spill] sm:$0xff] }
 0x248   : > { %v2024_v29 = vmul.f32 %v4370_v27, %v7806_v22  ;;  %v2025_v42 = vmul.f32 %v4370_v27, %v7807_v58  ;;  %v2026_v8 = vmul.f32 %v4370_v27, %v7808_v44  ;;  %v2027_v26 = vmul.f32 %v4370_v27, %v7809_v25 }
 0x249   : > { %v2028_v34 = vmul.f32 %v4370_v27, %v7810_v52  ;;  %v2029_v33 = vmul.f32 %v4370_v27, %v7811_v4  ;;  %v2030_v45 = vmul.f32 %v4370_v27, %v7812_v21  ;;  %v2033_v44 = vadd.f32 %v2005_v7, %v1944_v38 }
 0x24a   : > { %v2034_v25 = vadd.f32 %v2006_v40, %v1945_v35  ;;  %v2035_v52 = vadd.f32 %v2007_v12, %v1946_v43  ;;  %v2036_v4 = vadd.f32 %v2008_v6, %v1947_v2  ;;  %v2037_v21 = vadd.f32 %v2009_v11, %v1948_v15  ;;  %v4371_v35 = vld [vmem:[%s4576_s12 + $0x15] ss:$0 sm:$0xff] }
 0x24b   : > { %v2041_v7 = vadd.f32 %v2013_v39, %v1952_v41  ;;  %v2042_v38 = vadd.f32 %v2014_v37, %v1953_v49  ;;  %v2043_v40 = vadd.f32 %v2015_v50, %v1954_v32  ;;  %v2044_v12 = vadd.f32 %v2016_v57, %v1955_v0  ;;  %v7830_v37 = vld [vmem:[#allocation27_spill] sm:$0xff]  ;;  %v7831_v50 = vld [vmem:[#allocation34_spill] sm:$0xff]  ;;  %v7832_v57 = vld [vmem:[#allocation32_spill] sm:$0xff] }
 0x24c   : > { %v7813_v24 = vld [vmem:[#allocation36_spill] sm:$0xff]  ;;  %v2045_v43 = vadd.f32 %v2017_v1, %v1956_v36  ;;  %v2046_v2 = vadd.f32 %v2018_v31, %v1957_v48  ;;  %v2047_v6 = vadd.f32 %v2019_v14, %v1958_v60  ;;  %v2048_v11 = vadd.f32 %v2020_v53, %v1959_v10  ;;  %v7820_v48 = vld [vmem:[#allocation9_spill] sm:$0xff]  ;;  %v7833_v1 = vld [vmem:[#allocation35_spill] sm:$0xff] }
 0x24d   : > { %v2031_v59 = vmul.f32 %v4370_v27, %v7813_v24  ;;  %v7814_v22 = vld [vmem:[#allocation15_spill] sm:$0xff]  ;;  %v2038_v24 = vadd.f32 %v2010_v9, %v1949_v54  ;;  %v2049_v15 = vadd.f32 %v2021_v30, %v1960_v62  ;;  %v2050_v9 = vadd.f32 %v2022_v61, %v1961_v16  ;;  %v7821_v10 = vld [vmem:[#allocation17_spill] sm:$0xff]  ;;  %v7836_v30 = vld [vmem:[#allocation40_spill] sm:$0xff] }
 0x24e   : > { %v2032_v58 = vmul.f32 %v4370_v27, %v7814_v22  ;;  %v2039_v22 = vadd.f32 %v2011_v20, %v1950_v3  ;;  %v2040_v27 = vadd.f32 %v2012_v55, %v1951_v13  ;;  %v5673_v54 = vadd.f32 %v2023_v51, %v1962_v56  ;;  %v7822_v16 = vld [vmem:[#allocation13_spill] sm:$0xff]  ;;  %v7835_v53 = vld [vmem:[#allocation39_spill] sm:$0xff] }
 0x24f   : > { %v5675_v3 = vadd.f32 %v2024_v29, %v1963_v46  ;;  %v5677_v20 = vadd.f32 %v2025_v42, %v1964_v47  ;;  %v5679_v13 = vadd.f32 %v2026_v8, %v1965_v5  ;;  %v5681_v55 = vadd.f32 %v2027_v26, %v1966_v63  ;;  %v7823_v46 = vld [vmem:[#allocation22_spill] sm:$0xff] }
 0x250   : > { %v5683_v41 = vadd.f32 %v2028_v34, %v1967_v17  ;;  %v5685_v49 = vadd.f32 %v2029_v33, %v1968_v23  ;;  %v5687_v32 = vadd.f32 %v2030_v45, %v1969_v18  ;;  %v5689_v0 = vadd.f32 %v2031_v59, %v1970_v28  ;;  %v7824_v5 = vld [vmem:[#allocation14_spill] sm:$0xff]  ;;  %v7825_v17 = vld [vmem:[#allocation23_spill] sm:$0xff]  ;;  %v7827_v18 = vld [vmem:[#allocation29_spill] sm:$0xff] }
 0x251   : > { %v5691_v36 = vadd.f32 %v2032_v58, %v1971_v19  ;;  %v2094_v60 = vmul.f32 %v4371_v35, %v7820_v48  ;;  %v2095_v62 = vmul.f32 %v4371_v35, %v7821_v10  ;;  %v2096_v56 = vmul.f32 %v4371_v35, %v7822_v16  ;;  %v7826_v23 = vld [vmem:[#allocation18_spill] sm:$0xff]  ;;  %v7828_v28 = vld [vmem:[#allocation19_spill] sm:$0xff]  ;;  %v7834_v34 = vld [vmem:[#allocation37_spill] sm:$0xff] }
 0x252   : > { %7815 = vst [vmem:[#allocation20_spill] sm:$0xff] %v5683_v41  ;;  %v2097_v47 = vmul.f32 %v4371_v35, %v7823_v46  ;;  %v2098_v63 = vmul.f32 %v4371_v35, %v7824_v5  ;;  %v2099_v26 = vmul.f32 %v4371_v35, %v7825_v17  ;;  %v2100_v39 = vmul.f32 %v4371_v35, %v7826_v23  ;;  %v7829_v19 = vld [vmem:[#allocation31_spill] sm:$0xff]  ;;  %v1667_v31 = vld [vmem:[#allocation2 + $0x227] sm:$0xff]  ;;  %v7838_v46 = vld [vmem:[#allocation24_spill] sm:$0xff] }
 0x253   : > { %7816 = vst [vmem:[#allocation21_spill] sm:$0xff] %v5685_v49  ;;  %v2101_v61 = vmul.f32 %v4371_v35, %v7827_v18  ;;  %v2102_v59 = vmul.f32 %v4371_v35, %v7828_v28  ;;  %v2103_v58 = vmul.f32 %v4371_v35, %v7829_v19  ;;  %v2104_v51 = vmul.f32 %v4371_v35, %v7830_v37  ;;  %v1668_v33 = vld [vmem:[#allocation2 + $0x22f] sm:$0xff]  ;;  %v7837_v10 = vld [vmem:[#allocation41_spill] sm:$0xff]  ;;  %v7841_v19 = vld [vmem:[#allocation28_spill] sm:$0xff] }
 0x254   : > { %7817 = vst [vmem:[#allocation10_spill] sm:$0xff] %v5687_v32  ;;  %v2105_v29 = vmul.f32 %v4371_v35, %v7831_v50  ;;  %v2106_v42 = vmul.f32 %v4371_v35, %v7832_v57  ;;  %v2107_v8 = vmul.f32 %v4371_v35, %v7833_v1  ;;  %v2108_v14 = vmul.f32 %v4371_v35, %v7834_v34  ;;  %v7839_v17 = vld [vmem:[#allocation25_spill] sm:$0xff]  ;;  %v7840_v18 = vld [vmem:[#allocation26_spill] sm:$0xff]  ;;  %v7844_v34 = vld [vmem:[#allocation36_spill] sm:$0xff] }
 0x255   : > { %7818 = vst [vmem:[#allocation11_spill] sm:$0xff] %v5689_v0  ;;  %v2109_v45 = vmul.f32 %v4371_v35, %v7835_v53  ;;  %v2110_v48 = vmul.f32 %v4371_v35, %v7836_v30  ;;  %v2111_v16 = vmul.f32 %v4371_v35, %v7837_v10  ;;  %v2112_v5 = vmul.f32 %v4371_v35, %v7838_v46  ;;  %v7842_v50 = vld [vmem:[#allocation30_spill] sm:$0xff]  ;;  %v7843_v1 = vld [vmem:[#allocation33_spill] sm:$0xff]  ;;  %v7845_v53 = vld [vmem:[#allocation15_spill] sm:$0xff] }
 0x256   : > { %7819 = vst [vmem:[#allocation38_spill] sm:$0xff] %v5691_v36  ;;  %v2113_v23 = vmul.f32 %v4371_v35, %v7839_v17  ;;  %v2114_v28 = vmul.f32 %v4371_v35, %v7840_v18  ;;  %v2115_v37 = vmul.f32 %v4371_v35, %v7841_v19  ;;  %v2116_v57 = vmul.f32 %v4371_v35, %v7842_v50  ;;  %v5732_v50 = vld [vmem:[%s4576_s12 + $0x2] ss:$0 sm:$0xff] }
 0x257   : > { %v2117_v36 = vmul.f32 %v4371_v35, %v7843_v1  ;;  %v2118_v0 = vmul.f32 %v4371_v35, %v7844_v34  ;;  %v2119_v32 = vmul.f32 %v4371_v35, %v7845_v53  ;;  %v2120_v30 = vmul.f32 %v4371_v35, %v1667_v31 }
 0x258   : > { %v2121_v49 = vmul.f32 %v4371_v35, %v1668_v33  ;;  %v5719_v10 = vadd.f32 %v2094_v60, %v2033_v44  ;;  %v5721_v46 = vadd.f32 %v2095_v62, %v2034_v25  ;;  %v5723_v41 = vadd.f32 %v2096_v56, %v2035_v52  ;;  %v5752_v35 = vld [vmem:[#allocation2 + $0x68] sm:$0xff] }
 0x259   : > { %v5725_v17 = vadd.f32 %v2097_v47, %v2036_v4  ;;  %v5727_v18 = vadd.f32 %v2098_v63, %v2037_v21  ;;  %v5729_v19 = vadd.f32 %v2099_v26, %v2038_v24  ;;  %v5734_v1 = vadd.f32 %v2100_v39, %v2039_v22  ;;  %v5750_v24 = vld [vmem:[#allocation2 + $0x48] sm:$0xff]  ;;  %7847 = vst [vmem:[#allocation8_spill] sm:$0xff] %v5752_v35 }
 0x25a   : > { %v5736_v34 = vadd.f32 %v2101_v61, %v2040_v27  ;;  %v5738_v31 = vadd.f32 %v2102_v59, %v2041_v7  ;;  %v5740_v44 = vadd.f32 %v2103_v58, %v2042_v38  ;;  %v5742_v25 = vadd.f32 %v2104_v51, %v2043_v40  ;;  %7846 = vst [vmem:[#allocation12_spill] sm:$0xff] %v5750_v24  ;;  %v5754_v22 = vld [vmem:[#allocation2 + $0x88] sm:$0xff]  ;;  %v5804_v59 = vld [vmem:[#allocation2 + $0xf0] sm:$0xff] }
 0x25b   : > { %v5744_v52 = vadd.f32 %v2105_v29, %v2044_v12  ;;  %v5746_v4 = vadd.f32 %v2106_v42, %v2045_v43  ;;  %v5748_v21 = vadd.f32 %v2107_v8, %v2046_v2  ;;  %7848 = vst [vmem:[#allocation16_spill] sm:$0xff] %v5754_v22  ;;  %v5756_v27 = vadd.f32 %v2108_v14, %v2047_v6  ;;  %v5764_v12 = vld [vmem:[#allocation2 + $0x50] sm:$0xff]  ;;  %v5786_v56 = vld [vmem:[#allocation2 + $0xc8] sm:$0xff] }
 0x25c   : > { %v5758_v7 = vadd.f32 %v2109_v45, %v2048_v11  ;;  %v5760_v38 = vadd.f32 %v2110_v48, %v2049_v15  ;;  %v5762_v40 = vadd.f32 %v2111_v16, %v2050_v9  ;;  %7849 = vst [vmem:[#allocation9_spill] sm:$0xff] %v5764_v12  ;;  %v5766_v43 = vld [vmem:[#allocation2 + $0x70] sm:$0xff]  ;;  %v5771_v60 = vadd.f32 %v2112_v5, %v5673_v54  ;;  %v5782_v15 = vld [vmem:[#allocation2 + $0xa8] sm:$0xff]  ;;  %v7855_v54 = vld [vmem:[#allocation20_spill] sm:$0xff] }
 0x25d   : > { %7850 = vst [vmem:[#allocation17_spill] sm:$0xff] %v5766_v43  ;;  %v5768_v2 = vld [vmem:[#allocation2 + $0x90] sm:$0xff]  ;;  %v5774_v62 = vadd.f32 %v2113_v23, %v5675_v3  ;;  %v5777_v6 = vadd.f32 %v2114_v28, %v5677_v20  ;;  %v5780_v11 = vadd.f32 %v2115_v37, %v5679_v13  ;;  %v5789_v47 = vadd.f32 %v2116_v57, %v5681_v55  ;;  %v7856_v3 = vld [vmem:[#allocation21_spill] sm:$0xff] }
 0x25e   : > { %7851 = vst [vmem:[#allocation13_spill] sm:$0xff] %v5768_v2  ;;  %v5784_v9 = vld [vmem:[#allocation2 + $0xb0] sm:$0xff]  ;;  %v5792_v63 = vadd.f32 %v2117_v36, %v7855_v54  ;;  %v5795_v26 = vadd.f32 %v2118_v0, %v7856_v3  ;;  %v5802_v61 = vld [vmem:[#allocation2 + $0xe8] sm:$0xff]  ;;  %v2259_v33 = vmul.f32 %v5732_v50, %v5750_v24  ;;  %v2260_v48 = vmul.f32 %v5732_v50, %v5764_v12 }
 0x25f   : > { %7852 = vst [vmem:[#allocation22_spill] sm:$0xff] %v5782_v15  ;;  %v7857_v20 = vld [vmem:[#allocation10_spill] sm:$0xff]  ;;  %v7861_v58 = vld [vmem:[#allocation11_spill] sm:$0xff]  ;;  %v2261_v16 = vmul.f32 %v5732_v50, %v5752_v35  ;;  %v2262_v5 = vmul.f32 %v5732_v50, %v5766_v43  ;;  %v2263_v23 = vmul.f32 %v5732_v50, %v5754_v22  ;;  %v2264_v53 = vmul.f32 %v5732_v50, %v5768_v2 }
 0x260   : > { %7853 = vst [vmem:[#allocation14_spill] sm:$0xff] %v5784_v9  ;;  %v5798_v39 = vadd.f32 %v2119_v32, %v7857_v20  ;;  %v5800_v13 = vld [vmem:[#allocation2 + $0xd0] sm:$0xff]  ;;  %v5807_v51 = vadd.f32 %v2120_v30, %v7861_v58  ;;  %v5812_v36 = vld [vmem:[#allocation2 + $0x108] sm:$0xff]  ;;  %v5818_v32 = vld [vmem:[#allocation2] sm:$0xff]  ;;  %v2265_v30 = vmul.f32 %v5732_v50, %v5782_v15  ;;  %v2266_v54 = vmul.f32 %v5732_v50, %v5784_v9 }
 0x261   : > { %7854 = vst [vmem:[#allocation23_spill] sm:$0xff] %v5786_v56  ;;  %v7862_v55 = vld [vmem:[#allocation38_spill] sm:$0xff]  ;;  %v2255_v8 = vmul.f32 %v5818_v32, %v5732_v50  ;;  %v2267_v3 = vmul.f32 %v5732_v50, %v5786_v56  ;;  %v2268_v22 = vmul.f32 %v5732_v50, %v5800_v13  ;;  %v2269_v2 = vmul.f32 %v5732_v50, %v5802_v61 }
 0x262   : > { %7858 = vst [vmem:[#allocation18_spill] sm:$0xff] %v5800_v13  ;;  %v5810_v29 = vadd.f32 %v2121_v49, %v7862_v55  ;;  %v5814_v42 = vld [vmem:[#allocation2 + $0x110] sm:$0xff]  ;;  %v5816_v0 = vld [vmem:[#allocation2 + $0x128] sm:$0xff]  ;;  %v2270_v15 = vmul.f32 %v5732_v50, %v5804_v59  ;;  %v2271_v9 = vmul.f32 %v5732_v50, %v5812_v36  ;;  %v2288_v24 = vadd.f32 %v2260_v48, %v5729_v19 }
 0x263   : > { %7859 = vst [vmem:[#allocation29_spill] sm:$0xff] %v5802_v61  ;;  %v5824_v14 = vld [vmem:[#allocation2 + $0x130] sm:$0xff]  ;;  %v5826_v45 = vld [vmem:[#allocation2 + $0x148] sm:$0xff]  ;;  %v2272_v56 = vmul.f32 %v5732_v50, %v5814_v42  ;;  %v2273_v43 = vmul.f32 %v5732_v50, %v5816_v0  ;;  %v2285_v12 = vadd.f32 %v2255_v8, %v5723_v41  ;;  %v2295_v41 = vadd.f32 %v2267_v3, %v5746_v4 }
 0x264   : > { %7860 = vst [vmem:[#allocation19_spill] sm:$0xff] %v5804_v59  ;;  %v5828_v49 = vld [vmem:[#allocation2 + $0x150] sm:$0xff]  ;;  %v5838_v28 = vld [vmem:[#allocation2 + $0x168] sm:$0xff]  ;;  %v2274_v35 = vmul.f32 %v5732_v50, %v5824_v14  ;;  %v2275_v13 = vmul.f32 %v5732_v50, %v5826_v45  ;;  %v2298_v19 = vadd.f32 %v2270_v15, %v5758_v7 }
 0x265   : > { %7863 = vst [vmem:[#allocation31_spill] sm:$0xff] %v5812_v36  ;;  %v5840_v37 = vld [vmem:[#allocation2 + $0x170] sm:$0xff]  ;;  %v5842_v57 = vld [vmem:[#allocation2 + $0x188] sm:$0xff]  ;;  %v2276_v61 = vmul.f32 %v5732_v50, %v5828_v49  ;;  %v2277_v59 = vmul.f32 %v5732_v50, %v5838_v28 }
 0x266   : > { %7864 = vst [vmem:[#allocation27_spill] sm:$0xff] %v5814_v42  ;;  %v5852_v20 = vld [vmem:[#allocation2 + $0x190] sm:$0xff]  ;;  %v5854_v58 = vld [vmem:[#allocation2 + $0x1a8] sm:$0xff]  ;;  %v2278_v36 = vmul.f32 %v5732_v50, %v5840_v37  ;;  %v2279_v42 = vmul.f32 %v5732_v50, %v5842_v57 }
 0x267   : > { %7865 = vst [vmem:[#allocation34_spill] sm:$0xff] %v5816_v0  ;;  %v5856_v55 = vld [vmem:[#allocation2 + $0x1b0] sm:$0xff]  ;;  %v2280_v0 = vmul.f32 %v5732_v50, %v5852_v20  ;;  %v2305_v4 = vadd.f32 %v2277_v59, %v5789_v47  ;;  %v7880_v15 = vld [vmem:[#allocation17_spill] sm:$0xff] }
 0x268   : > { %7866 = vst [vmem:[#allocation32_spill] sm:$0xff] %v5818_v32  ;;  %v2290_v32 = vadd.f32 %v2262_v5, %v5736_v34  ;;  %v2300_v34 = vadd.f32 %v2272_v56, %v5762_v40  ;;  %v7881_v56 = vld [vmem:[#allocation16_spill] sm:$0xff]  ;;  %v5932_v48 = vld [vmem:[#allocation2 + $0x1d0] sm:$0xff] }
 0x269   : > { %7867 = vst [vmem:[#allocation35_spill] sm:$0xff] %v5824_v14  ;;  %v2281_v14 = vmul.f32 %v5732_v50, %v5854_v58 }
 0x26a   : > { %7868 = vst [vmem:[#allocation37_spill] sm:$0xff] %v5826_v45  ;;  %v2282_v45 = vmul.f32 %v5732_v50, %v5856_v55  ;;  %v2292_v50 = vadd.f32 %v2264_v53, %v5740_v44  ;;  %v2302_v44 = vadd.f32 %v2274_v35, %v5774_v62 }
 0x26b   : > { %7869 = vst [vmem:[#allocation39_spill] sm:$0xff] %v5828_v49  ;;  %v2283_v49 = vadd.f32 %v2255_v8, %v5719_v10  ;;  %v2293_v10 = vadd.f32 %v2265_v30, %v5742_v25  ;;  %v2303_v25 = vadd.f32 %v2275_v13, %v5777_v6  ;;  %v2309_v7 = vadd.f32 %v2281_v14, %v5807_v51  ;;  %v7879_v6 = vld [vmem:[#allocation8_spill] sm:$0xff]  ;;  %v7883_v13 = vld [vmem:[#allocation22_spill] sm:$0xff]  ;;  %v7885_v51 = vld [vmem:[#allocation23_spill] sm:$0xff] }
 0x26c   : > { %7870 = vst [vmem:[#allocation40_spill] sm:$0xff] %v5838_v28  ;;  %v2284_v28 = vadd.f32 %v2255_v8, %v5721_v46  ;;  %v2294_v46 = vadd.f32 %v2266_v54, %v5744_v52  ;;  %v2304_v52 = vadd.f32 %v2276_v61, %v5780_v11  ;;  %v7884_v61 = vld [vmem:[#allocation14_spill] sm:$0xff] }
 0x26d   : > { %7871 = vst [vmem:[#allocation41_spill] sm:$0xff] %v5840_v37  ;;  %v2286_v37 = vadd.f32 %v2255_v8, %v5725_v17  ;;  %v2296_v17 = vadd.f32 %v2268_v22, %v5748_v21  ;;  %v2306_v21 = vadd.f32 %v2278_v36, %v5792_v63  ;;  %v2307_v22 = vadd.f32 %v2279_v42, %v5795_v26  ;;  %v7882_v63 = vld [vmem:[#allocation13_spill] sm:$0xff]  ;;  %v7886_v36 = vld [vmem:[#allocation18_spill] sm:$0xff] }
 0x26e   : > { %7872 = vst [vmem:[#allocation24_spill] sm:$0xff] %v5842_v57  ;;  %v2287_v57 = vadd.f32 %v2259_v33, %v5727_v18  ;;  %v2297_v18 = vadd.f32 %v2269_v2, %v5756_v27  ;;  %v2308_v27 = vadd.f32 %v2280_v0, %v5798_v39  ;;  %v7877_v2 = vld [vmem:[#allocation12_spill] sm:$0xff]  ;;  %v7887_v0 = vld [vmem:[#allocation29_spill] sm:$0xff]  ;;  %v7888_v33 = vld [vmem:[#allocation19_spill] sm:$0xff] }
 0x26f   : > { %7873 = vst [vmem:[#allocation25_spill] sm:$0xff] %v5852_v20  ;;  %v2289_v20 = vadd.f32 %v2261_v16, %v5734_v1  ;;  %v2299_v1 = vadd.f32 %v2271_v9, %v5760_v38  ;;  %v2310_v38 = vadd.f32 %v2282_v45, %v5810_v29  ;;  %v7876_v40 = vld [vmem:[#allocation32_spill] sm:$0xff]  ;;  %v5930_v45 = vld [vmem:[#allocation2 + $0x1c8] sm:$0xff]  ;;  %v7891_v16 = vld [vmem:[#allocation31_spill] sm:$0xff] }
 0x270   : > { %7874 = vst [vmem:[#allocation26_spill] sm:$0xff] %v5854_v58  ;;  %v2291_v58 = vadd.f32 %v2263_v23, %v5738_v31  ;;  %v2301_v31 = vadd.f32 %v2273_v43, %v5771_v60  ;;  %v7878_v60 = vld [vmem:[#allocation9_spill] sm:$0xff]  ;;  %v7892_v23 = vld [vmem:[#allocation27_spill] sm:$0xff]  ;;  %v7893_v30 = vld [vmem:[#allocation34_spill] sm:$0xff] }
 0x271   : > { %7875 = vst [vmem:[#allocation28_spill] sm:$0xff] %v5856_v55  ;;  %v4373_v55 = vld [vmem:[%s4576_s12 + $0x7] ss:$0 sm:$0xff]  ;;  %v7894_v3 = vld [vmem:[#allocation35_spill] sm:$0xff] }
 0x272   : > { %v2344_v43 = vmul.f32 %v7876_v40, %v4373_v55  ;;  %v2346_v35 = vmul.f32 %v4373_v55, %v7877_v2  ;;  %v2347_v62 = vmul.f32 %v4373_v55, %v7878_v60  ;;  %v2348_v11 = vmul.f32 %v4373_v55, %v7879_v6  ;;  %7889 = vst [vmem:[#allocation30_spill] sm:$0xff] %v5930_v45 }
 0x273   : > { %v2349_v9 = vmul.f32 %v4373_v55, %v7880_v15  ;;  %v2350_v47 = vmul.f32 %v4373_v55, %v7881_v56  ;;  %v2351_v26 = vmul.f32 %v4373_v55, %v7882_v63  ;;  %v2352_v39 = vmul.f32 %v4373_v55, %v7883_v13  ;;  %7890 = vst [vmem:[#allocation33_spill] sm:$0xff] %v5932_v48  ;;  %v7896_v13 = vld [vmem:[#allocation39_spill] sm:$0xff]  ;;  %v7897_v63 = vld [vmem:[#allocation40_spill] sm:$0xff] }
 0x274   : > { %v2353_v59 = vmul.f32 %v4373_v55, %v7884_v61  ;;  %v2354_v29 = vmul.f32 %v4373_v55, %v7885_v51  ;;  %v2355_v42 = vmul.f32 %v4373_v55, %v7886_v36  ;;  %v2356_v8 = vmul.f32 %v4373_v55, %v7887_v0  ;;  %v7895_v61 = vld [vmem:[#allocation37_spill] sm:$0xff] }
 0x275   : > { %v2357_v14 = vmul.f32 %v4373_v55, %v7888_v33  ;;  %v2358_v5 = vmul.f32 %v4373_v55, %v7891_v16  ;;  %v2359_v53 = vmul.f32 %v4373_v55, %v7892_v23  ;;  %v2360_v54 = vmul.f32 %v4373_v55, %v7893_v30  ;;  %v7898_v56 = vld [vmem:[#allocation41_spill] sm:$0xff]  ;;  %v7899_v15 = vld [vmem:[#allocation24_spill] sm:$0xff] }
 0x276   : > { %v2361_v40 = vmul.f32 %v4373_v55, %v7894_v3  ;;  %v2362_v51 = vmul.f32 %v4373_v55, %v7895_v61  ;;  %v2363_v36 = vmul.f32 %v4373_v55, %v7896_v13  ;;  %v2364_v0 = vmul.f32 %v4373_v55, %v7897_v63  ;;  %v7900_v60 = vld [vmem:[#allocation25_spill] sm:$0xff] }
 0x277   : > { %v2365_v33 = vmul.f32 %v4373_v55, %v7898_v56  ;;  %v2366_v6 = vmul.f32 %v4373_v55, %v7899_v15  ;;  %v2367_v2 = vmul.f32 %v4373_v55, %v7900_v60  ;;  %v7901_v16 = vld [vmem:[#allocation26_spill] sm:$0xff]  ;;  %v2372_v63 = vadd.f32 %v2344_v43, %v2283_v49 }
 0x278   : > { %v2368_v48 = vmul.f32 %v4373_v55, %v7901_v16  ;;  %v7902_v23 = vld [vmem:[#allocation28_spill] sm:$0xff]  ;;  %v2373_v56 = vadd.f32 %v2344_v43, %v2284_v28  ;;  %v2374_v15 = vadd.f32 %v2346_v35, %v2285_v12  ;;  %v2375_v60 = vadd.f32 %v2347_v62, %v2286_v37  ;;  %v4374_v28 = vld [vmem:[%s4576_s12 + $0xc] ss:$0 sm:$0xff] }
 0x279   : > { %v2369_v45 = vmul.f32 %v4373_v55, %v7902_v23  ;;  %v7903_v30 = vld [vmem:[#allocation30_spill] sm:$0xff]  ;;  %v2376_v16 = vadd.f32 %v2348_v11, %v2287_v57  ;;  %v2377_v23 = vadd.f32 %v2349_v9, %v2288_v24  ;;  %v2381_v49 = vadd.f32 %v2353_v59, %v2292_v50 }
 0x27a   : > { %v2370_v3 = vmul.f32 %v4373_v55, %v7903_v30  ;;  %v7904_v61 = vld [vmem:[#allocation33_spill] sm:$0xff]  ;;  %v2378_v30 = vadd.f32 %v2350_v47, %v2289_v20  ;;  %v2382_v43 = vadd.f32 %v2354_v29, %v2293_v10  ;;  %v2383_v12 = vadd.f32 %v2355_v42, %v2294_v46  ;;  %v7905_v29 = vld [vmem:[#allocation12_spill] sm:$0xff] }
 0x27b   : > { %v2371_v13 = vmul.f32 %v4373_v55, %v7904_v61  ;;  %v2379_v55 = vadd.f32 %v2351_v26, %v2290_v32  ;;  %v2380_v61 = vadd.f32 %v2352_v39, %v2291_v58  ;;  %v2384_v35 = vadd.f32 %v2356_v8, %v2295_v41  ;;  %v7906_v46 = vld [vmem:[#allocation9_spill] sm:$0xff]  ;;  %v7907_v41 = vld [vmem:[#allocation8_spill] sm:$0xff] }
 0x27c   : > { %v2385_v37 = vadd.f32 %v2357_v14, %v2296_v17  ;;  %v2386_v62 = vadd.f32 %v2358_v5, %v2297_v18  ;;  %v2387_v11 = vadd.f32 %v2359_v53, %v2298_v19  ;;  %v2388_v57 = vadd.f32 %v2360_v54, %v2299_v1  ;;  %v7908_v18 = vld [vmem:[#allocation17_spill] sm:$0xff]  ;;  %v7909_v1 = vld [vmem:[#allocation16_spill] sm:$0xff]  ;;  %v7922_v53 = vld [vmem:[#allocation35_spill] sm:$0xff] }
 0x27d   : > { %v2389_v9 = vadd.f32 %v2361_v40, %v2300_v34  ;;  %v2390_v24 = vadd.f32 %v2362_v51, %v2301_v31  ;;  %v2391_v20 = vadd.f32 %v2363_v36, %v2302_v44  ;;  %v2392_v47 = vadd.f32 %v2364_v0, %v2303_v25  ;;  %v7910_v31 = vld [vmem:[#allocation13_spill] sm:$0xff]  ;;  %v7911_v25 = vld [vmem:[#allocation22_spill] sm:$0xff]  ;;  %v7917_v51 = vld [vmem:[#allocation31_spill] sm:$0xff] }
 0x27e   : > { %v2393_v26 = vadd.f32 %v2365_v33, %v2304_v52  ;;  %v2394_v32 = vadd.f32 %v2366_v6, %v2305_v4  ;;  %v2395_v39 = vadd.f32 %v2367_v2, %v2306_v21  ;;  %v2396_v58 = vadd.f32 %v2368_v48, %v2307_v22  ;;  %v7912_v4 = vld [vmem:[#allocation14_spill] sm:$0xff]  ;;  %v7913_v22 = vld [vmem:[#allocation23_spill] sm:$0xff]  ;;  %v7915_v40 = vld [vmem:[#allocation29_spill] sm:$0xff] }
 0x27f   : > { %v2397_v50 = vadd.f32 %v2369_v45, %v2308_v27  ;;  %v2398_v59 = vadd.f32 %v2370_v3, %v2309_v7  ;;  %v2399_v10 = vadd.f32 %v2371_v13, %v2310_v38  ;;  %v2433_v42 = vmul.f32 %v4374_v28, %v7905_v29  ;;  %v7914_v7 = vld [vmem:[#allocation18_spill] sm:$0xff]  ;;  %v7916_v6 = vld [vmem:[#allocation19_spill] sm:$0xff]  ;;  %v7923_v3 = vld [vmem:[#allocation37_spill] sm:$0xff] }
 0x280   : > { %v2434_v8 = vmul.f32 %v4374_v28, %v7906_v46  ;;  %v2435_v17 = vmul.f32 %v4374_v28, %v7907_v41  ;;  %v2436_v19 = vmul.f32 %v4374_v28, %v7908_v18  ;;  %v2437_v34 = vmul.f32 %v4374_v28, %v7909_v1  ;;  %v7918_v0 = vld [vmem:[#allocation27_spill] sm:$0xff]  ;;  %v5963_v14 = vld [vmem:[#allocation2 + $0x1e8] sm:$0xff]  ;;  %v7930_v41 = vld [vmem:[#allocation28_spill] sm:$0xff] }
 0x281   : > { %v2438_v44 = vmul.f32 %v4374_v28, %v7910_v31  ;;  %v2439_v52 = vmul.f32 %v4374_v28, %v7911_v25  ;;  %v2440_v21 = vmul.f32 %v4374_v28, %v7912_v4  ;;  %v2441_v27 = vmul.f32 %v4374_v28, %v7913_v22  ;;  %7919 = vst [vmem:[#allocation36_spill] sm:$0xff] %v5963_v14  ;;  %v5965_v45 = vld [vmem:[#allocation2 + $0x1f0] sm:$0xff]  ;;  %v7925_v22 = vld [vmem:[#allocation40_spill] sm:$0xff]  ;;  %v7926_v4 = vld [vmem:[#allocation41_spill] sm:$0xff] }
 0x282   : > { %v2442_v38 = vmul.f32 %v4374_v28, %v7914_v7  ;;  %v2443_v2 = vmul.f32 %v4374_v28, %v7915_v40  ;;  %v2444_v13 = vmul.f32 %v4374_v28, %v7916_v6  ;;  %v2445_v36 = vmul.f32 %v4374_v28, %v7917_v51  ;;  %7920 = vst [vmem:[#allocation15_spill] sm:$0xff] %v5965_v45  ;;  %v7921_v48 = vld [vmem:[#allocation34_spill] sm:$0xff]  ;;  %v7924_v46 = vld [vmem:[#allocation39_spill] sm:$0xff]  ;;  %v7927_v25 = vld [vmem:[#allocation24_spill] sm:$0xff] }
 0x283   : > { %v2446_v33 = vmul.f32 %v4374_v28, %v7918_v0  ;;  %v2447_v5 = vmul.f32 %v4374_v28, %v7921_v48  ;;  %v2448_v54 = vmul.f32 %v4374_v28, %v7922_v53  ;;  %v2449_v29 = vmul.f32 %v4374_v28, %v7923_v3  ;;  %v7928_v31 = vld [vmem:[#allocation25_spill] sm:$0xff]  ;;  %v7929_v1 = vld [vmem:[#allocation26_spill] sm:$0xff] }
 0x284   : > { %v2450_v7 = vmul.f32 %v4374_v28, %v7924_v46  ;;  %v2451_v40 = vmul.f32 %v4374_v28, %v7925_v22  ;;  %v2452_v6 = vmul.f32 %v4374_v28, %v7926_v4  ;;  %v2453_v51 = vmul.f32 %v4374_v28, %v7927_v25  ;;  %v7931_v48 = vld [vmem:[#allocation30_spill] sm:$0xff]  ;;  %v7932_v53 = vld [vmem:[#allocation33_spill] sm:$0xff] }
 0x285   : > { %v2454_v0 = vmul.f32 %v4374_v28, %v7928_v31  ;;  %v2455_v18 = vmul.f32 %v4374_v28, %v7929_v1  ;;  %v2456_v45 = vmul.f32 %v4374_v28, %v7930_v41  ;;  %v2457_v14 = vmul.f32 %v4374_v28, %v7931_v48 }
 0x286   : > { %v2458_v3 = vmul.f32 %v4374_v28, %v7932_v53  ;;  %v2461_v31 = vadd.f32 %v2433_v42, %v2372_v63  ;;  %v2462_v1 = vadd.f32 %v2434_v8, %v2373_v56  ;;  %v2463_v41 = vadd.f32 %v2435_v17, %v2374_v15  ;;  %v4375_v8 = vld [vmem:[%s4576_s12 + $0x11] ss:$0 sm:$0xff] }
 0x287   : > { %v2464_v48 = vadd.f32 %v2436_v19, %v2375_v60  ;;  %v2465_v53 = vadd.f32 %v2437_v34, %v2376_v16  ;;  %v2469_v42 = vadd.f32 %v2441_v27, %v2380_v61  ;;  %v2470_v63 = vadd.f32 %v2442_v38, %v2381_v49 }
 0x288   : > { %v7933_v46 = vld [vmem:[#allocation36_spill] sm:$0xff]  ;;  %v2471_v56 = vadd.f32 %v2443_v2, %v2382_v43  ;;  %v2472_v15 = vadd.f32 %v2444_v13, %v2383_v12  ;;  %v2473_v17 = vadd.f32 %v2445_v36, %v2384_v35  ;;  %v2474_v19 = vadd.f32 %v2446_v33, %v2385_v37  ;;  %v7936_v13 = vld [vmem:[#allocation17_spill] sm:$0xff] }
 0x289   : > { %v2459_v22 = vmul.f32 %v4374_v28, %v7933_v46  ;;  %v7934_v4 = vld [vmem:[#allocation15_spill] sm:$0xff]  ;;  %v2466_v46 = vadd.f32 %v2438_v44, %v2377_v23  ;;  %v2475_v60 = vadd.f32 %v2447_v5, %v2386_v62  ;;  %v2476_v16 = vadd.f32 %v2448_v54, %v2387_v11  ;;  %v7935_v43 = vld [vmem:[#allocation8_spill] sm:$0xff]  ;;  %v7938_v62 = vld [vmem:[#allocation13_spill] sm:$0xff] }
 0x28a   : > { %v2460_v25 = vmul.f32 %v4374_v28, %v7934_v4  ;;  %v2467_v4 = vadd.f32 %v2439_v52, %v2378_v30  ;;  %v2468_v28 = vadd.f32 %v2440_v21, %v2379_v55  ;;  %v2477_v34 = vadd.f32 %v2449_v29, %v2388_v57  ;;  %v7937_v36 = vld [vmem:[#allocation16_spill] sm:$0xff]  ;;  %v7939_v57 = vld [vmem:[#allocation22_spill] sm:$0xff]  ;;  %v7949_v33 = vld [vmem:[#allocation37_spill] sm:$0xff] }
 0x28b   : > { %v2478_v23 = vadd.f32 %v2450_v7, %v2389_v9  ;;  %v2479_v44 = vadd.f32 %v2451_v40, %v2390_v24  ;;  %v2480_v30 = vadd.f32 %v2452_v6, %v2391_v20  ;;  %v2481_v52 = vadd.f32 %v2453_v51, %v2392_v47  ;;  %v7940_v24 = vld [vmem:[#allocation14_spill] sm:$0xff]  ;;  %v7941_v47 = vld [vmem:[#allocation23_spill] sm:$0xff]  ;;  %v7951_v54 = vld [vmem:[#allocation40_spill] sm:$0xff] }
 0x28c   : > { %v2482_v21 = vadd.f32 %v2454_v0, %v2393_v26  ;;  %v2483_v55 = vadd.f32 %v2455_v18, %v2394_v32  ;;  %v2484_v27 = vadd.f32 %v2456_v45, %v2395_v39  ;;  %v2485_v61 = vadd.f32 %v2457_v14, %v2396_v58  ;;  %v7942_v32 = vld [vmem:[#allocation18_spill] sm:$0xff]  ;;  %v7943_v58 = vld [vmem:[#allocation29_spill] sm:$0xff]  ;;  %v7945_v18 = vld [vmem:[#allocation31_spill] sm:$0xff] }
 0x28d   : > { %v2486_v38 = vadd.f32 %v2458_v3, %v2397_v50  ;;  %v2487_v49 = vadd.f32 %v2459_v22, %v2398_v59  ;;  %v2488_v2 = vadd.f32 %v2460_v25, %v2399_v10  ;;  %v2522_v12 = vmul.f32 %v4375_v8, %v7935_v43  ;;  %v7944_v59 = vld [vmem:[#allocation19_spill] sm:$0xff]  ;;  %v7947_v40 = vld [vmem:[#allocation34_spill] sm:$0xff]  ;;  %v7952_v29 = vld [vmem:[#allocation41_spill] sm:$0xff] }
 0x28e   : > { %v2523_v35 = vmul.f32 %v4375_v8, %v7936_v13  ;;  %v2524_v37 = vmul.f32 %v4375_v8, %v7937_v36  ;;  %v2525_v11 = vmul.f32 %v4375_v8, %v7938_v62  ;;  %v2526_v9 = vmul.f32 %v4375_v8, %v7939_v57  ;;  %v7946_v22 = vld [vmem:[#allocation27_spill] sm:$0xff]  ;;  %v7953_v13 = vld [vmem:[#allocation24_spill] sm:$0xff]  ;;  %v7957_v57 = vld [vmem:[#allocation30_spill] sm:$0xff] }
 0x28f   : > { %v2527_v20 = vmul.f32 %v4375_v8, %v7940_v24  ;;  %v2528_v26 = vmul.f32 %v4375_v8, %v7941_v47  ;;  %v2529_v39 = vmul.f32 %v4375_v8, %v7942_v32  ;;  %v2530_v50 = vmul.f32 %v4375_v8, %v7943_v58  ;;  %v7948_v51 = vld [vmem:[#allocation35_spill] sm:$0xff]  ;;  %v7954_v32 = vld [vmem:[#allocation25_spill] sm:$0xff]  ;;  %v7955_v47 = vld [vmem:[#allocation26_spill] sm:$0xff] }
 0x290   : > { %v2531_v10 = vmul.f32 %v4375_v8, %v7944_v59  ;;  %v2532_v25 = vmul.f32 %v4375_v8, %v7945_v18  ;;  %v2533_v7 = vmul.f32 %v4375_v8, %v7946_v22  ;;  %v2534_v6 = vmul.f32 %v4375_v8, %v7947_v40  ;;  %v7950_v45 = vld [vmem:[#allocation39_spill] sm:$0xff]  ;;  %v7956_v24 = vld [vmem:[#allocation28_spill] sm:$0xff]  ;;  %v7958_v62 = vld [vmem:[#allocation33_spill] sm:$0xff] }
 0x291   : > { %v2535_v0 = vmul.f32 %v4375_v8, %v7948_v51  ;;  %v2536_v14 = vmul.f32 %v4375_v8, %v7949_v33  ;;  %v2537_v5 = vmul.f32 %v4375_v8, %v7950_v45  ;;  %v2538_v3 = vmul.f32 %v4375_v8, %v7951_v54  ;;  %v7959_v33 = vld [vmem:[#allocation36_spill] sm:$0xff]  ;;  %v7960_v45 = vld [vmem:[#allocation15_spill] sm:$0xff] }
 0x292   : > { %v2539_v43 = vmul.f32 %v4375_v8, %v7952_v29  ;;  %v2540_v58 = vmul.f32 %v4375_v8, %v7953_v13  ;;  %v2541_v59 = vmul.f32 %v4375_v8, %v7954_v32  ;;  %v2542_v18 = vmul.f32 %v4375_v8, %v7955_v47  ;;  %v7961_v29 = vld [vmem:[#allocation32_spill] sm:$0xff] }
 0x293   : > { %v2543_v22 = vmul.f32 %v4375_v8, %v7956_v24  ;;  %v2544_v40 = vmul.f32 %v4375_v8, %v7957_v57  ;;  %v2545_v51 = vmul.f32 %v4375_v8, %v7958_v62  ;;  %v2546_v36 = vmul.f32 %v4375_v8, %v7959_v33 }
 0x294   : > { %v2547_v54 = vmul.f32 %v4375_v8, %v7960_v45  ;;  %v2548_v13 = vmul.f32 %v7961_v29, %v4375_v8  ;;  %v2550_v32 = vadd.f32 %v2522_v12, %v2461_v31  ;;  %v2551_v47 = vadd.f32 %v2523_v35, %v2462_v1  ;;  %v4376_v1 = vld [vmem:[%s4576_s12 + $0x16] ss:$0 sm:$0xff] }
 0x295   : > { %v2552_v24 = vadd.f32 %v2524_v37, %v2463_v41  ;;  %v2553_v57 = vadd.f32 %v2525_v11, %v2464_v48  ;;  %v2554_v62 = vadd.f32 %v2526_v9, %v2465_v53  ;;  %v2555_v33 = vadd.f32 %v2527_v20, %v2466_v46 }
 0x296   : > { %v2556_v45 = vadd.f32 %v2528_v26, %v2467_v4  ;;  %v2557_v8 = vadd.f32 %v2529_v39, %v2468_v28  ;;  %v2558_v29 = vadd.f32 %v2530_v50, %v2469_v42  ;;  %v2559_v12 = vadd.f32 %v2531_v10, %v2470_v63  ;;  %v7973_v10 = vld [vmem:[#allocation34_spill] sm:$0xff] }
 0x297   : > { %v2560_v31 = vadd.f32 %v2532_v25, %v2471_v56  ;;  %v2561_v35 = vadd.f32 %v2533_v7, %v2472_v15  ;;  %v2562_v37 = vadd.f32 %v2534_v6, %v2473_v17  ;;  %v2563_v41 = vadd.f32 %v2535_v0, %v2474_v19  ;;  %v7963_v17 = vld [vmem:[#allocation16_spill] sm:$0xff]  ;;  %v7974_v25 = vld [vmem:[#allocation35_spill] sm:$0xff]  ;;  %v7975_v7 = vld [vmem:[#allocation37_spill] sm:$0xff] }
 0x298   : > { %v2564_v11 = vadd.f32 %v2536_v14, %v2475_v60  ;;  %v2565_v48 = vadd.f32 %v2537_v5, %v2476_v16  ;;  %v2566_v9 = vadd.f32 %v2538_v3, %v2477_v34  ;;  %v2567_v53 = vadd.f32 %v2539_v43, %v2478_v23  ;;  %v7964_v60 = vld [vmem:[#allocation13_spill] sm:$0xff]  ;;  %v7965_v34 = vld [vmem:[#allocation22_spill] sm:$0xff]  ;;  %v7976_v6 = vld [vmem:[#allocation39_spill] sm:$0xff] }
 0x299   : > { %v2568_v20 = vadd.f32 %v2540_v58, %v2479_v44  ;;  %v2569_v46 = vadd.f32 %v2541_v59, %v2480_v30  ;;  %v2570_v4 = vadd.f32 %v2542_v18, %v2481_v52  ;;  %v2571_v26 = vadd.f32 %v2543_v22, %v2482_v21  ;;  %v7966_v44 = vld [vmem:[#allocation14_spill] sm:$0xff]  ;;  %v7967_v52 = vld [vmem:[#allocation23_spill] sm:$0xff]  ;;  %v7977_v0 = vld [vmem:[#allocation40_spill] sm:$0xff] }
 0x29a   : > { %v6010_v28 = vadd.f32 %v2544_v40, %v2483_v55  ;;  %v6012_v39 = vadd.f32 %v2545_v51, %v2484_v27  ;;  %v6014_v42 = vadd.f32 %v2546_v36, %v2485_v61  ;;  %v6016_v63 = vadd.f32 %v2547_v54, %v2486_v38  ;;  %v7968_v55 = vld [vmem:[#allocation18_spill] sm:$0xff]  ;;  %v7969_v61 = vld [vmem:[#allocation29_spill] sm:$0xff]  ;;  %v7970_v38 = vld [vmem:[#allocation19_spill] sm:$0xff] }
 0x29b   : > { %v6018_v56 = vadd.f32 %v2548_v13, %v2487_v49  ;;  %v6020_v15 = vadd.f32 %v2548_v13, %v2488_v2  ;;  %v2611_v19 = vmul.f32 %v4376_v1, %v7963_v17  ;;  %v2612_v16 = vmul.f32 %v4376_v1, %v7964_v60  ;;  %v7971_v49 = vld [vmem:[#allocation31_spill] sm:$0xff]  ;;  %v7978_v5 = vld [vmem:[#allocation41_spill] sm:$0xff]  ;;  %v7979_v3 = vld [vmem:[#allocation24_spill] sm:$0xff] }
 0x29c   : > { %v2613_v23 = vmul.f32 %v4376_v1, %v7965_v34  ;;  %v2614_v30 = vmul.f32 %v4376_v1, %v7966_v44  ;;  %v2615_v21 = vmul.f32 %v4376_v1, %v7967_v52  ;;  %v2616_v27 = vmul.f32 %v4376_v1, %v7968_v55  ;;  %v7972_v2 = vld [vmem:[#allocation27_spill] sm:$0xff]  ;;  %v7980_v13 = vld [vmem:[#allocation25_spill] sm:$0xff]  ;;  %v7981_v60 = vld [vmem:[#allocation26_spill] sm:$0xff] }
 0x29d   : > { %7962 = vst [vmem:[#allocation20_spill] sm:$0xff] %v6020_v15  ;;  %v2617_v36 = vmul.f32 %v4376_v1, %v7969_v61  ;;  %v2618_v58 = vmul.f32 %v4376_v1, %v7970_v38  ;;  %v2619_v50 = vmul.f32 %v4376_v1, %v7971_v49  ;;  %v2620_v59 = vmul.f32 %v4376_v1, %v7972_v2  ;;  %v7982_v44 = vld [vmem:[#allocation28_spill] sm:$0xff]  ;;  %v7983_v55 = vld [vmem:[#allocation30_spill] sm:$0xff]  ;;  %v7984_v38 = vld [vmem:[#allocation33_spill] sm:$0xff] }
 0x29e   : > { %v2621_v18 = vmul.f32 %v4376_v1, %v7973_v10  ;;  %v2622_v22 = vmul.f32 %v4376_v1, %v7974_v25  ;;  %v2623_v40 = vmul.f32 %v4376_v1, %v7975_v7  ;;  %v2624_v51 = vmul.f32 %v4376_v1, %v7976_v6  ;;  %v7985_v2 = vld [vmem:[#allocation36_spill] sm:$0xff]  ;;  %v7986_v25 = vld [vmem:[#allocation15_spill] sm:$0xff] }
 0x29f   : > { %v2625_v14 = vmul.f32 %v4376_v1, %v7977_v0  ;;  %v2626_v54 = vmul.f32 %v4376_v1, %v7978_v5  ;;  %v2627_v43 = vmul.f32 %v4376_v1, %v7979_v3  ;;  %v2628_v17 = vmul.f32 %v4376_v1, %v7980_v13  ;;  %v7987_v6 = vld [vmem:[#allocation32_spill] sm:$0xff] }
 0x2a0   : > { %v2629_v34 = vmul.f32 %v4376_v1, %v7981_v60  ;;  %v2630_v52 = vmul.f32 %v4376_v1, %v7982_v44  ;;  %v2631_v61 = vmul.f32 %v4376_v1, %v7983_v55  ;;  %v2632_v49 = vmul.f32 %v4376_v1, %v7984_v38 }
 0x2a1   : > { %v2633_v10 = vmul.f32 %v4376_v1, %v7985_v2  ;;  %v2634_v7 = vmul.f32 %v4376_v1, %v7986_v25  ;;  %v2635_v0 = vmul.f32 %v7987_v6, %v4376_v1  ;;  %v6047_v5 = vadd.f32 %v2611_v19, %v2550_v32  ;;  %v6068_v32 = vld [vmem:[%s4576_s12 + $0x3] ss:$0 sm:$0xff]  ;;  %v2668_v19 = vld [vmem:[#allocation2 + $0x11] sm:$0xff] }
 0x2a2   : > { %v6049_v3 = vadd.f32 %v2612_v16, %v2551_v47  ;;  %v6051_v13 = vadd.f32 %v2613_v23, %v2552_v24  ;;  %v6053_v60 = vadd.f32 %v2614_v30, %v2553_v57  ;;  %v6055_v44 = vadd.f32 %v2615_v21, %v2554_v62  ;;  %v6096_v16 = vld [vmem:[#allocation2 + $0x91] sm:$0xff]  ;;  %v6110_v21 = vld [vmem:[#allocation2 + $0xa9] sm:$0xff] }
 0x2a3   : > { %v6057_v15 = vadd.f32 %v2616_v27, %v2555_v33  ;;  %v6059_v55 = vadd.f32 %v2617_v36, %v2556_v45  ;;  %v6061_v38 = vadd.f32 %v2618_v58, %v2557_v8  ;;  %v6063_v2 = vadd.f32 %v2619_v50, %v2558_v29  ;;  %v6078_v33 = vld [vmem:[#allocation2 + $0x49] sm:$0xff]  ;;  %v6080_v45 = vld [vmem:[#allocation2 + $0x51] sm:$0xff]  ;;  %7993 = vst [vmem:[#allocation9_spill] sm:$0xff] %v6096_v16 }
 0x2a4   : > { %v6065_v25 = vadd.f32 %v2620_v59, %v2559_v12  ;;  %v6070_v47 = vadd.f32 %v2621_v18, %v2560_v31  ;;  %v6072_v24 = vadd.f32 %v2622_v22, %v2561_v35  ;;  %v6074_v57 = vadd.f32 %v2623_v40, %v2562_v37  ;;  %7988 = vst [vmem:[#allocation21_spill] sm:$0xff] %v6078_v33  ;;  %v2667_v31 = vld [vmem:[#allocation2 + $0x9] sm:$0xff]  ;;  %v6092_v37 = vld [vmem:[#allocation2 + $0x71] sm:$0xff] }
 0x2a5   : > { %v6076_v62 = vadd.f32 %v2624_v51, %v2563_v41  ;;  %7989 = vst [vmem:[#allocation10_spill] sm:$0xff] %v6080_v45  ;;  %v6082_v8 = vadd.f32 %v2625_v14, %v2564_v11  ;;  %v6084_v29 = vadd.f32 %v2626_v54, %v2565_v48  ;;  %v6086_v12 = vadd.f32 %v2627_v43, %v2566_v9  ;;  %v6090_v35 = vld [vmem:[#allocation2 + $0x69] sm:$0xff]  ;;  %v6108_v30 = vld [vmem:[#allocation2 + $0x31] sm:$0xff] }
 0x2a6   : > { %v6088_v1 = vadd.f32 %v2628_v17, %v2567_v53  ;;  %7990 = vst [vmem:[#allocation11_spill] sm:$0xff] %v6090_v35  ;;  %v6094_v41 = vld [vmem:[#allocation2 + $0x89] sm:$0xff]  ;;  %v6098_v23 = vadd.f32 %v2629_v34, %v2568_v20  ;;  %v6100_v11 = vadd.f32 %v2630_v52, %v2569_v46  ;;  %v6102_v48 = vadd.f32 %v2631_v61, %v2570_v4  ;;  %v6124_v4 = vld [vmem:[#allocation2 + $0xb1] sm:$0xff] }
 0x2a7   : > { %7991 = vst [vmem:[#allocation38_spill] sm:$0xff] %v6092_v37  ;;  %v6104_v9 = vadd.f32 %v2632_v49, %v2571_v26  ;;  %v6106_v53 = vld [vmem:[#allocation2 + $0x29] sm:$0xff]  ;;  %v6113_v27 = vadd.f32 %v2633_v10, %v6010_v28  ;;  %v6116_v36 = vadd.f32 %v2634_v7, %v6012_v39  ;;  %v6119_v20 = vadd.f32 %v2635_v0, %v6014_v42  ;;  %v6128_v58 = vld [vmem:[#allocation2 + $0xd1] sm:$0xff]  ;;  %v8002_v28 = vld [vmem:[#allocation20_spill] sm:$0xff] }
 0x2a8   : > { %7992 = vst [vmem:[#allocation12_spill] sm:$0xff] %v6094_v41  ;;  %v6122_v46 = vadd.f32 %v2635_v0, %v6016_v63  ;;  %v6126_v26 = vld [vmem:[#allocation2 + $0xc9] sm:$0xff]  ;;  %v6131_v50 = vadd.f32 %v2635_v0, %v6018_v56  ;;  %v6134_v59 = vadd.f32 %v2635_v0, %v8002_v28  ;;  %v6138_v18 = vld [vmem:[#allocation2 + $0xf1] sm:$0xff]  ;;  %v2772_v63 = vmul.f32 %v6068_v32, %v2667_v31 }
 0x2a9   : > { %7994 = vst [vmem:[#allocation8_spill] sm:$0xff] %v6106_v53  ;;  %v6136_v39 = vld [vmem:[#allocation2 + $0xe9] sm:$0xff]  ;;  %v2773_v22 = vmul.f32 %v6068_v32, %v2668_v19  ;;  %v6144_v40 = vld [vmem:[#allocation2 + $0x111] sm:$0xff]  ;;  %v2774_v56 = vmul.f32 %v6068_v32, %v6106_v53  ;;  %v2775_v54 = vmul.f32 %v6068_v32, %v6108_v30  ;;  %v2776_v43 = vmul.f32 %v6068_v32, %v6078_v33 }
 0x2aa   : > { %7995 = vst [vmem:[#allocation17_spill] sm:$0xff] %v6108_v30  ;;  %v6140_v42 = vld [vmem:[#allocation2 + $0x109] sm:$0xff]  ;;  %v6148_v14 = vld [vmem:[#allocation2 + $0x131] sm:$0xff]  ;;  %v2777_v17 = vmul.f32 %v6068_v32, %v6080_v45  ;;  %v2778_v49 = vmul.f32 %v6068_v32, %v6090_v35  ;;  %v2779_v10 = vmul.f32 %v6068_v32, %v6092_v37  ;;  %v2780_v7 = vmul.f32 %v6068_v32, %v6094_v41 }
 0x2ab   : > { %7996 = vst [vmem:[#allocation16_spill] sm:$0xff] %v6110_v21  ;;  %v6146_v51 = vld [vmem:[#allocation2 + $0x129] sm:$0xff]  ;;  %v6160_v52 = vld [vmem:[#allocation2 + $0x151] sm:$0xff]  ;;  %v2781_v6 = vmul.f32 %v6068_v32, %v6096_v16  ;;  %v2782_v28 = vmul.f32 %v6068_v32, %v6110_v21  ;;  %v2783_v35 = vmul.f32 %v6068_v32, %v6124_v4  ;;  %v2784_v37 = vmul.f32 %v6068_v32, %v6126_v26 }
 0x2ac   : > { %7997 = vst [vmem:[#allocation13_spill] sm:$0xff] %v6122_v46  ;;  %v6158_v34 = vld [vmem:[#allocation2 + $0x149] sm:$0xff]  ;;  %v6172_v0 = vld [vmem:[#allocation2 + $0x171] sm:$0xff]  ;;  %v2785_v41 = vmul.f32 %v6068_v32, %v6128_v58  ;;  %v2786_v33 = vmul.f32 %v6068_v32, %v6136_v39  ;;  %v2787_v30 = vmul.f32 %v6068_v32, %v6138_v18  ;;  %v2788_v21 = vmul.f32 %v6068_v32, %v6140_v42 }
 0x2ad   : > { %7998 = vst [vmem:[#allocation22_spill] sm:$0xff] %v6124_v4  ;;  %v6162_v61 = vld [vmem:[#allocation2 + $0x169] sm:$0xff]  ;;  %v6176_v19 = vld [vmem:[#allocation2 + $0x191] sm:$0xff]  ;;  %v2789_v4 = vmul.f32 %v6068_v32, %v6144_v40  ;;  %v2792_v53 = vmul.f32 %v6068_v32, %v6158_v34  ;;  %v2808_v46 = vadd.f32 %v2780_v7, %v6063_v2 }
 0x2ae   : > { %7999 = vst [vmem:[#allocation14_spill] sm:$0xff] %v6126_v26  ;;  %v6174_v31 = vld [vmem:[#allocation2 + $0x189] sm:$0xff]  ;;  %v6188_v16 = vld [vmem:[#allocation2 + $0x1b1] sm:$0xff]  ;;  %v2790_v26 = vmul.f32 %v6068_v32, %v6146_v51 }
 0x2af   : > { %8000 = vst [vmem:[#allocation23_spill] sm:$0xff] %v6128_v58  ;;  %v6186_v45 = vld [vmem:[#allocation2 + $0x1a9] sm:$0xff]  ;;  %v2791_v58 = vmul.f32 %v6068_v32, %v6148_v14 }
 0x2b0   : > { %8001 = vst [vmem:[#allocation18_spill] sm:$0xff] %v6131_v50  ;;  %v2805_v50 = vadd.f32 %v2777_v17, %v6057_v15  ;;  %v2815_v15 = vadd.f32 %v2787_v30, %v6084_v29  ;;  %v2818_v2 = vadd.f32 %v2790_v26, %v6098_v23  ;;  %v8026_v26 = vld [vmem:[#allocation38_spill] sm:$0xff] }
 0x2b1   : > { %8003 = vst [vmem:[#allocation29_spill] sm:$0xff] %v6134_v59  ;;  %v2802_v59 = vadd.f32 %v2774_v56, %v6051_v13  ;;  %v2812_v13 = vadd.f32 %v2784_v37, %v6074_v57  ;;  %v8022_v30 = vld [vmem:[#allocation17_spill] sm:$0xff] }
 0x2b2   : > { %8004 = vst [vmem:[#allocation19_spill] sm:$0xff] %v6136_v39  ;;  %v2793_v39 = vmul.f32 %v6068_v32, %v6160_v52  ;;  %v6261_v7 = vld [vmem:[#allocation2 + $0x1c9] sm:$0xff] }
 0x2b3   : > { %8005 = vst [vmem:[#allocation31_spill] sm:$0xff] %v6138_v18  ;;  %v2794_v18 = vmul.f32 %v6068_v32, %v6162_v61 }
 0x2b4   : > { %8006 = vst [vmem:[#allocation27_spill] sm:$0xff] %v6140_v42  ;;  %v2795_v42 = vmul.f32 %v6068_v32, %v6172_v0 }
 0x2b5   : > { %8007 = vst [vmem:[#allocation34_spill] sm:$0xff] %v6144_v40  ;;  %v2796_v40 = vmul.f32 %v6068_v32, %v6174_v31  ;;  %v2822_v57 = vadd.f32 %v2794_v18, %v6113_v27 }
 0x2b6   : > { %8008 = vst [vmem:[#allocation35_spill] sm:$0xff] %v6146_v51  ;;  %v2797_v51 = vmul.f32 %v6068_v32, %v6176_v19 }
 0x2b7   : > { %8009 = vst [vmem:[#allocation37_spill] sm:$0xff] %v6148_v14  ;;  %v2798_v14 = vmul.f32 %v6068_v32, %v6186_v45 }
 0x2b8   : > { %8010 = vst [vmem:[#allocation39_spill] sm:$0xff] %v6158_v34  ;;  %v2799_v34 = vmul.f32 %v6068_v32, %v6188_v16  ;;  %v2809_v32 = vadd.f32 %v2781_v6, %v6065_v25  ;;  %v2819_v25 = vadd.f32 %v2791_v58, %v6100_v11  ;;  %v8020_v37 = vld [vmem:[#allocation29_spill] sm:$0xff]  ;;  %v8027_v58 = vld [vmem:[#allocation12_spill] sm:$0xff]  ;;  %v6263_v6 = vld [vmem:[#allocation2 + $0x1d1] sm:$0xff] }
 0x2b9   : > { %8011 = vst [vmem:[#allocation40_spill] sm:$0xff] %v6160_v52  ;;  %v2800_v52 = vadd.f32 %v2772_v63, %v6047_v5  ;;  %v2810_v5 = vadd.f32 %v2782_v28, %v6070_v47  ;;  %v4378_v63 = vld [vmem:[%s4576_s12 + $0x8] ss:$0 sm:$0xff]  ;;  %v2820_v47 = vadd.f32 %v2792_v53, %v6102_v48  ;;  %v8024_v53 = vld [vmem:[#allocation10_spill] sm:$0xff]  ;;  %v8033_v17 = vld [vmem:[#allocation19_spill] sm:$0xff] }
 0x2ba   : > { %8012 = vst [vmem:[#allocation41_spill] sm:$0xff] %v6162_v61  ;;  %v2801_v61 = vadd.f32 %v2773_v22, %v6049_v3  ;;  %v2811_v3 = vadd.f32 %v2783_v35, %v6072_v24  ;;  %v2821_v24 = vadd.f32 %v2793_v39, %v6104_v9  ;;  %v8019_v35 = vld [vmem:[#allocation18_spill] sm:$0xff]  ;;  %v2862_v11 = vmul.f32 %v4378_v63, %v8022_v30  ;;  %v8028_v39 = vld [vmem:[#allocation9_spill] sm:$0xff] }
 0x2bb   : > { %8013 = vst [vmem:[#allocation24_spill] sm:$0xff] %v6172_v0  ;;  %v2803_v0 = vadd.f32 %v2775_v54, %v6053_v60  ;;  %v2813_v60 = vadd.f32 %v2785_v41, %v6076_v62  ;;  %v2823_v62 = vadd.f32 %v2795_v42, %v6116_v36  ;;  %v8021_v41 = vld [vmem:[#allocation8_spill] sm:$0xff]  ;;  %v2864_v9 = vmul.f32 %v4378_v63, %v8024_v53  ;;  %v8032_v54 = vld [vmem:[#allocation23_spill] sm:$0xff] }
 0x2bc   : > { %8014 = vst [vmem:[#allocation25_spill] sm:$0xff] %v6174_v31  ;;  %v2804_v31 = vadd.f32 %v2776_v43, %v6055_v44  ;;  %v2814_v44 = vadd.f32 %v2786_v33, %v6082_v8  ;;  %v2824_v33 = vadd.f32 %v2796_v40, %v6119_v20  ;;  %v8018_v8 = vld [vmem:[#allocation13_spill] sm:$0xff]  ;;  %v2861_v23 = vmul.f32 %v4378_v63, %v8021_v41  ;;  %v8029_v42 = vld [vmem:[#allocation16_spill] sm:$0xff]  ;;  %v8030_v40 = vld [vmem:[#allocation22_spill] sm:$0xff] }
 0x2bd   : > { %8015 = vst [vmem:[#allocation26_spill] sm:$0xff] %v6176_v19  ;;  %v2806_v19 = vadd.f32 %v2778_v49, %v6059_v55  ;;  %v2816_v55 = vadd.f32 %v2788_v21, %v6086_v12  ;;  %v2825_v29 = vadd.f32 %v2797_v51, %v8018_v8  ;;  %v2826_v12 = vadd.f32 %v2798_v14, %v8019_v35  ;;  %v8023_v21 = vld [vmem:[#allocation21_spill] sm:$0xff]  ;;  %v8031_v14 = vld [vmem:[#allocation14_spill] sm:$0xff]  ;;  %v8034_v49 = vld [vmem:[#allocation31_spill] sm:$0xff] }
 0x2be   : > { %8016 = vst [vmem:[#allocation28_spill] sm:$0xff] %v6186_v45  ;;  %v2807_v45 = vadd.f32 %v2779_v10, %v6061_v38  ;;  %v2817_v38 = vadd.f32 %v2789_v4, %v6088_v1  ;;  %v2827_v1 = vadd.f32 %v2799_v34, %v8020_v37  ;;  %v2863_v48 = vmul.f32 %v4378_v63, %v8023_v21  ;;  %v8025_v4 = vld [vmem:[#allocation11_spill] sm:$0xff]  ;;  %v8038_v35 = vld [vmem:[#allocation34_spill] sm:$0xff] }
 0x2bf   : > { %8017 = vst [vmem:[#allocation30_spill] sm:$0xff] %v6188_v16  ;;  %v2865_v27 = vmul.f32 %v4378_v63, %v8025_v4  ;;  %v2866_v36 = vmul.f32 %v4378_v63, %v8026_v26  ;;  %v2867_v20 = vmul.f32 %v4378_v63, %v8027_v58  ;;  %v2868_v18 = vmul.f32 %v4378_v63, %v8028_v39  ;;  %v8037_v28 = vld [vmem:[#allocation27_spill] sm:$0xff] }
 0x2c0   : > { %v2869_v22 = vmul.f32 %v4378_v63, %v8029_v42  ;;  %v2870_v51 = vmul.f32 %v4378_v63, %v8030_v40  ;;  %v2871_v56 = vmul.f32 %v4378_v63, %v8031_v14  ;;  %v2872_v43 = vmul.f32 %v4378_v63, %v8032_v54  ;;  %8035 = vst [vmem:[#allocation33_spill] sm:$0xff] %v6261_v7  ;;  %v8039_v41 = vld [vmem:[#allocation35_spill] sm:$0xff]  ;;  %v8040_v42 = vld [vmem:[#allocation37_spill] sm:$0xff]  ;;  %v8042_v58 = vld [vmem:[#allocation40_spill] sm:$0xff] }
 0x2c1   : > { %v2873_v34 = vmul.f32 %v4378_v63, %v8033_v17  ;;  %v2874_v10 = vmul.f32 %v4378_v63, %v8034_v49  ;;  %8036 = vst [vmem:[#allocation36_spill] sm:$0xff] %v6263_v6  ;;  %v2875_v8 = vmul.f32 %v4378_v63, %v8037_v28  ;;  %v2876_v37 = vmul.f32 %v4378_v63, %v8038_v35  ;;  %v8041_v39 = vld [vmem:[#allocation39_spill] sm:$0xff]  ;;  %v8043_v26 = vld [vmem:[#allocation41_spill] sm:$0xff] }
 0x2c2   : > { %v2877_v30 = vmul.f32 %v4378_v63, %v8039_v41  ;;  %v2878_v40 = vmul.f32 %v4378_v63, %v8040_v42  ;;  %v2879_v14 = vmul.f32 %v4378_v63, %v8041_v39  ;;  %v2880_v54 = vmul.f32 %v4378_v63, %v8042_v58  ;;  %v8044_v4 = vld [vmem:[#allocation24_spill] sm:$0xff] }
 0x2c3   : > { %v2881_v17 = vmul.f32 %v4378_v63, %v8043_v26  ;;  %v2882_v49 = vmul.f32 %v4378_v63, %v8044_v4  ;;  %v8045_v53 = vld [vmem:[#allocation25_spill] sm:$0xff]  ;;  %v2889_v4 = vadd.f32 %v2861_v23, %v2800_v52  ;;  %v2897_v23 = vadd.f32 %v2869_v22, %v2808_v46 }
 0x2c4   : > { %v2883_v21 = vmul.f32 %v4378_v63, %v8045_v53  ;;  %v8046_v7 = vld [vmem:[#allocation26_spill] sm:$0xff]  ;;  %v2890_v53 = vadd.f32 %v2862_v11, %v2801_v61  ;;  %v2898_v52 = vadd.f32 %v2870_v51, %v2809_v32  ;;  %v2899_v61 = vadd.f32 %v2871_v56, %v2810_v5  ;;  %v8051_v56 = vld [vmem:[#allocation21_spill] sm:$0xff] }
 0x2c5   : > { %v2884_v6 = vmul.f32 %v4378_v63, %v8046_v7  ;;  %v8047_v28 = vld [vmem:[#allocation28_spill] sm:$0xff]  ;;  %v2891_v7 = vadd.f32 %v2863_v48, %v2802_v59  ;;  %v4379_v11 = vld [vmem:[%s4576_s12 + $0xd] ss:$0 sm:$0xff]  ;;  %v2900_v48 = vadd.f32 %v2872_v43, %v2811_v3  ;;  %v2901_v59 = vadd.f32 %v2873_v34, %v2812_v13  ;;  %v8053_v34 = vld [vmem:[#allocation11_spill] sm:$0xff] }
 0x2c6   : > { %v2885_v16 = vmul.f32 %v4378_v63, %v8047_v28  ;;  %v8048_v35 = vld [vmem:[#allocation30_spill] sm:$0xff]  ;;  %v2892_v28 = vadd.f32 %v2864_v9, %v2803_v0  ;;  %v2902_v0 = vadd.f32 %v2874_v10, %v2813_v60  ;;  %v2903_v9 = vadd.f32 %v2875_v8, %v2814_v44 }
 0x2c7   : > { %v2886_v41 = vmul.f32 %v4378_v63, %v8048_v35  ;;  %v8049_v42 = vld [vmem:[#allocation33_spill] sm:$0xff]  ;;  %v2893_v35 = vadd.f32 %v2865_v27, %v2804_v31  ;;  %v2904_v27 = vadd.f32 %v2876_v37, %v2815_v15  ;;  %v2905_v31 = vadd.f32 %v2877_v30, %v2816_v55  ;;  %v8052_v43 = vld [vmem:[#allocation10_spill] sm:$0xff]  ;;  %v8055_v55 = vld [vmem:[#allocation12_spill] sm:$0xff] }
 0x2c8   : > { %v2887_v39 = vmul.f32 %v4378_v63, %v8049_v42  ;;  %v8050_v58 = vld [vmem:[#allocation36_spill] sm:$0xff]  ;;  %v2894_v42 = vadd.f32 %v2866_v36, %v2805_v50  ;;  %v2906_v36 = vadd.f32 %v2878_v40, %v2817_v38  ;;  %v2907_v50 = vadd.f32 %v2879_v14, %v2818_v2  ;;  %v8054_v44 = vld [vmem:[#allocation38_spill] sm:$0xff]  ;;  %v8056_v2 = vld [vmem:[#allocation9_spill] sm:$0xff] }
 0x2c9   : > { %v2888_v26 = vmul.f32 %v4378_v63, %v8050_v58  ;;  %v2895_v58 = vadd.f32 %v2867_v20, %v2806_v19  ;;  %v2896_v63 = vadd.f32 %v2868_v18, %v2807_v45  ;;  %v2908_v19 = vadd.f32 %v2880_v54, %v2819_v25  ;;  %v8063_v40 = vld [vmem:[#allocation27_spill] sm:$0xff]  ;;  %v8064_v54 = vld [vmem:[#allocation34_spill] sm:$0xff]  ;;  %v8068_v37 = vld [vmem:[#allocation37_spill] sm:$0xff] }
 0x2ca   : > { %v2909_v20 = vadd.f32 %v2881_v17, %v2820_v47  ;;  %v2910_v18 = vadd.f32 %v2882_v49, %v2821_v24  ;;  %v2911_v45 = vadd.f32 %v2883_v21, %v2822_v57  ;;  %v2912_v22 = vadd.f32 %v2884_v6, %v2823_v62  ;;  %v8057_v47 = vld [vmem:[#allocation16_spill] sm:$0xff]  ;;  %v8058_v57 = vld [vmem:[#allocation22_spill] sm:$0xff]  ;;  %v8067_v6 = vld [vmem:[#allocation35_spill] sm:$0xff] }
 0x2cb   : > { %v2913_v46 = vadd.f32 %v2885_v16, %v2824_v33  ;;  %v2914_v32 = vadd.f32 %v2886_v41, %v2825_v29  ;;  %v2915_v51 = vadd.f32 %v2887_v39, %v2826_v12  ;;  %v2916_v5 = vadd.f32 %v2888_v26, %v2827_v1  ;;  %v8059_v16 = vld [vmem:[#allocation14_spill] sm:$0xff]  ;;  %v8060_v29 = vld [vmem:[#allocation23_spill] sm:$0xff] }
 0x2cc   : > { %v2950_v3 = vmul.f32 %v4379_v11, %v8051_v56  ;;  %v2951_v13 = vmul.f32 %v4379_v11, %v8052_v43  ;;  %v2952_v60 = vmul.f32 %v4379_v11, %v8053_v34  ;;  %v2953_v15 = vmul.f32 %v4379_v11, %v8054_v44  ;;  %v8061_v1 = vld [vmem:[#allocation19_spill] sm:$0xff]  ;;  %v6294_v49 = vld [vmem:[#allocation2 + $0x1e9] sm:$0xff]  ;;  %v8070_v43 = vld [vmem:[#allocation40_spill] sm:$0xff] }
 0x2cd   : > { %v2954_v38 = vmul.f32 %v4379_v11, %v8055_v55  ;;  %v2955_v25 = vmul.f32 %v4379_v11, %v8056_v2  ;;  %v2956_v24 = vmul.f32 %v4379_v11, %v8057_v47  ;;  %v2957_v62 = vmul.f32 %v4379_v11, %v8058_v57  ;;  %v8062_v26 = vld [vmem:[#allocation31_spill] sm:$0xff]  ;;  %8065 = vst [vmem:[#allocation15_spill] sm:$0xff] %v6294_v49  ;;  %v8072_v57 = vld [vmem:[#allocation24_spill] sm:$0xff]  ;;  %v8073_v47 = vld [vmem:[#allocation25_spill] sm:$0xff] }
 0x2ce   : > { %v2958_v33 = vmul.f32 %v4379_v11, %v8059_v16  ;;  %v2959_v12 = vmul.f32 %v4379_v11, %v8060_v29  ;;  %v2960_v21 = vmul.f32 %v4379_v11, %v8061_v1  ;;  %v2961_v39 = vmul.f32 %v4379_v11, %v8062_v26  ;;  %v6296_v10 = vld [vmem:[#allocation2 + $0x1f1] sm:$0xff]  ;;  %v8071_v16 = vld [vmem:[#allocation41_spill] sm:$0xff]  ;;  %v8075_v55 = vld [vmem:[#allocation28_spill] sm:$0xff] }
 0x2cf   : > { %v2962_v14 = vmul.f32 %v4379_v11, %v8063_v40  ;;  %v2963_v17 = vmul.f32 %v4379_v11, %v8064_v54  ;;  %8066 = vst [vmem:[#allocation32_spill] sm:$0xff] %v6296_v10  ;;  %v2964_v8 = vmul.f32 %v4379_v11, %v8067_v6  ;;  %v2965_v41 = vmul.f32 %v4379_v11, %v8068_v37  ;;  %v8069_v30 = vld [vmem:[#allocation39_spill] sm:$0xff]  ;;  %v8074_v2 = vld [vmem:[#allocation26_spill] sm:$0xff]  ;;  %v8077_v6 = vld [vmem:[#allocation33_spill] sm:$0xff] }
 0x2d0   : > { %v2966_v56 = vmul.f32 %v4379_v11, %v8069_v30  ;;  %v2967_v29 = vmul.f32 %v4379_v11, %v8070_v43  ;;  %v2968_v1 = vmul.f32 %v4379_v11, %v8071_v16  ;;  %v2969_v26 = vmul.f32 %v4379_v11, %v8072_v57  ;;  %v8076_v34 = vld [vmem:[#allocation30_spill] sm:$0xff]  ;;  %v8078_v37 = vld [vmem:[#allocation36_spill] sm:$0xff] }
 0x2d1   : > { %v2970_v40 = vmul.f32 %v4379_v11, %v8073_v47  ;;  %v2971_v54 = vmul.f32 %v4379_v11, %v8074_v2  ;;  %v2972_v44 = vmul.f32 %v4379_v11, %v8075_v55  ;;  %v2973_v10 = vmul.f32 %v4379_v11, %v8076_v34 }
 0x2d2   : > { %v2974_v49 = vmul.f32 %v4379_v11, %v8077_v6  ;;  %v2975_v30 = vmul.f32 %v4379_v11, %v8078_v37  ;;  %v2978_v2 = vadd.f32 %v2950_v3, %v2889_v4  ;;  %v2979_v55 = vadd.f32 %v2951_v13, %v2890_v53  ;;  %v4380_v13 = vld [vmem:[%s4576_s12 + $0x12] ss:$0 sm:$0xff] }
 0x2d3   : > { %v2980_v34 = vadd.f32 %v2952_v60, %v2891_v7  ;;  %v2981_v6 = vadd.f32 %v2953_v15, %v2892_v28  ;;  %v2982_v37 = vadd.f32 %v2954_v38, %v2893_v35  ;;  %v2986_v3 = vadd.f32 %v2958_v33, %v2897_v23 }
 0x2d4   : > { %v8079_v43 = vld [vmem:[#allocation15_spill] sm:$0xff]  ;;  %v2987_v4 = vadd.f32 %v2959_v12, %v2898_v52  ;;  %v2988_v53 = vadd.f32 %v2960_v21, %v2899_v61  ;;  %v2989_v7 = vadd.f32 %v2961_v39, %v2900_v48  ;;  %v2990_v60 = vadd.f32 %v2962_v14, %v2901_v59  ;;  %v8082_v48 = vld [vmem:[#allocation38_spill] sm:$0xff]  ;;  %v8083_v59 = vld [vmem:[#allocation12_spill] sm:$0xff] }
 0x2d5   : > { %v2976_v16 = vmul.f32 %v4379_v11, %v8079_v43  ;;  %v2983_v43 = vadd.f32 %v2955_v25, %v2894_v42  ;;  %v2991_v15 = vadd.f32 %v2963_v17, %v2902_v0  ;;  %v2992_v28 = vadd.f32 %v2964_v8, %v2903_v9  ;;  %v8081_v61 = vld [vmem:[#allocation11_spill] sm:$0xff]  ;;  %v8084_v9 = vld [vmem:[#allocation9_spill] sm:$0xff] }
 0x2d6   : > { %v8080_v57 = vld [vmem:[#allocation32_spill] sm:$0xff]  ;;  %v2993_v35 = vadd.f32 %v2965_v41, %v2904_v27  ;;  %v2994_v38 = vadd.f32 %v2966_v56, %v2905_v31  ;;  %v2995_v25 = vadd.f32 %v2967_v29, %v2906_v36  ;;  %v2996_v42 = vadd.f32 %v2968_v1, %v2907_v50  ;;  %v8086_v50 = vld [vmem:[#allocation22_spill] sm:$0xff]  ;;  %v8093_v1 = vld [vmem:[#allocation35_spill] sm:$0xff] }
 0x2d7   : > { %v2977_v47 = vmul.f32 %v4379_v11, %v8080_v57  ;;  %v2984_v11 = vadd.f32 %v2956_v24, %v2895_v58  ;;  %v2985_v57 = vadd.f32 %v2957_v62, %v2896_v63  ;;  %v2997_v24 = vadd.f32 %v2969_v26, %v2908_v19  ;;  %v8085_v31 = vld [vmem:[#allocation16_spill] sm:$0xff]  ;;  %v6327_v17 = vld [vmem:[#allocation2 + $0x209] sm:$0xff] }
 0x2d8   : > { %v2998_v58 = vadd.f32 %v2970_v40, %v2909_v20  ;;  %v2999_v62 = vadd.f32 %v2971_v54, %v2910_v18  ;;  %v3000_v63 = vadd.f32 %v2972_v44, %v2911_v45  ;;  %v3001_v23 = vadd.f32 %v2973_v10, %v2912_v22  ;;  %v8087_v20 = vld [vmem:[#allocation14_spill] sm:$0xff]  ;;  %v8088_v45 = vld [vmem:[#allocation23_spill] sm:$0xff]  ;;  %v8094_v40 = vld [vmem:[#allocation37_spill] sm:$0xff]  ;;  %8095 = vst [vmem:[#allocation20_spill] sm:$0xff] %v6327_v17 }
 0x2d9   : > { %v3002_v33 = vadd.f32 %v2974_v49, %v2913_v46  ;;  %v3003_v12 = vadd.f32 %v2975_v30, %v2914_v32  ;;  %v3004_v52 = vadd.f32 %v2976_v16, %v2915_v51  ;;  %v3005_v21 = vadd.f32 %v2977_v47, %v2916_v5  ;;  %v8089_v46 = vld [vmem:[#allocation19_spill] sm:$0xff]  ;;  %v8092_v16 = vld [vmem:[#allocation34_spill] sm:$0xff]  ;;  %v8098_v41 = vld [vmem:[#allocation40_spill] sm:$0xff] }
 0x2da   : > { %v3039_v39 = vmul.f32 %v4380_v13, %v8081_v61  ;;  %v3040_v14 = vmul.f32 %v4380_v13, %v8082_v48  ;;  %v3041_v0 = vmul.f32 %v4380_v13, %v8083_v59  ;;  %v3042_v27 = vmul.f32 %v4380_v13, %v8084_v9  ;;  %v8090_v51 = vld [vmem:[#allocation31_spill] sm:$0xff]  ;;  %v8099_v56 = vld [vmem:[#allocation41_spill] sm:$0xff]  ;;  %v8100_v48 = vld [vmem:[#allocation24_spill] sm:$0xff] }
 0x2db   : > { %v3043_v36 = vmul.f32 %v4380_v13, %v8085_v31  ;;  %v3044_v19 = vmul.f32 %v4380_v13, %v8086_v50  ;;  %v3045_v18 = vmul.f32 %v4380_v13, %v8087_v20  ;;  %v3046_v22 = vmul.f32 %v4380_v13, %v8088_v45  ;;  %v8091_v44 = vld [vmem:[#allocation27_spill] sm:$0xff]  ;;  %v8102_v45 = vld [vmem:[#allocation26_spill] sm:$0xff]  ;;  %v8103_v20 = vld [vmem:[#allocation28_spill] sm:$0xff] }
 0x2dc   : > { %v3047_v32 = vmul.f32 %v4380_v13, %v8089_v46  ;;  %v3048_v5 = vmul.f32 %v4380_v13, %v8090_v51  ;;  %v3049_v47 = vmul.f32 %v4380_v13, %v8091_v44  ;;  %v3050_v29 = vmul.f32 %v4380_v13, %v8092_v16  ;;  %v6329_v49 = vld [vmem:[#allocation2 + $0x211] sm:$0xff]  ;;  %v8101_v46 = vld [vmem:[#allocation25_spill] sm:$0xff]  ;;  %v8106_v59 = vld [vmem:[#allocation36_spill] sm:$0xff] }
 0x2dd   : > { %v3051_v26 = vmul.f32 %v4380_v13, %v8093_v1  ;;  %v3052_v54 = vmul.f32 %v4380_v13, %v8094_v40  ;;  %8096 = vst [vmem:[#allocation13_spill] sm:$0xff] %v6329_v49  ;;  %v8097_v10 = vld [vmem:[#allocation39_spill] sm:$0xff]  ;;  %v3054_v30 = vmul.f32 %v4380_v13, %v8098_v41  ;;  %v3055_v61 = vmul.f32 %v4380_v13, %v8099_v56  ;;  %v8104_v50 = vld [vmem:[#allocation30_spill] sm:$0xff]  ;;  %v8105_v31 = vld [vmem:[#allocation33_spill] sm:$0xff] }
 0x2de   : > { %v3053_v8 = vmul.f32 %v4380_v13, %v8097_v10  ;;  %v3056_v51 = vmul.f32 %v4380_v13, %v8100_v48  ;;  %v3057_v44 = vmul.f32 %v4380_v13, %v8101_v46  ;;  %v3058_v16 = vmul.f32 %v4380_v13, %v8102_v45  ;;  %v8107_v10 = vld [vmem:[#allocation15_spill] sm:$0xff]  ;;  %v8108_v41 = vld [vmem:[#allocation32_spill] sm:$0xff] }
 0x2df   : > { %v3059_v1 = vmul.f32 %v4380_v13, %v8103_v20  ;;  %v3060_v40 = vmul.f32 %v4380_v13, %v8104_v50  ;;  %v3061_v9 = vmul.f32 %v4380_v13, %v8105_v31  ;;  %v3062_v49 = vmul.f32 %v4380_v13, %v8106_v59  ;;  %v8109_v48 = vld [vmem:[#allocation20_spill] sm:$0xff] }
 0x2e0   : > { %v3063_v17 = vmul.f32 %v4380_v13, %v8107_v10  ;;  %v3064_v56 = vmul.f32 %v4380_v13, %v8108_v41  ;;  %v3065_v46 = vmul.f32 %v4380_v13, %v8109_v48  ;;  %v3067_v50 = vadd.f32 %v3039_v39, %v2978_v2 }
 0x2e1   : > { %v3068_v31 = vadd.f32 %v3040_v14, %v2979_v55  ;;  %v3069_v59 = vadd.f32 %v3041_v0, %v2980_v34  ;;  %v3070_v10 = vadd.f32 %v3042_v27, %v2981_v6  ;;  %v3071_v41 = vadd.f32 %v3043_v36, %v2982_v37  ;;  %v4381_v14 = vld [vmem:[%s4576_s12 + $0x17] ss:$0 sm:$0xff] }
 0x2e2   : > { %v3072_v48 = vadd.f32 %v3044_v19, %v2983_v43  ;;  %v3075_v2 = vadd.f32 %v3047_v32, %v2986_v3  ;;  %v3076_v39 = vadd.f32 %v3048_v5, %v2987_v4  ;;  %v3077_v55 = vadd.f32 %v3049_v47, %v2988_v53  ;;  %v8126_v5 = vld [vmem:[#allocation35_spill] sm:$0xff]  ;;  %v8127_v47 = vld [vmem:[#allocation37_spill] sm:$0xff] }
 0x2e3   : > { %v3078_v0 = vadd.f32 %v3050_v29, %v2989_v7  ;;  %v3079_v34 = vadd.f32 %v3051_v26, %v2990_v60  ;;  %v3080_v6 = vadd.f32 %v3052_v54, %v2991_v15  ;;  %v3081_v27 = vadd.f32 %v3053_v8, %v2992_v28  ;;  %v8116_v15 = vld [vmem:[#allocation12_spill] sm:$0xff]  ;;  %v8128_v29 = vld [vmem:[#allocation39_spill] sm:$0xff]  ;;  %v2701_v54 = vld [vmem:[#allocation2 + $0x229] sm:$0xff] }
 0x2e4   : > { %v8110_v45 = vld [vmem:[#allocation13_spill] sm:$0xff]  ;;  %v3082_v36 = vadd.f32 %v3054_v30, %v2993_v35  ;;  %v3083_v37 = vadd.f32 %v3055_v61, %v2994_v38  ;;  %v3084_v19 = vadd.f32 %v3056_v51, %v2995_v25  ;;  %v6346_v43 = vadd.f32 %v3057_v44, %v2996_v42  ;;  %v8118_v25 = vld [vmem:[#allocation16_spill] sm:$0xff] }
 0x2e5   : > { %v3066_v20 = vmul.f32 %v4380_v13, %v8110_v45  ;;  %v3073_v13 = vadd.f32 %v3045_v18, %v2984_v11  ;;  %v3074_v45 = vadd.f32 %v3046_v22, %v2985_v57  ;;  %v6348_v11 = vadd.f32 %v3058_v16, %v2997_v24  ;;  %v8117_v35 = vld [vmem:[#allocation9_spill] sm:$0xff]  ;;  %v8119_v24 = vld [vmem:[#allocation22_spill] sm:$0xff]  ;;  %v8129_v26 = vld [vmem:[#allocation40_spill] sm:$0xff] }
 0x2e6   : > { %v6350_v18 = vadd.f32 %v3059_v1, %v2998_v58  ;;  %v6352_v22 = vadd.f32 %v3060_v40, %v2999_v62  ;;  %v6354_v57 = vadd.f32 %v3061_v9, %v3000_v63  ;;  %v6356_v3 = vadd.f32 %v3062_v49, %v3001_v23  ;;  %v8120_v62 = vld [vmem:[#allocation14_spill] sm:$0xff]  ;;  %v8121_v23 = vld [vmem:[#allocation23_spill] sm:$0xff]  ;;  %v8130_v49 = vld [vmem:[#allocation41_spill] sm:$0xff] }
 0x2e7   : > { %v6358_v4 = vadd.f32 %v3063_v17, %v3002_v33  ;;  %v6360_v53 = vadd.f32 %v3064_v56, %v3003_v12  ;;  %v6362_v7 = vadd.f32 %v3065_v46, %v3004_v52  ;;  %v6364_v60 = vadd.f32 %v3066_v20, %v3005_v21  ;;  %v8122_v33 = vld [vmem:[#allocation19_spill] sm:$0xff]  ;;  %v8125_v21 = vld [vmem:[#allocation34_spill] sm:$0xff]  ;;  %v8131_v30 = vld [vmem:[#allocation24_spill] sm:$0xff] }
 0x2e8   : > { %8111 = vst [vmem:[#allocation18_spill] sm:$0xff] %v6356_v3  ;;  %v3128_v28 = vmul.f32 %v4381_v14, %v8116_v15  ;;  %v3129_v38 = vmul.f32 %v4381_v14, %v8117_v35  ;;  %v3130_v42 = vmul.f32 %v4381_v14, %v8118_v25  ;;  %v3131_v58 = vmul.f32 %v4381_v14, %v8119_v24  ;;  %v8123_v12 = vld [vmem:[#allocation31_spill] sm:$0xff]  ;;  %v8132_v61 = vld [vmem:[#allocation25_spill] sm:$0xff]  ;;  %v8133_v35 = vld [vmem:[#allocation26_spill] sm:$0xff] }
 0x2e9   : > { %8112 = vst [vmem:[#allocation29_spill] sm:$0xff] %v6358_v4  ;;  %v3132_v63 = vmul.f32 %v4381_v14, %v8120_v62  ;;  %v3133_v9 = vmul.f32 %v4381_v14, %v8121_v23  ;;  %v3134_v32 = vmul.f32 %v4381_v14, %v8122_v33  ;;  %v3135_v51 = vmul.f32 %v4381_v14, %v8123_v12  ;;  %v8124_v52 = vld [vmem:[#allocation27_spill] sm:$0xff]  ;;  %v8134_v24 = vld [vmem:[#allocation28_spill] sm:$0xff]  ;;  %v8135_v23 = vld [vmem:[#allocation30_spill] sm:$0xff] }
 0x2ea   : > { %8113 = vst [vmem:[#allocation8_spill] sm:$0xff] %v6360_v53  ;;  %v3136_v46 = vmul.f32 %v4381_v14, %v8124_v52  ;;  %v3137_v20 = vmul.f32 %v4381_v14, %v8125_v21  ;;  %v3138_v44 = vmul.f32 %v4381_v14, %v8126_v5  ;;  %v3139_v16 = vmul.f32 %v4381_v14, %v8127_v47  ;;  %v2702_v17 = vld [vmem:[#allocation2 + $0x231] sm:$0xff]  ;;  %v8136_v12 = vld [vmem:[#allocation33_spill] sm:$0xff]  ;;  %v8137_v21 = vld [vmem:[#allocation36_spill] sm:$0xff] }
 0x2eb   : > { %8114 = vst [vmem:[#allocation17_spill] sm:$0xff] %v6362_v7  ;;  %v3140_v1 = vmul.f32 %v4381_v14, %v8128_v29  ;;  %v3141_v40 = vmul.f32 %v4381_v14, %v8129_v26  ;;  %v3142_v8 = vmul.f32 %v4381_v14, %v8130_v49  ;;  %v3143_v56 = vmul.f32 %v4381_v14, %v8131_v30  ;;  %v8138_v47 = vld [vmem:[#allocation15_spill] sm:$0xff]  ;;  %v8139_v26 = vld [vmem:[#allocation32_spill] sm:$0xff]  ;;  %v8141_v30 = vld [vmem:[#allocation13_spill] sm:$0xff] }
 0x2ec   : > { %8115 = vst [vmem:[#allocation21_spill] sm:$0xff] %v6364_v60  ;;  %v3144_v15 = vmul.f32 %v4381_v14, %v8132_v61  ;;  %v3145_v25 = vmul.f32 %v4381_v14, %v8133_v35  ;;  %v3146_v62 = vmul.f32 %v4381_v14, %v8134_v24  ;;  %v3147_v33 = vmul.f32 %v4381_v14, %v8135_v23  ;;  %v8140_v49 = vld [vmem:[#allocation20_spill] sm:$0xff] }
 0x2ed   : > { %v3148_v52 = vmul.f32 %v4381_v14, %v8136_v12  ;;  %v3149_v5 = vmul.f32 %v4381_v14, %v8137_v21  ;;  %v3150_v29 = vmul.f32 %v4381_v14, %v8138_v47  ;;  %v3151_v60 = vmul.f32 %v4381_v14, %v8139_v26 }
 0x2ee   : > { %v3152_v7 = vmul.f32 %v4381_v14, %v8140_v49  ;;  %v3153_v53 = vmul.f32 %v4381_v14, %v8141_v30  ;;  %v3154_v61 = vmul.f32 %v4381_v14, %v2701_v54  ;;  %v3155_v4 = vmul.f32 %v4381_v14, %v2702_v17  ;;  %v6487_v17 = vld [vmem:[#allocation2 + $0xf2] sm:$0xff]  ;;  %v6511_v30 = vld [vmem:[#allocation2 + $0x16a] sm:$0xff] }
 0x2ef   : > { %v6392_v35 = vadd.f32 %v3128_v28, %v3067_v50  ;;  %v6394_v24 = vadd.f32 %v3129_v38, %v3068_v31  ;;  %v6396_v23 = vadd.f32 %v3130_v42, %v3069_v59  ;;  %v6398_v12 = vadd.f32 %v3131_v58, %v3070_v10  ;;  %v6413_v50 = vld [vmem:[%s4576_s12 + $0x4] ss:$0 sm:$0xff]  ;;  %v3185_v28 = vld [vmem:[#allocation2 + $0x12] sm:$0xff]  ;;  %8161 = vst [vmem:[#allocation37_spill] sm:$0xff] %v6487_v17 }
 0x2f0   : > { %v6400_v21 = vadd.f32 %v3132_v63, %v3071_v41  ;;  %v6402_v47 = vadd.f32 %v3133_v9, %v3072_v48  ;;  %v6404_v3 = vadd.f32 %v3134_v32, %v3073_v13  ;;  %v6406_v26 = vadd.f32 %v3135_v51, %v3074_v45  ;;  %v6423_v48 = vld [vmem:[#allocation2 + $0x4a] sm:$0xff]  ;;  %v6425_v13 = vld [vmem:[#allocation2 + $0x52] sm:$0xff]  ;;  %8168 = vst [vmem:[#allocation28_spill] sm:$0xff] %v6511_v30 }
 0x2f1   : > { %v6408_v49 = vadd.f32 %v3136_v46, %v3075_v2  ;;  %v6410_v54 = vadd.f32 %v3137_v20, %v3076_v39  ;;  %v6415_v31 = vadd.f32 %v3138_v44, %v3077_v55  ;;  %v6417_v59 = vadd.f32 %v3139_v16, %v3078_v0  ;;  %8142 = vst [vmem:[#allocation10_spill] sm:$0xff] %v6423_v48  ;;  %v3184_v55 = vld [vmem:[#allocation2 + $0xa] sm:$0xff]  ;;  %v6441_v38 = vld [vmem:[#allocation2 + $0x92] sm:$0xff] }
 0x2f2   : > { %v6419_v10 = vadd.f32 %v3140_v1, %v3079_v34  ;;  %v6421_v41 = vadd.f32 %v3141_v40, %v3080_v6  ;;  %8143 = vst [vmem:[#allocation11_spill] sm:$0xff] %v6425_v13  ;;  %v6427_v45 = vadd.f32 %v3142_v8, %v3081_v27  ;;  %v6429_v2 = vadd.f32 %v3143_v56, %v3082_v36  ;;  %v6435_v0 = vld [vmem:[#allocation2 + $0x6a] sm:$0xff]  ;;  %v6437_v34 = vld [vmem:[#allocation2 + $0x72] sm:$0xff]  ;;  %v8156_v16 = vld [vmem:[#allocation17_spill] sm:$0xff] }
 0x2f3   : > { %v6431_v39 = vadd.f32 %v3144_v15, %v3083_v37  ;;  %v6433_v14 = vadd.f32 %v3145_v25, %v3084_v19  ;;  %8144 = vst [vmem:[#allocation38_spill] sm:$0xff] %v6435_v0  ;;  %v6439_v6 = vld [vmem:[#allocation2 + $0x8a] sm:$0xff]  ;;  %v6444_v42 = vadd.f32 %v3146_v62, %v6346_v43  ;;  %v6447_v27 = vadd.f32 %v3147_v33, %v6348_v11  ;;  %v6457_v58 = vld [vmem:[#allocation2 + $0x32] sm:$0xff]  ;;  %v8151_v11 = vld [vmem:[#allocation29_spill] sm:$0xff] }
 0x2f4   : > { %8145 = vst [vmem:[#allocation12_spill] sm:$0xff] %v6437_v34  ;;  %v6450_v36 = vadd.f32 %v3148_v52, %v6350_v18  ;;  %v6453_v37 = vadd.f32 %v3149_v5, %v6352_v22  ;;  %v6455_v19 = vld [vmem:[#allocation2 + $0x2a] sm:$0xff]  ;;  %v6462_v9 = vadd.f32 %v3150_v29, %v6354_v57  ;;  %v6468_v51 = vadd.f32 %v3152_v7, %v8151_v11  ;;  %v8152_v18 = vld [vmem:[#allocation8_spill] sm:$0xff]  ;;  %v6473_v22 = vld [vmem:[#allocation2 + $0xb2] sm:$0xff] }
 0x2f5   : > { %8146 = vst [vmem:[#allocation9_spill] sm:$0xff] %v6439_v6  ;;  %v6459_v63 = vld [vmem:[#allocation2 + $0xaa] sm:$0xff]  ;;  %v6471_v46 = vadd.f32 %v3153_v53, %v8152_v18  ;;  %v6477_v44 = vld [vmem:[#allocation2 + $0xd2] sm:$0xff]  ;;  %v6480_v1 = vadd.f32 %v3154_v61, %v8156_v16  ;;  %v8158_v57 = vld [vmem:[#allocation21_spill] sm:$0xff]  ;;  %v3289_v53 = vmul.f32 %v6413_v50, %v3184_v55  ;;  %v3290_v8 = vmul.f32 %v6413_v50, %v3185_v28 }
 0x2f6   : > { %8147 = vst [vmem:[#allocation16_spill] sm:$0xff] %v6441_v38  ;;  %v8150_v43 = vld [vmem:[#allocation18_spill] sm:$0xff]  ;;  %v6483_v40 = vadd.f32 %v3155_v4, %v8158_v57  ;;  %v6493_v56 = vld [vmem:[#allocation2 + $0x112] sm:$0xff]  ;;  %v3291_v4 = vmul.f32 %v6413_v50, %v6455_v19  ;;  %v3292_v62 = vmul.f32 %v6413_v50, %v6457_v58  ;;  %v3293_v33 = vmul.f32 %v6413_v50, %v6423_v48 }
 0x2f7   : > { %8148 = vst [vmem:[#allocation22_spill] sm:$0xff] %v6455_v19  ;;  %v6465_v32 = vadd.f32 %v3151_v60, %v8150_v43  ;;  %v6475_v20 = vld [vmem:[#allocation2 + $0xca] sm:$0xff]  ;;  %v6497_v25 = vld [vmem:[#allocation2 + $0x132] sm:$0xff]  ;;  %v3294_v52 = vmul.f32 %v6413_v50, %v6425_v13  ;;  %v3295_v61 = vmul.f32 %v6413_v50, %v6435_v0  ;;  %v3296_v55 = vmul.f32 %v6413_v50, %v6437_v34 }
 0x2f8   : > { %8149 = vst [vmem:[#allocation14_spill] sm:$0xff] %v6459_v63  ;;  %v6485_v60 = vld [vmem:[#allocation2 + $0xea] sm:$0xff]  ;;  %v6509_v29 = vld [vmem:[#allocation2 + $0x152] sm:$0xff]  ;;  %v3297_v28 = vmul.f32 %v6413_v50, %v6439_v6  ;;  %v3298_v43 = vmul.f32 %v6413_v50, %v6441_v38  ;;  %v3299_v57 = vmul.f32 %v6413_v50, %v6459_v63  ;;  %v3300_v0 = vmul.f32 %v6413_v50, %v6473_v22 }
 0x2f9   : > { %8153 = vst [vmem:[#allocation23_spill] sm:$0xff] %v6473_v22  ;;  %v6489_v7 = vld [vmem:[#allocation2 + $0x10a] sm:$0xff]  ;;  %v6521_v11 = vld [vmem:[#allocation2 + $0x172] sm:$0xff]  ;;  %v3301_v34 = vmul.f32 %v6413_v50, %v6475_v20  ;;  %v3302_v6 = vmul.f32 %v6413_v50, %v6477_v44  ;;  %v3303_v48 = vmul.f32 %v6413_v50, %v6485_v60  ;;  %v3304_v19 = vmul.f32 %v6413_v50, %v6487_v17 }
 0x2fa   : > { %8154 = vst [vmem:[#allocation19_spill] sm:$0xff] %v6475_v20  ;;  %v6495_v15 = vld [vmem:[#allocation2 + $0x12a] sm:$0xff]  ;;  %v6525_v16 = vld [vmem:[#allocation2 + $0x192] sm:$0xff]  ;;  %v3305_v63 = vmul.f32 %v6413_v50, %v6489_v7  ;;  %v3306_v22 = vmul.f32 %v6413_v50, %v6493_v56  ;;  %v3311_v17 = vmul.f32 %v6413_v50, %v6511_v30  ;;  %v3318_v30 = vadd.f32 %v3290_v8, %v6394_v24 }
 0x2fb   : > { %8155 = vst [vmem:[#allocation31_spill] sm:$0xff] %v6477_v44  ;;  %v6507_v5 = vld [vmem:[#allocation2 + $0x14a] sm:$0xff]  ;;  %v6537_v38 = vld [vmem:[#allocation2 + $0x1b2] sm:$0xff]  ;;  %v3307_v20 = vmul.f32 %v6413_v50, %v6495_v15  ;;  %v3308_v44 = vmul.f32 %v6413_v50, %v6497_v25  ;;  %v6590_v24 = vadd.f32 %v3297_v28, %v6408_v49  ;;  %v6612_v49 = vadd.f32 %v3304_v19, %v6429_v2 }
 0x2fc   : > { %8157 = vst [vmem:[#allocation27_spill] sm:$0xff] %v6480_v1  ;;  %v6523_v18 = vld [vmem:[#allocation2 + $0x18a] sm:$0xff]  ;;  %v6584_v1 = vadd.f32 %v3295_v61, %v6404_v3  ;;  %v6605_v3 = vadd.f32 %v3302_v6, %v6421_v41 }
 0x2fd   : > { %8159 = vst [vmem:[#allocation34_spill] sm:$0xff] %v6483_v40  ;;  %v6535_v13 = vld [vmem:[#allocation2 + $0x1aa] sm:$0xff]  ;;  %v3309_v40 = vmul.f32 %v6413_v50, %v6507_v5 }
 0x2fe   : > { %8160 = vst [vmem:[#allocation35_spill] sm:$0xff] %v6485_v60  ;;  %v3310_v60 = vmul.f32 %v6413_v50, %v6509_v29  ;;  %v6653_v19 = vld [vmem:[%s4576_s12 + $0xe] ss:$0 sm:$0xff] }
 0x2ff   : > { %8162 = vst [vmem:[#allocation39_spill] sm:$0xff] %v6489_v7  ;;  %v3312_v7 = vmul.f32 %v6413_v50, %v6521_v11  ;;  %v6627_v41 = vadd.f32 %v3309_v40, %v6450_v36  ;;  %v8184_v36 = vld [vmem:[#allocation22_spill] sm:$0xff] }
 0x300   : > { %8163 = vst [vmem:[#allocation40_spill] sm:$0xff] %v6493_v56  ;;  %v3313_v56 = vmul.f32 %v6413_v50, %v6523_v18  ;;  %v8192_v8 = vld [vmem:[#allocation23_spill] sm:$0xff]  ;;  %v6666_v61 = vld [vmem:[#allocation2 + $0x1ca] sm:$0xff] }
 0x301   : > { %8164 = vst [vmem:[#allocation41_spill] sm:$0xff] %v6495_v15  ;;  %v3314_v15 = vmul.f32 %v6413_v50, %v6525_v16  ;;  %v6636_v2 = vadd.f32 %v3312_v7, %v6465_v32  ;;  %v8186_v32 = vld [vmem:[#allocation11_spill] sm:$0xff]  ;;  %v8191_v7 = vld [vmem:[#allocation14_spill] sm:$0xff] }
 0x302   : > { %8165 = vst [vmem:[#allocation24_spill] sm:$0xff] %v6497_v25  ;;  %v3315_v25 = vmul.f32 %v6413_v50, %v6535_v13 }
 0x303   : > { %8166 = vst [vmem:[#allocation25_spill] sm:$0xff] %v6507_v5  ;;  %v3316_v5 = vmul.f32 %v6413_v50, %v6537_v38  ;;  %v6609_v50 = vadd.f32 %v3303_v48, %v6427_v45  ;;  %v6630_v48 = vadd.f32 %v3310_v60, %v6453_v37  ;;  %v6633_v45 = vadd.f32 %v3311_v17, %v6462_v9  ;;  %v8190_v60 = vld [vmem:[#allocation16_spill] sm:$0xff] }
 0x304   : > { %8167 = vst [vmem:[#allocation26_spill] sm:$0xff] %v6509_v29  ;;  %v6568_v29 = vadd.f32 %v3289_v53, %v6392_v35  ;;  %v6587_v35 = vadd.f32 %v3296_v55, %v6406_v26  ;;  %v4383_v26 = vld [vmem:[%s4576_s12 + $0x9] ss:$0 sm:$0xff] }
 0x305   : > { %8169 = vst [vmem:[#allocation30_spill] sm:$0xff] %v6521_v11  ;;  %v6572_v11 = vadd.f32 %v3291_v4, %v6396_v23  ;;  %v6593_v23 = vadd.f32 %v3298_v43, %v6410_v54  ;;  %v6615_v54 = vadd.f32 %v3305_v63, %v6431_v39  ;;  %v6639_v39 = vadd.f32 %v3313_v56, %v6468_v51  ;;  %v8185_v63 = vld [vmem:[#allocation10_spill] sm:$0xff]  ;;  %v8194_v4 = vld [vmem:[#allocation31_spill] sm:$0xff]  ;;  %v8196_v55 = vld [vmem:[#allocation37_spill] sm:$0xff] }
 0x306   : > { %8170 = vst [vmem:[#allocation33_spill] sm:$0xff] %v6523_v18  ;;  %v6575_v18 = vadd.f32 %v3292_v62, %v6398_v12  ;;  %v6596_v12 = vadd.f32 %v3299_v57, %v6415_v31  ;;  %v6618_v31 = vadd.f32 %v3306_v22, %v6433_v14  ;;  %v3379_v14 = vmul.f32 %v4383_v26, %v6457_v58  ;;  %v8187_v22 = vld [vmem:[#allocation38_spill] sm:$0xff]  ;;  %v8197_v43 = vld [vmem:[#allocation39_spill] sm:$0xff] }
 0x307   : > { %8171 = vst [vmem:[#allocation36_spill] sm:$0xff] %v6525_v16  ;;  %v6578_v16 = vadd.f32 %v3293_v33, %v6400_v21  ;;  %v6599_v21 = vadd.f32 %v3300_v0, %v6417_v59  ;;  %v6621_v59 = vadd.f32 %v3307_v20, %v6444_v42  ;;  %v6643_v0 = vadd.f32 %v3314_v15, %v6471_v46  ;;  %v8182_v42 = vld [vmem:[#allocation34_spill] sm:$0xff]  ;;  %v8188_v20 = vld [vmem:[#allocation12_spill] sm:$0xff]  ;;  %v8193_v15 = vld [vmem:[#allocation19_spill] sm:$0xff] }
 0x308   : > { %8172 = vst [vmem:[#allocation15_spill] sm:$0xff] %v6535_v13  ;;  %v6581_v13 = vadd.f32 %v3294_v52, %v6402_v47  ;;  %v6602_v47 = vadd.f32 %v3301_v34, %v6419_v10  ;;  %v6624_v10 = vadd.f32 %v3308_v44, %v6447_v27  ;;  %v8180_v34 = vld [vmem:[#allocation27_spill] sm:$0xff]  ;;  %v6649_v27 = vadd.f32 %v3316_v5, %v8182_v42  ;;  %v8189_v44 = vld [vmem:[#allocation9_spill] sm:$0xff] }
 0x309   : > { %8173 = vst [vmem:[#allocation32_spill] sm:$0xff] %v6537_v38  ;;  %v6646_v6 = vadd.f32 %v3315_v25, %v8180_v34  ;;  %v3378_v37 = vmul.f32 %v4383_v26, %v8184_v36  ;;  %v3380_v9 = vmul.f32 %v4383_v26, %v8185_v63  ;;  %v3381_v51 = vmul.f32 %v4383_v26, %v8186_v32  ;;  %v8195_v33 = vld [vmem:[#allocation35_spill] sm:$0xff]  ;;  %v8198_v34 = vld [vmem:[#allocation40_spill] sm:$0xff]  ;;  %v8199_v36 = vld [vmem:[#allocation41_spill] sm:$0xff] }
 0x30a   : > { %8174 = vst [vmem:[#allocation20_spill] sm:$0xff] %v6627_v41  ;;  %v3382_v58 = vmul.f32 %v4383_v26, %v8187_v22  ;;  %v3383_v46 = vmul.f32 %v4383_v26, %v8188_v20  ;;  %v3384_v40 = vmul.f32 %v4383_v26, %v8189_v44  ;;  %v3385_v17 = vmul.f32 %v4383_v26, %v8190_v60 }
 0x30b   : > { %8175 = vst [vmem:[#allocation13_spill] sm:$0xff] %v6630_v48  ;;  %v3386_v53 = vmul.f32 %v4383_v26, %v8191_v7  ;;  %v3387_v56 = vmul.f32 %v4383_v26, %v8192_v8  ;;  %v3388_v25 = vmul.f32 %v4383_v26, %v8193_v15  ;;  %v3389_v62 = vmul.f32 %v4383_v26, %v8194_v4  ;;  %v8203_v48 = vld [vmem:[#allocation28_spill] sm:$0xff] }
 0x30c   : > { %8176 = vst [vmem:[#allocation18_spill] sm:$0xff] %v6633_v45  ;;  %v3390_v52 = vmul.f32 %v4383_v26, %v8195_v33  ;;  %v3407_v5 = vadd.f32 %v3379_v14, %v3318_v30  ;;  %v3391_v28 = vmul.f32 %v4383_v26, %v8196_v55  ;;  %v3392_v57 = vmul.f32 %v4383_v26, %v8197_v43  ;;  %v8201_v45 = vld [vmem:[#allocation25_spill] sm:$0xff]  ;;  %v8202_v30 = vld [vmem:[#allocation26_spill] sm:$0xff] }
 0x30d   : > { %8177 = vst [vmem:[#allocation29_spill] sm:$0xff] %v6636_v2  ;;  %v3393_v42 = vmul.f32 %v4383_v26, %v8198_v34  ;;  %v3396_v33 = vmul.f32 %v4383_v26, %v8201_v45  ;;  %v3397_v14 = vmul.f32 %v4383_v26, %v8202_v30  ;;  %v3468_v55 = vmul.f32 %v6653_v19, %v8186_v32  ;;  %v8204_v15 = vld [vmem:[#allocation30_spill] sm:$0xff] }
 0x30e   : > { %8178 = vst [vmem:[#allocation8_spill] sm:$0xff] %v6639_v39  ;;  %v8200_v39 = vld [vmem:[#allocation24_spill] sm:$0xff]  ;;  %v3398_v43 = vmul.f32 %v4383_v26, %v8203_v48  ;;  %v6684_v34 = vmul.f32 %v4383_v26, %v8204_v15  ;;  %v6696_v45 = vmul.f32 %v4383_v26, %v6537_v38  ;;  %v6699_v30 = vmul.f32 %v4383_v26, %v6666_v61 }
 0x30f   : > { %8179 = vst [vmem:[#allocation17_spill] sm:$0xff] %v6643_v0  ;;  %v6675_v0 = vld [vmem:[#allocation2 + $0x1d2] sm:$0xff]  ;;  %v3395_v2 = vmul.f32 %v4383_v26, %v8200_v39  ;;  %v8206_v41 = vld [vmem:[#allocation36_spill] sm:$0xff]  ;;  %v3496_v32 = vadd.f32 %v3468_v55, %v3407_v5  ;;  %v3406_v15 = vadd.f32 %v3378_v37, %v6568_v29  ;;  %v3411_v38 = vadd.f32 %v3383_v46, %v6581_v13 }
 0x310   : > { %8181 = vst [vmem:[#allocation21_spill] sm:$0xff] %v6646_v6  ;;  %v6673_v6 = vld [vmem:[%s4576_s12 + $0x13] ss:$0 sm:$0xff]  ;;  %v6690_v7 = vmul.f32 %v4383_v26, %v8206_v41  ;;  %v6702_v48 = vmul.f32 %v4383_v26, %v6675_v0  ;;  %v3409_v41 = vadd.f32 %v3381_v51, %v6575_v18  ;;  %v3414_v55 = vadd.f32 %v3386_v53, %v6590_v24 }
 0x311   : > { %8183 = vst [vmem:[#allocation27_spill] sm:$0xff] %v6649_v27  ;;  %v3394_v27 = vmul.f32 %v4383_v26, %v8199_v36  ;;  %v8205_v36 = vld [vmem:[#allocation33_spill] sm:$0xff]  ;;  %v8208_v39 = vld [vmem:[#allocation15_spill] sm:$0xff]  ;;  %v3557_v5 = vmul.f32 %v6673_v6, %v8188_v20  ;;  %v3467_v29 = vmul.f32 %v6653_v19, %v8185_v63  ;;  %v3415_v18 = vadd.f32 %v3387_v56, %v6593_v23 }
 0x312   : > { %v6687_v4 = vmul.f32 %v4383_v26, %v8205_v36  ;;  %8207 = vst [vmem:[#allocation34_spill] sm:$0xff] %v6690_v7  ;;  %v6693_v8 = vmul.f32 %v4383_v26, %v8208_v39  ;;  %v3408_v36 = vadd.f32 %v3380_v9, %v6572_v11  ;;  %v6708_v7 = vld [vmem:[%s4576_s12 + $0x18] ss:$0 sm:$0xff]  ;;  %v3410_v39 = vadd.f32 %v3382_v58, %v6578_v16 }
 0x313   : > { %8209 = vst [vmem:[#allocation22_spill] sm:$0xff] %v6696_v45  ;;  %v3412_v45 = vadd.f32 %v3384_v40, %v6584_v1  ;;  %v3413_v26 = vadd.f32 %v3385_v17, %v6587_v35  ;;  %v3470_v11 = vmul.f32 %v6653_v19, %v8188_v20  ;;  %v6723_v16 = vadd.f32 %v3388_v25, %v6596_v12  ;;  %v8211_v25 = vld [vmem:[#allocation14_spill] sm:$0xff] }
 0x314   : > { %v6726_v13 = vadd.f32 %v3389_v62, %v6599_v21  ;;  %v3585_v1 = vadd.f32 %v3557_v5, %v3496_v32  ;;  %v6729_v37 = vadd.f32 %v3390_v52, %v6602_v47  ;;  %v3469_v35 = vmul.f32 %v6653_v19, %v8187_v22 }
 0x315   : > { %v3495_v24 = vadd.f32 %v3467_v29, %v3406_v15  ;;  %v3498_v63 = vadd.f32 %v3470_v11, %v3409_v41  ;;  %v6734_v9 = vadd.f32 %v3391_v28, %v6605_v3  ;;  %v6737_v23 = vadd.f32 %v3392_v57, %v6609_v50 }
 0x316   : > { %v6740_v12 = vadd.f32 %v3393_v42, %v6612_v49  ;;  %v3646_v21 = vmul.f32 %v6708_v7, %v8190_v60  ;;  %v3472_v47 = vmul.f32 %v6653_v19, %v8190_v60  ;;  %v3497_v51 = vadd.f32 %v3469_v35, %v3408_v36  ;;  %v8213_v42 = vld [vmem:[#allocation20_spill] sm:$0xff] }
 0x317   : > { %v3556_v58 = vmul.f32 %v6673_v6, %v8187_v22  ;;  %v3559_v3 = vmul.f32 %v6673_v6, %v8190_v60  ;;  %v6751_v41 = vadd.f32 %v3394_v27, %v6615_v54  ;;  %v6754_v50 = vadd.f32 %v3395_v2, %v6618_v31  ;;  %v8210_v27 = vld [vmem:[#allocation23_spill] sm:$0xff] }
 0x318   : > { %v3471_v49 = vmul.f32 %v6653_v19, %v8189_v44  ;;  %v6758_v20 = vadd.f32 %v3646_v21, %v3585_v1  ;;  %v3500_v46 = vadd.f32 %v3472_v47, %v3411_v38  ;;  %v3558_v40 = vmul.f32 %v6673_v6, %v8189_v44 }
 0x319   : > { %v3584_v17 = vadd.f32 %v3556_v58, %v3495_v24  ;;  %v3587_v22 = vadd.f32 %v3559_v3, %v3498_v63  ;;  %v6763_v53 = vadd.f32 %v3396_v33, %v6621_v59  ;;  %v6766_v54 = vadd.f32 %v3397_v14, %v6624_v10  ;;  %v8212_v33 = vld [vmem:[#allocation7_spill] sm:$0xff] }
 0x31a   : > { %v3474_v31 = vmul.f32 %v6653_v19, %v8210_v27  ;;  %v3499_v2 = vadd.f32 %v3471_v49, %v3410_v39  ;;  %v3561_v60 = vmul.f32 %v6673_v6, %v8210_v27  ;;  %v3586_v56 = vadd.f32 %v3558_v40, %v3497_v51  ;;  %v8214_v14 = vld [vmem:[#allocation31_spill] sm:$0xff]  ;;  %v8216_v49 = vld [vmem:[#allocation13_spill] sm:$0xff] }
 0x31b   : > { %v3645_v38 = vmul.f32 %v6708_v7, %v8189_v44  ;;  %v3648_v15 = vmul.f32 %v6708_v7, %v8210_v27  ;;  %v3473_v59 = vmul.f32 %v6653_v19, %v8211_v25  ;;  %v3560_v10 = vmul.f32 %v6673_v6, %v8211_v25  ;;  %v8215_v24 = vld [vmem:[#allocation19_spill] sm:$0xff]  ;;  %v8217_v40 = vld [vmem:[#allocation37_spill] sm:$0xff] }
 0x31c   : > { %v3502_v62 = vadd.f32 %v3474_v31, %v3413_v26  ;;  %v3702_v39 = vmul.f32 %v8212_v33, %v6758_v20  ;;  %v3589_v52 = vadd.f32 %v3561_v60, %v3500_v46  ;;  %v3647_v28 = vmul.f32 %v6708_v7, %v8211_v25 }
 0x31d   : > { %v6784_v57 = vadd.f32 %v3645_v38, %v3584_v17  ;;  %v6786_v44 = vadd.f32 %v3648_v15, %v3587_v22  ;;  %v6789_v36 = vadd.f32 %v3398_v43, %v8213_v42  ;;  %v3476_v32 = vmul.f32 %v6653_v19, %v8214_v14 }
 0x31e   : > { %v3501_v5 = vadd.f32 %v3473_v59, %v3412_v45  ;;  %v3563_v26 = vmul.f32 %v6673_v6, %v8214_v14  ;;  %v3588_v29 = vadd.f32 %v3560_v10, %v3499_v2  ;;  %v3650_v11 = vmul.f32 %v6708_v7, %v8214_v14 }
 0x31f   : > { %v6797_v1 = vadd.f32 %v3647_v28, %v3586_v56  ;;  %v3729_v35 = vadd.f32 %v3702_v39, %v6784_v57  ;;  %v3475_v63 = vmul.f32 %v6653_v19, %v8215_v24  ;;  %v3504_v43 = vadd.f32 %v3476_v32, %v3415_v18  ;;  %v8218_v56 = vld [vmem:[#allocation35_spill] sm:$0xff]  ;;  %v8219_v39 = vld [vmem:[#allocation18_spill] sm:$0xff]  ;;  %v8220_v28 = vld [vmem:[#allocation40_spill] sm:$0xff] }
 0x320   : > { %v3562_v21 = vmul.f32 %v6673_v6, %v8215_v24  ;;  %v3591_v47 = vadd.f32 %v3563_v26, %v3502_v62  ;;  %v3649_v45 = vmul.f32 %v6708_v7, %v8215_v24  ;;  %v6806_v51 = vadd.f32 %v3650_v11, %v3589_v52  ;;  %v8221_v11 = vld [vmem:[#allocation39_spill] sm:$0xff] }
 0x321   : > { %v3704_v58 = vmul.f32 %v8212_v33, %v6786_v44  ;;  %v3730_v3 = vadd.f32 %v3729_v35, %v6797_v1  ;;  %v6813_v46 = vadd.f32 %v6684_v34, %v8216_v49  ;;  %v3478_v18 = vmul.f32 %v6653_v19, %v8217_v40  ;;  %v8224_v49 = vld [vmem:[#allocation24_spill] sm:$0xff] }
 0x322   : > { %v3503_v17 = vadd.f32 %v3475_v63, %v3414_v55  ;;  %v3565_v22 = vmul.f32 %v6673_v6, %v8217_v40  ;;  %v3590_v27 = vadd.f32 %v3562_v21, %v3501_v5  ;;  %v3652_v31 = vmul.f32 %v6708_v7, %v8217_v40 }
 0x323   : > { %v6821_v2 = vadd.f32 %v3649_v45, %v3588_v29  ;;  %v3731_v60 = vadd.f32 %v3730_v3, %v3704_v58  ;;  %v3477_v38 = vmul.f32 %v6653_v19, %v8218_v56  ;;  %v3506_v34 = vadd.f32 %v3478_v18, %v6726_v13  ;;  %v8222_v45 = vld [vmem:[#allocation29_spill] sm:$0xff]  ;;  %v8223_v58 = vld [vmem:[#allocation34_spill] sm:$0xff] }
 0x324   : > { %v3564_v15 = vmul.f32 %v6673_v6, %v8218_v56  ;;  %v3593_v25 = vadd.f32 %v3565_v22, %v3504_v43  ;;  %v3651_v55 = vmul.f32 %v6708_v7, %v8218_v56  ;;  %v6830_v59 = vadd.f32 %v3652_v31, %v3591_v47 }
 0x325   : > { %v3706_v62 = vmul.f32 %v8212_v33, %v6806_v51  ;;  %v3732_v10 = vadd.f32 %v3731_v60, %v6821_v2  ;;  %v6837_v52 = vadd.f32 %v6687_v4, %v8219_v39  ;;  %v3480_v13 = vmul.f32 %v6653_v19, %v8220_v28  ;;  %v8225_v60 = vld [vmem:[#allocation41_spill] sm:$0xff] }
 0x326   : > { %v3505_v42 = vadd.f32 %v3477_v38, %v6723_v16  ;;  %v3567_v14 = vmul.f32 %v6673_v6, %v8220_v28  ;;  %v3592_v32 = vadd.f32 %v3564_v15, %v3503_v17  ;;  %v3654_v5 = vmul.f32 %v6708_v7, %v8220_v28  ;;  %v8227_v28 = vld [vmem:[#allocation26_spill] sm:$0xff] }
 0x327   : > { %v6846_v26 = vadd.f32 %v3651_v55, %v3590_v27  ;;  %v3733_v29 = vadd.f32 %v3732_v10, %v3706_v62  ;;  %v3479_v35 = vmul.f32 %v6653_v19, %v8221_v11  ;;  %v3508_v4 = vadd.f32 %v3480_v13, %v6734_v9  ;;  %v8226_v10 = vld [vmem:[#allocation8_spill] sm:$0xff] }
 0x328   : > { %v3566_v24 = vmul.f32 %v6673_v6, %v8221_v11  ;;  %v3595_v63 = vadd.f32 %v3567_v14, %v3506_v34  ;;  %v3653_v16 = vmul.f32 %v6708_v7, %v8221_v11  ;;  %v6855_v43 = vadd.f32 %v3654_v5, %v3593_v25  ;;  %v8228_v11 = vld [vmem:[#allocation25_spill] sm:$0xff] }
 0x329   : > { %v3708_v21 = vmul.f32 %v8212_v33, %v6830_v59  ;;  %v3734_v47 = vadd.f32 %v3733_v29, %v6846_v26  ;;  %v6862_v3 = vadd.f32 %v8223_v58, %v8222_v45  ;;  %v3482_v9 = vmul.f32 %v6653_v19, %v8224_v49  ;;  %v8230_v45 = vld [vmem:[#allocation22_spill] sm:$0xff] }
 0x32a   : > { %v3507_v40 = vadd.f32 %v3479_v35, %v6729_v37  ;;  %v3569_v18 = vmul.f32 %v6673_v6, %v8224_v49  ;;  %v3594_v17 = vadd.f32 %v3566_v24, %v3505_v42  ;;  %v3656_v22 = vmul.f32 %v6708_v7, %v8224_v49  ;;  %v8231_v49 = vld [vmem:[#allocation30_spill] sm:$0xff] }
 0x32b   : > { %v6871_v27 = vadd.f32 %v3653_v16, %v3592_v32  ;;  %v3735_v31 = vadd.f32 %v3734_v47, %v3708_v21  ;;  %v3481_v56 = vmul.f32 %v6653_v19, %v8225_v60  ;;  %v3510_v38 = vadd.f32 %v3482_v9, %v6740_v12  ;;  %v8229_v47 = vld [vmem:[#allocation17_spill] sm:$0xff] }
 0x32c   : > { %v3568_v34 = vmul.f32 %v6673_v6, %v8225_v60  ;;  %v3597_v15 = vadd.f32 %v3569_v18, %v3508_v4  ;;  %v3655_v37 = vmul.f32 %v6708_v7, %v8225_v60  ;;  %v6880_v25 = vadd.f32 %v3656_v22, %v3595_v63  ;;  %v8232_v60 = vld [vmem:[#allocation28_spill] sm:$0xff] }
 0x32d   : > { %v3710_v55 = vmul.f32 %v8212_v33, %v6855_v43  ;;  %v3736_v62 = vadd.f32 %v3735_v31, %v6871_v27  ;;  %v6887_v39 = vadd.f32 %v6693_v8, %v8226_v10  ;;  %v3484_v12 = vmul.f32 %v6653_v19, %v8227_v28  ;;  %v8233_v10 = vld [vmem:[#allocation21_spill] sm:$0xff] }
 0x32e   : > { %v3509_v13 = vadd.f32 %v3481_v56, %v6737_v23  ;;  %v3571_v42 = vmul.f32 %v6673_v6, %v8227_v28  ;;  %v3596_v14 = vadd.f32 %v3568_v34, %v3507_v40  ;;  %v3658_v32 = vmul.f32 %v6708_v7, %v8227_v28 }
 0x32f   : > { %v6896_v5 = vadd.f32 %v3655_v37, %v3594_v17  ;;  %v3737_v29 = vadd.f32 %v3736_v62, %v3710_v55  ;;  %v3483_v35 = vmul.f32 %v6653_v19, %v8228_v11  ;;  %v3512_v8 = vadd.f32 %v3484_v12, %v6754_v50  ;;  %v8234_v12 = vld [vmem:[#allocation36_spill] sm:$0xff] }
 0x330   : > { %v3570_v4 = vmul.f32 %v6673_v6, %v8228_v11  ;;  %v3599_v24 = vadd.f32 %v3571_v42, %v3510_v38  ;;  %v3657_v23 = vmul.f32 %v6708_v7, %v8228_v11  ;;  %v6905_v63 = vadd.f32 %v3658_v32, %v3597_v15 }
 0x331   : > { %v3712_v16 = vmul.f32 %v8212_v33, %v6880_v25  ;;  %v3738_v21 = vadd.f32 %v3737_v29, %v6896_v5  ;;  %v3431_v58 = vadd.f32 %v8230_v45, %v8229_v47  ;;  %v3486_v50 = vmul.f32 %v6653_v19, %v8231_v49  ;;  %v8236_v47 = vld [vmem:[#allocation27_spill] sm:$0xff] }
 0x332   : > { %v3511_v9 = vadd.f32 %v3483_v35, %v6751_v41  ;;  %v3573_v40 = vmul.f32 %v6673_v6, %v8231_v49  ;;  %v3598_v18 = vadd.f32 %v3570_v4, %v3509_v13  ;;  %v3660_v17 = vmul.f32 %v6708_v7, %v8231_v49  ;;  %v8235_v35 = vld [vmem:[#allocation33_spill] sm:$0xff]  ;;  %v8237_v49 = vld [vmem:[#allocation32_spill] sm:$0xff] }
 0x333   : > { %v6919_v22 = vadd.f32 %v3657_v23, %v3596_v14  ;;  %v3739_v31 = vadd.f32 %v3738_v21, %v3712_v16  ;;  %v3485_v56 = vmul.f32 %v6653_v19, %v8232_v60  ;;  %v3514_v38 = vadd.f32 %v3486_v50, %v6766_v54 }
 0x334   : > { %v3572_v34 = vmul.f32 %v6673_v6, %v8232_v60  ;;  %v3601_v15 = vadd.f32 %v3573_v40, %v3512_v8  ;;  %v3659_v41 = vmul.f32 %v6708_v7, %v8232_v60  ;;  %v6928_v37 = vadd.f32 %v3660_v17, %v3599_v24  ;;  %v8238_v60 = vld [vmem:[#allocation15_spill] sm:$0xff] }
 0x335   : > { %v3714_v55 = vmul.f32 %v8212_v33, %v6905_v63  ;;  %v3740_v62 = vadd.f32 %v3739_v31, %v6919_v22  ;;  %v6935_v28 = vadd.f32 %v6699_v30, %v8233_v10  ;;  %v3488_v54 = vmul.f32 %v6653_v19, %v8234_v12 }
 0x336   : > { %v3513_v13 = vadd.f32 %v3485_v56, %v6763_v53  ;;  %v3575_v42 = vmul.f32 %v6673_v6, %v8234_v12  ;;  %v3600_v14 = vadd.f32 %v3572_v34, %v3511_v9  ;;  %v3662_v32 = vmul.f32 %v6708_v7, %v8234_v12 }
 0x337   : > { %v6944_v29 = vadd.f32 %v3659_v41, %v3598_v18  ;;  %v3741_v11 = vadd.f32 %v3740_v62, %v3714_v55  ;;  %v3487_v8 = vmul.f32 %v6653_v19, %v8235_v35  ;;  %v3516_v30 = vadd.f32 %v3488_v54, %v6813_v46 }
 0x338   : > { %v3574_v4 = vmul.f32 %v6673_v6, %v8235_v35  ;;  %v3603_v24 = vadd.f32 %v3575_v42, %v3514_v38  ;;  %v3661_v53 = vmul.f32 %v6708_v7, %v8235_v35  ;;  %v6953_v23 = vadd.f32 %v3662_v32, %v3601_v15 }
 0x339   : > { %v3716_v16 = vmul.f32 %v8212_v33, %v6928_v37  ;;  %v3742_v21 = vadd.f32 %v3741_v11, %v6944_v29  ;;  %v3433_v45 = vadd.f32 %v6702_v48, %v8236_v47  ;;  %v3490_v46 = vmul.f32 %v6653_v19, %v8237_v49 }
 0x33a   : > { %v3515_v50 = vadd.f32 %v3487_v8, %v6789_v36  ;;  %v3577_v9 = vmul.f32 %v6673_v6, %v8237_v49  ;;  %v3602_v40 = vadd.f32 %v3574_v4, %v3513_v13  ;;  %v3664_v18 = vmul.f32 %v6708_v7, %v8237_v49  ;;  %v3215_v36 = vld [vmem:[#allocation2 + $0x1f2] sm:$0xff]  ;;  %v3214_v13 = vld [vmem:[#allocation2 + $0x1ea] sm:$0xff] }
 0x33b   : > { %v6967_v17 = vadd.f32 %v3661_v53, %v3600_v14  ;;  %v3743_v31 = vadd.f32 %v3742_v21, %v3716_v16  ;;  %v3489_v56 = vmul.f32 %v6653_v19, %v8238_v60  ;;  %v3518_v48 = vadd.f32 %v3490_v46, %v6862_v3  ;;  %v3216_v46 = vld [vmem:[#allocation2 + $0x20a] sm:$0xff] }
 0x33c   : > { %v3576_v38 = vmul.f32 %v6673_v6, %v8238_v60  ;;  %v3605_v34 = vadd.f32 %v3577_v9, %v3516_v30  ;;  %v3663_v15 = vmul.f32 %v6708_v7, %v8238_v60  ;;  %v6976_v41 = vadd.f32 %v3664_v18, %v3603_v24  ;;  %v3217_v24 = vld [vmem:[#allocation2 + $0x212] sm:$0xff] }
 0x33d   : > { %v3718_v55 = vmul.f32 %v8212_v33, %v6953_v23  ;;  %v3744_v62 = vadd.f32 %v3743_v31, %v6967_v17  ;;  %v3491_v10 = vmul.f32 %v6653_v19, %v6666_v61  ;;  %v3492_v3 = vmul.f32 %v6653_v19, %v6675_v0 }
 0x33e   : > { %v3517_v12 = vadd.f32 %v3489_v56, %v6837_v52  ;;  %v3579_v54 = vmul.f32 %v6673_v6, %v6675_v0  ;;  %v3604_v42 = vadd.f32 %v3576_v38, %v3515_v50  ;;  %v3666_v14 = vmul.f32 %v6708_v7, %v6675_v0  ;;  %v3219_v38 = vld [vmem:[#allocation2 + $0x232] sm:$0xff] }
 0x33f   : > { %v6990_v32 = vadd.f32 %v3663_v15, %v3602_v40  ;;  %v3745_v11 = vadd.f32 %v3744_v62, %v3718_v55  ;;  %v3494_v35 = vmul.f32 %v6653_v19, %v3215_v36  ;;  %v3520_v8 = vadd.f32 %v3492_v3, %v3431_v58  ;;  %v3218_v3 = vld [vmem:[#allocation2 + $0x22a] sm:$0xff] }
 0x340   : > { %v3578_v30 = vmul.f32 %v6673_v6, %v6666_v61  ;;  %v3607_v4 = vadd.f32 %v3579_v54, %v3518_v48  ;;  %v3665_v52 = vmul.f32 %v6708_v7, %v6666_v61  ;;  %v6997_v53 = vadd.f32 %v3666_v14, %v3605_v34 }
 0x341   : > { %v3720_v16 = vmul.f32 %v8212_v33, %v6976_v41  ;;  %v3746_v0 = vadd.f32 %v3745_v11, %v6990_v32  ;;  %v3493_v21 = vmul.f32 %v6653_v19, %v3214_v13  ;;  %v3519_v47 = vadd.f32 %v3491_v10, %v6887_v39 }
 0x342   : > { %v3522_v58 = vadd.f32 %v3494_v35, %v3433_v45  ;;  %v3581_v49 = vmul.f32 %v6673_v6, %v3215_v36  ;;  %v3606_v50 = vadd.f32 %v3578_v30, %v3517_v12  ;;  %v3668_v9 = vmul.f32 %v6708_v7, %v3215_v36 }
 0x343   : > { %v7006_v40 = vadd.f32 %v3665_v52, %v3604_v42  ;;  %v3747_v61 = vadd.f32 %v3746_v0, %v3720_v16  ;;  %v3580_v18 = vmul.f32 %v6673_v6, %v3214_v13  ;;  %v3583_v31 = vmul.f32 %v6673_v6, %v3217_v24 }
 0x344   : > { %v3609_v60 = vadd.f32 %v3581_v49, %v3520_v8  ;;  %v3667_v56 = vmul.f32 %v6708_v7, %v3214_v13  ;;  %v3670_v19 = vmul.f32 %v6708_v7, %v3217_v24  ;;  %v7012_v39 = vadd.f32 %v3668_v9, %v3607_v4 }
 0x345   : > { %v3722_v45 = vmul.f32 %v8212_v33, %v6997_v53  ;;  %v3748_v48 = vadd.f32 %v3747_v61, %v7006_v40  ;;  %v3521_v34 = vadd.f32 %v3493_v21, %v6935_v28  ;;  %v3582_v36 = vmul.f32 %v6673_v6, %v3216_v46 }
 0x346   : > { %v3608_v15 = vadd.f32 %v3580_v18, %v3519_v47  ;;  %v3669_v55 = vmul.f32 %v6708_v7, %v3216_v46  ;;  %v7020_v62 = vadd.f32 %v3667_v56, %v3606_v50  ;;  %v3611_v12 = vadd.f32 %v3583_v31, %v3522_v58 }
 0x347   : > { %v3749_v10 = vadd.f32 %v3748_v48, %v3722_v45  ;;  %v3672_v54 = vmul.f32 %v6708_v7, %v3219_v38  ;;  %v7023_v13 = vadd.f32 %v3670_v19, %v3609_v60  ;;  %v3724_v42 = vmul.f32 %v8212_v33, %v7012_v39 }
 0x348   : > { %v3610_v28 = vadd.f32 %v3582_v36, %v3521_v34  ;;  %v3671_v6 = vmul.f32 %v6708_v7, %v3218_v3  ;;  %v7029_v11 = vadd.f32 %v3669_v55, %v3608_v15 }
 0x349   : > { %v3750_v14 = vadd.f32 %v3749_v10, %v7020_v62  ;;  %v7031_v8 = vadd.f32 %v3672_v54, %v3611_v12  ;;  %v3726_v30 = vmul.f32 %v8212_v33, %v7023_v13 }
 0x34a   : > { %v7036_v24 = vadd.f32 %v3671_v6, %v3610_v28 }
 0x34b   : > { %v3751_v35 = vadd.f32 %v3750_v14, %v3724_v42  ;;  %v3728_v16 = vmul.f32 %v8212_v33, %v7031_v8 }
 0x34d   : > { %v3752_v4 = vadd.f32 %v3751_v35, %v7029_v11 }
 0x34f   : > { %v3753_v52 = vadd.f32 %v3752_v4, %v3726_v30 }
 0x351   : > { %v3754_v0 = vadd.f32 %v3753_v52, %v7036_v24 }
 0x353   : > { %v3755_v21 = vadd.f32 %v3754_v0, %v3728_v16 }
 0x355   : > { %v3756_v7 = vrot.slane %v3755_v21, 4 }
 0x357   : > { %v3757_v47 = vadd.f32 %v3756_v7, %v3755_v21 }
 0x359   : > { %v3758_v58 = vrot.slane %v3757_v47, 2 }
 0x35b   : > { %v3759_v49 = vadd.f32 %v3758_v58, %v3757_v47 }
 0x35d   : > { %v3760_v46 = vrot.slane %v3759_v49, 1 }
 0x35f   : > { %v3761_v50 = vadd.f32 %v3760_v46, %v3759_v49 }
 0x361   : > { %v7041_v9 = vmul.f32 0.0051020407, %v3761_v50 }
 0x363   : > { %v3764_v61 = vsub.f32 %v6758_v20, %v7041_v9  ;;  %v3763_v31 = vsub.f32 %v6784_v57, %v7041_v9  ;;  %v3766_v60 = vsub.f32 %v6786_v44, %v7041_v9  ;;  %v3765_v56 = vsub.f32 %v6797_v1, %v7041_v9 }
 0x364   : > { %v3768_v45 = vsub.f32 %v6806_v51, %v7041_v9  ;;  %v3767_v34 = vsub.f32 %v6821_v2, %v7041_v9  ;;  %v3770_v55 = vsub.f32 %v6830_v59, %v7041_v9  ;;  %v3769_v54 = vsub.f32 %v6846_v26, %v7041_v9 }
 0x365   : > { %v3792_v18 = vmul.f32 %v8212_v33, %v3764_v61  ;;  %v3794_v48 = vmul.f32 %v8212_v33, %v3766_v60  ;;  %v3819_v38 = vmul.f32 %v3763_v31, %v3763_v31  ;;  %v3821_v36 = vmul.f32 %v3765_v56, %v3765_v56 }
 0x366   : > { %v3796_v10 = vmul.f32 %v8212_v33, %v3768_v45  ;;  %v3823_v42 = vmul.f32 %v3767_v34, %v3767_v34  ;;  %v3772_v28 = vsub.f32 %v6855_v43, %v7041_v9  ;;  %v3798_v6 = vmul.f32 %v8212_v33, %v3770_v55 }
 0x367   : > { %v3820_v19 = vmul.f32 %v3792_v18, %v3792_v18  ;;  %v3822_v3 = vmul.f32 %v3794_v48, %v3794_v48  ;;  %v3771_v4 = vsub.f32 %v6871_v27, %v7041_v9  ;;  %v3825_v52 = vmul.f32 %v3769_v54, %v3769_v54 }
 0x368   : > { %v3824_v35 = vmul.f32 %v3796_v10, %v3796_v10  ;;  %v3774_v0 = vsub.f32 %v6880_v25, %v7041_v9  ;;  %v3800_v21 = vmul.f32 %v8212_v33, %v3772_v28  ;;  %v3826_v7 = vmul.f32 %v3798_v6, %v3798_v6 }
 0x369   : > { %v3847_v15 = vadd.f32 %v3820_v19, %v3819_v38  ;;  %v3773_v58 = vsub.f32 %v6896_v5, %v7041_v9  ;;  %v3827_v49 = vmul.f32 %v3771_v4, %v3771_v4  ;;  %v3776_v50 = vsub.f32 %v6905_v63, %v7041_v9 }
 0x36a   : > { %v3802_v61 = vmul.f32 %v8212_v33, %v3774_v0  ;;  %v3828_v18 = vmul.f32 %v3800_v21, %v3800_v21  ;;  %v3775_v60 = vsub.f32 %v6919_v22, %v7041_v9  ;;  %v3778_v45 = vsub.f32 %v6928_v37, %v7041_v9 }
 0x36b   : > { %v3848_v12 = vadd.f32 %v3847_v15, %v3821_v36  ;;  %v3829_v56 = vmul.f32 %v3773_v58, %v3773_v58  ;;  %v3804_v48 = vmul.f32 %v8212_v33, %v3776_v50  ;;  %v3777_v36 = vsub.f32 %v6944_v29, %v7041_v9 }
 0x36c   : > { %v3830_v38 = vmul.f32 %v3802_v61, %v3802_v61  ;;  %v3831_v15 = vmul.f32 %v3775_v60, %v3775_v60  ;;  %v3780_v10 = vsub.f32 %v6953_v23, %v7041_v9  ;;  %v3782_v6 = vsub.f32 %v6976_v41, %v7041_v9 }
 0x36d   : > { %v3849_v14 = vadd.f32 %v3848_v12, %v3822_v3  ;;  %v3806_v3 = vmul.f32 %v8212_v33, %v3778_v45  ;;  %v3832_v12 = vmul.f32 %v3804_v48, %v3804_v48  ;;  %v3784_v21 = vsub.f32 %v6997_v53, %v7041_v9 }
 0x36e   : > { %v3786_v61 = vsub.f32 %v7012_v39, %v7041_v9  ;;  %v3788_v48 = vsub.f32 %v7023_v13, %v7041_v9 }
 0x36f   : > { %v3850_v30 = vadd.f32 %v3849_v14, %v3823_v42  ;;  %v3779_v42 = vsub.f32 %v6967_v17, %v7041_v9  ;;  %v3833_v14 = vmul.f32 %v3777_v36, %v3777_v36 }
 0x371   : > { %v3851_v16 = vadd.f32 %v3850_v30, %v3824_v35  ;;  %v3808_v35 = vmul.f32 %v8212_v33, %v3780_v10  ;;  %v3834_v30 = vmul.f32 %v3806_v3, %v3806_v3  ;;  %v3790_v3 = vsub.f32 %v7031_v8, %v7041_v9 }
 0x373   : > { %v3852_v47 = vadd.f32 %v3851_v16, %v3825_v52  ;;  %v3781_v52 = vsub.f32 %v6990_v32, %v7041_v9  ;;  %v3835_v16 = vmul.f32 %v3779_v42, %v3779_v42 }
 0x375   : > { %v3853_v46 = vadd.f32 %v3852_v47, %v3826_v7  ;;  %v3810_v7 = vmul.f32 %v8212_v33, %v3782_v6  ;;  %v3836_v47 = vmul.f32 %v3808_v35, %v3808_v35  ;;  %v3818_v35 = vmul.f32 %v8212_v33, %v3790_v3 }
 0x377   : > { %v3854_v31 = vadd.f32 %v3853_v46, %v3827_v49  ;;  %v3783_v49 = vsub.f32 %v7006_v40, %v7041_v9  ;;  %v3837_v46 = vmul.f32 %v3781_v52, %v3781_v52 }
 0x379   : > { %v3855_v19 = vadd.f32 %v3854_v31, %v3828_v18  ;;  %v3812_v18 = vmul.f32 %v8212_v33, %v3784_v21  ;;  %v3838_v31 = vmul.f32 %v3810_v7, %v3810_v7 }
 0x37b   : > { %v3856_v34 = vadd.f32 %v3855_v19, %v3829_v56  ;;  %v3785_v56 = vsub.f32 %v7020_v62, %v7041_v9  ;;  %v3839_v19 = vmul.f32 %v3783_v49, %v3783_v49 }
 0x37d   : > { %v3857_v55 = vadd.f32 %v3856_v34, %v3830_v38  ;;  %v3814_v38 = vmul.f32 %v8212_v33, %v3786_v61  ;;  %v3840_v34 = vmul.f32 %v3812_v18, %v3812_v18 }
 0x37f   : > { %v3858_v54 = vadd.f32 %v3857_v55, %v3831_v15  ;;  %v3787_v15 = vsub.f32 %v7029_v11, %v7041_v9  ;;  %v3841_v55 = vmul.f32 %v3785_v56, %v3785_v56 }
 0x381   : > { %v3859_v28 = vadd.f32 %v3858_v54, %v3832_v12  ;;  %v3816_v12 = vmul.f32 %v8212_v33, %v3788_v48  ;;  %v3842_v54 = vmul.f32 %v3814_v38, %v3814_v38  ;;  %v3881_v48 = vld [vmem:[%s546_s24] sm:$0x1] }
 0x383   : > { %v3860_v4 = vadd.f32 %v3859_v28, %v3833_v14  ;;  %v3789_v14 = vsub.f32 %v7036_v24, %v7041_v9  ;;  %v3843_v28 = vmul.f32 %v3787_v15, %v3787_v15 }
 0x385   : > { %v3861_v0 = vadd.f32 %v3860_v4, %v3834_v30  ;;  %v3844_v30 = vmul.f32 %v3816_v12, %v3816_v12  ;;  %v3845_v52 = vmul.f32 %v3789_v14, %v3789_v14 }
 0x387   : > { %v3862_v58 = vadd.f32 %v3861_v0, %v3835_v16  ;;  %v3846_v0 = vmul.f32 %v3818_v35, %v3818_v35 }
 0x389   : > { %v3863_v50 = vadd.f32 %v3862_v58, %v3836_v47 }
 0x38b   : > { %v3864_v60 = vadd.f32 %v3863_v50, %v3837_v46 }
 0x38d   : > { %v3865_v45 = vadd.f32 %v3864_v60, %v3838_v31 }
 0x38f   : > { %v3866_v36 = vadd.f32 %v3865_v45, %v3839_v19 }
 0x391   : > { %v3867_v10 = vadd.f32 %v3866_v36, %v3840_v34 }
 0x393   : > { %v3868_v42 = vadd.f32 %v3867_v10, %v3841_v55  ;;  %v3894_v55 = vld [vmem:[%s549_s14] sm:$0x1] }
 0x395   : > { %v3869_v6 = vadd.f32 %v3868_v42, %v3842_v54 }
 0x397   : > { %v3870_v4 = vadd.f32 %v3869_v6, %v3843_v28 }
 0x399   : > { %v3871_v16 = vadd.f32 %v3870_v4, %v3844_v30 }
 0x39b   : > { %v3872_v21 = vadd.f32 %v3871_v16, %v3845_v52 }
 0x39d   : > { %v3873_v7 = vadd.f32 %v3872_v21, %v3846_v0 }
 0x39f   : > { %v3874_v47 = vrot.slane %v3873_v7, 4 }
 0x3a1   : > { %v3875_v58 = vadd.f32 %v3874_v47, %v3873_v7 }
 0x3a3   : > { %v3876_v49 = vrot.slane %v3875_v58, 2 }
 0x3a5   : > { %v3877_v46 = vadd.f32 %v3876_v49, %v3875_v58 }
 0x3a7   : > { %v3878_v50 = vrot.slane %v3877_v46, 1 }
 0x3a9   : > { %v3879_v61 = vadd.f32 %v3878_v50, %v3877_v46 }
 0x3ab   : > { %v3880_v18 = vmul.f32 0.0051020407, %v3879_v61 }
 0x3ad   : > { %v3882_v31 = vadd.f32 0.001, %v3880_v18 }
 0x3af   : > { %4389 = vrsqrt.f32 %v3882_v31  ;;  %vm3889_vm6 = vweird.f32 %v3882_v31 }
 0x3b5   : > { %v4390_v60 = vpop.eup %4389 }
 0x3b6   : > { %v3884_v33 = vmul.f32 %v4390_v60, %v3882_v31  ;;  %vm3890_vm5 = vweird.f32 %v4390_v60 }
 0x3b7   : > { %vm3891_vm7 = vmor %vm3889_vm6, %vm3890_vm5 }
 0x3b8   : > { %v3885_v56 = vmul.f32 %v4390_v60, %v3884_v33 }
 0x3ba   : > { %v3886_v19 = vmul.f32 0.5, %v3885_v56 }
 0x3bc   : > { %v3887_v45 = vsub.f32 1.5, %v3886_v19 }
 0x3be   : > { %v3888_v38 = vmul.f32 %v4390_v60, %v3887_v45 }
 0x3c0   : > { %v3892_v34 = vsel %vm3891_vm7, %v4390_v60, %v3888_v38 }
 0x3c1   : > { %v3893_v36 = vmul.f32 %v3892_v34, %v3881_v48 }
 0x3c3   : > { %v3895_v15 = vmul.f32 %v3893_v36, %v7041_v9  ;;  %v7122_v3 = vperm.slane %v3893_v36, 0 }
 0x3c5   : > { %v3896_v10 = vsub.f32 %v3894_v55, %v3895_v15  ;;  %v3900_v12 = vmul.f32 %v7122_v3, %v6784_v57  ;;  %v3901_v54 = vmul.f32 %v7122_v3, %v6758_v20  ;;  %v3902_v42 = vmul.f32 %v7122_v3, %v6797_v1 }
 0x3c6   : > { %v3903_v28 = vmul.f32 %v7122_v3, %v6786_v44  ;;  %v3904_v9 = vmul.f32 %v7122_v3, %v6821_v2  ;;  %v3905_v20 = vmul.f32 %v7122_v3, %v6806_v51  ;;  %v3906_v1 = vmul.f32 %v7122_v3, %v6846_v26 }
 0x3c7   : > { %v7131_v14 = vperm.slane %v3896_v10, 0  ;;  %v3907_v44 = vmul.f32 %v7122_v3, %v6830_v59  ;;  %v3908_v2 = vmul.f32 %v7122_v3, %v6871_v27  ;;  %v3909_v52 = vmul.f32 %v7122_v3, %v6855_v43 }
 0x3c8   : > { %v3910_v59 = vmul.f32 %v7122_v3, %v6896_v5  ;;  %v3911_v27 = vmul.f32 %v7122_v3, %v6880_v25  ;;  %v3912_v43 = vmul.f32 %v7122_v3, %v6919_v22  ;;  %v3913_v5 = vmul.f32 %v7122_v3, %v6905_v63 }
 0x3c9   : > { %v3931_v6 = vadd.f32 %v7131_v14, %v3900_v12  ;;  %v3932_v35 = vadd.f32 %v7131_v14, %v3901_v54  ;;  %v3933_v57 = vadd.f32 %v7131_v14, %v3902_v42  ;;  %v3934_v30 = vadd.f32 %v7131_v14, %v3903_v28 }
 0x3ca   : > { %v3935_v4 = vadd.f32 %v7131_v14, %v3904_v9  ;;  %v3936_v51 = vadd.f32 %v7131_v14, %v3905_v20  ;;  %v3937_v26 = vadd.f32 %v7131_v14, %v3906_v1  ;;  %v3938_v16 = vadd.f32 %v7131_v14, %v3907_v44 }
 0x3cb   : > { %3959 = vst [vmem:[%s7146_s29] sm:$0xff] %v3931_v6  ;;  %v3939_v0 = vadd.f32 %v7131_v14, %v3908_v2  ;;  %v3940_v21 = vadd.f32 %v7131_v14, %v3909_v52  ;;  %v3941_v7 = vadd.f32 %v7131_v14, %v3910_v59  ;;  %v3942_v47 = vadd.f32 %v7131_v14, %v3911_v27 }
 0x3cc   : > { %3960 = vst [vmem:[%s7146_s29 + $0x8] sm:$0xff] %v3932_v35  ;;  %v3914_v25 = vmul.f32 %v7122_v3, %v6944_v29  ;;  %v3943_v58 = vadd.f32 %v7131_v14, %v3912_v43  ;;  %v3915_v22 = vmul.f32 %v7122_v3, %v6928_v37  ;;  %v3944_v49 = vadd.f32 %v7131_v14, %v3913_v5 }
 0x3cd   : > { %3961 = vst [vmem:[%s7146_s29 + $0x10] sm:$0xff] %v3933_v57  ;;  %v3916_v63 = vmul.f32 %v7122_v3, %v6967_v17  ;;  %v3917_v29 = vmul.f32 %v7122_v3, %v6953_v23  ;;  %v3918_v37 = vmul.f32 %v7122_v3, %v6990_v32  ;;  %v3919_v17 = vmul.f32 %v7122_v3, %v6976_v41 }
 0x3ce   : > { %3962 = vst [vmem:[%s7146_s29 + $0x18] sm:$0xff] %v3934_v30  ;;  %v3945_v46 = vadd.f32 %v7131_v14, %v3914_v25  ;;  %v3946_v50 = vadd.f32 %v7131_v14, %v3915_v22  ;;  %v3920_v23 = vmul.f32 %v7122_v3, %v7006_v40  ;;  %v3921_v32 = vmul.f32 %v7122_v3, %v6997_v53 }
 0x3cf   : > { %3963 = vst [vmem:[%s7146_s29 + $0x20] sm:$0xff] %v3935_v4  ;;  %v3947_v61 = vadd.f32 %v7131_v14, %v3916_v63  ;;  %v3948_v18 = vadd.f32 %v7131_v14, %v3917_v29  ;;  %v3949_v31 = vadd.f32 %v7131_v14, %v3918_v37  ;;  %v3950_v60 = vadd.f32 %v7131_v14, %v3919_v17 }
 0x3d0   : > { %3964 = vst [vmem:[%s7146_s29 + $0x28] sm:$0xff] %v3936_v51  ;;  %v3922_v41 = vmul.f32 %v7122_v3, %v7020_v62  ;;  %v3951_v33 = vadd.f32 %v7131_v14, %v3920_v23  ;;  %v3923_v40 = vmul.f32 %v7122_v3, %v7012_v39  ;;  %v3952_v56 = vadd.f32 %v7131_v14, %v3921_v32 }
 0x3d1   : > { %3965 = vst [vmem:[%s7146_s29 + $0x30] sm:$0xff] %v3937_v26  ;;  %v3924_v53 = vmul.f32 %v7122_v3, %v7029_v11  ;;  %v3925_v62 = vmul.f32 %v7122_v3, %v7023_v13  ;;  %v3926_v45 = vmul.f32 %v7122_v3, %v7036_v24  ;;  %v3927_v11 = vmul.f32 %v7122_v3, %v7031_v8 }
 0x3d2   : > { %3966 = vst [vmem:[%s7146_s29 + $0x38] sm:$0xff] %v3938_v16  ;;  %v3953_v19 = vadd.f32 %v7131_v14, %v3922_v41  ;;  %v3954_v39 = vadd.f32 %v7131_v14, %v3923_v40  ;;  %v4078_v8 = vld [vmem:[%s7146_s29] sm:$0xff] (%p4492_p5) }
 0x3d3   : > { %3967 = vst [vmem:[%s7146_s29 + $0x40] sm:$0xff] %v3939_v0  ;;  %v3955_v48 = vadd.f32 %v7131_v14, %v3924_v53  ;;  %v3956_v38 = vadd.f32 %v7131_v14, %v3925_v62  ;;  %v3957_v34 = vadd.f32 %v7131_v14, %v3926_v45  ;;  %v3958_v13 = vadd.f32 %v7131_v14, %v3927_v11  ;;  %v4080_v24 = vld [vmem:[%s7146_s29 + $0x8] sm:$0xff] (%p4492_p5) }
 0x3d4   : > { %3968 = vst [vmem:[%s7146_s29 + $0x48] sm:$0xff] %v3940_v21  ;;  %v4082_v36 = vld [vmem:[%s7146_s29 + $0x10] sm:$0xff] (%p4492_p5) }
 0x3d5   : > { %3969 = vst [vmem:[%s7146_s29 + $0x50] sm:$0xff] %v3941_v7  ;;  %v4084_v15 = vld [vmem:[%s7146_s29 + $0x18] sm:$0xff] (%p4492_p5) }
 0x3d6   : > { %3970 = vst [vmem:[%s7146_s29 + $0x58] sm:$0xff] %v3942_v47  ;;  %v4086_v55 = vld [vmem:[%s7146_s29 + $0x20] sm:$0xff] (%p4492_p5) }
 0x3d7   : > { %3971 = vst [vmem:[%s7146_s29 + $0x60] sm:$0xff] %v3943_v58  ;;  %v4088_v10 = vld [vmem:[%s7146_s29 + $0x28] sm:$0xff] (%p4492_p5) }
 0x3d8   : > { %3972 = vst [vmem:[%s7146_s29 + $0x68] sm:$0xff] %v3944_v49  ;;  %v4090_v3 = vld [vmem:[%s7146_s29 + $0x30] sm:$0xff] (%p4492_p5) }
 0x3d9   : > { %3973 = vst [vmem:[%s7146_s29 + $0x70] sm:$0xff] %v3945_v46  ;;  %v4092_v12 = vld [vmem:[%s7146_s29 + $0x38] sm:$0xff] (%p4492_p5) }
 0x3da   : > { %3974 = vst [vmem:[%s7146_s29 + $0x78] sm:$0xff] %v3946_v50  ;;  %v4094_v54 = vld [vmem:[%s7146_s29 + $0x40] sm:$0xff] (%p4492_p5) }
 0x3db   : > { %3975 = vst [vmem:[%s7146_s29 + $0x80] sm:$0xff] %v3947_v61  ;;  %v4096_v42 = vld [vmem:[%s7146_s29 + $0x48] sm:$0xff] (%p4492_p5) }
 0x3dc   : > { %3976 = vst [vmem:[%s7146_s29 + $0x88] sm:$0xff] %v3948_v18  ;;  %v4098_v14 = vld [vmem:[%s7146_s29 + $0x50] sm:$0xff] (%p4492_p5) }
 0x3dd   : > { %3977 = vst [vmem:[%s7146_s29 + $0x90] sm:$0xff] %v3949_v31  ;;  %v4100_v28 = vld [vmem:[%s7146_s29 + $0x58] sm:$0xff] (%p4492_p5) }
 0x3de   : > { %3978 = vst [vmem:[%s7146_s29 + $0x98] sm:$0xff] %v3950_v60  ;;  %v4102_v9 = vld [vmem:[%s7146_s29 + $0x60] sm:$0xff] (%p4492_p5) }
 0x3df   : > { %3979 = vst [vmem:[%s7146_s29 + $0xa0] sm:$0xff] %v3951_v33  ;;  %v4104_v6 = vld [vmem:[%s7146_s29 + $0x68] sm:$0xff] (%p4492_p5) }
 0x3e0   : > { %3980 = vst [vmem:[%s7146_s29 + $0xa8] sm:$0xff] %v3952_v56  ;;  %v4106_v35 = vld [vmem:[%s7146_s29 + $0x70] sm:$0xff] (%p4492_p5) }
 0x3e1   : > { %3981 = vst [vmem:[%s7146_s29 + $0xb0] sm:$0xff] %v3953_v19  ;;  %v4108_v57 = vld [vmem:[%s7146_s29 + $0x78] sm:$0xff] (%p4492_p5) }
 0x3e2   : > { %3982 = vst [vmem:[%s7146_s29 + $0xb8] sm:$0xff] %v3954_v39  ;;  %3993 = sbr.rel (!%p4492_p5) target bundleno = 1027 (0x403), region = 131  ;;  %v4110_v20 = vld [vmem:[%s7146_s29 + $0x80] sm:$0xff] (%p4492_p5) }
 0x3e3   : > { %3983 = vst [vmem:[%s7146_s29 + $0xc0] sm:$0xff] %v3955_v48  ;;  %v4112_v30 = vld [vmem:[%s7146_s29 + $0x88] sm:$0xff] (%p4492_p5) }
 0x3e4   : > { %3984 = vst [vmem:[%s7146_s29 + $0xc8] sm:$0xff] %v3956_v38  ;;  %v4114_v1 = vld [vmem:[%s7146_s29 + $0x90] sm:$0xff] (%p4492_p5) }
 0x3e5   : > { %3985 = vst [vmem:[%s7146_s29 + $0xd0] sm:$0xff] %v3957_v34  ;;  %v4116_v4 = vld [vmem:[%s7146_s29 + $0x98] sm:$0xff] (%p4492_p5) }
 0x3e6   : > { %3986 = vst [vmem:[%s7146_s29 + $0xd8] sm:$0xff] %v3958_v13  ;;  %v4118_v44 = vld [vmem:[%s7146_s29 + $0xa0] sm:$0xff] (%p4492_p5) }
 0x3e7   : > { %4079 = vst [vmem:[%s7249_s19] sm:$0xff] %v4078_v8  ;;  %v4120_v51 = vld [vmem:[%s7146_s29 + $0xa8] sm:$0xff] }
 0x3e8   : > { %4081 = vst [vmem:[%s7249_s19 + $0x18] sm:$0xff] %v4080_v24  ;;  %v4122_v2 = vld [vmem:[%s7146_s29 + $0xb0] sm:$0xff] }
 0x3e9   : > { %4083 = vst [vmem:[%s7249_s19 + $0x30] sm:$0xff] %v4082_v36  ;;  %v4124_v26 = vld [vmem:[%s7146_s29 + $0xb8] sm:$0xff] }
 0x3ea   : > { %4085 = vst [vmem:[%s7249_s19 + $0x48] sm:$0xff] %v4084_v15  ;;  %v4126_v52 = vld [vmem:[%s7146_s29 + $0xc0] sm:$0xff] }
 0x3eb   : > { %4087 = vst [vmem:[%s7249_s19 + $0x60] sm:$0xff] %v4086_v55  ;;  %v4128_v16 = vld [vmem:[%s7146_s29 + $0xc8] sm:$0xff] }
 0x3ec   : > { %4089 = vst [vmem:[%s7249_s19 + $0x78] sm:$0xff] %v4088_v10  ;;  %v4130_v59 = vld [vmem:[%s7146_s29 + $0xd0] sm:$0xff] }
 0x3ed   : > { %4091 = vst [vmem:[%s7249_s19 + $0x90] sm:$0xff] %v4090_v3  ;;  %v4132_v0 = vld [vmem:[%s7146_s29 + $0xd8] sm:$0xff] }
 0x3ee   : > { %4093 = vst [vmem:[%s7249_s19 + $0xa8] sm:$0xff] %v4092_v12 }
 0x3ef   : > { %4095 = vst [vmem:[%s7249_s19 + $0xc0] sm:$0xff] %v4094_v54 }
 0x3f0   : > { %4097 = vst [vmem:[%s7249_s19 + $0xd8] sm:$0xff] %v4096_v42 }
 0x3f1   : > { %4099 = vst [vmem:[%s7249_s19 + $0xf0] sm:$0xff] %v4098_v14 }
 0x3f2   : > { %4101 = vst [vmem:[%s7249_s19 + $0x108] sm:$0xff] %v4100_v28 }
 0x3f3   : > { %4103 = vst [vmem:[%s7249_s19 + $0x120] sm:$0xff] %v4102_v9 }
 0x3f4   : > { %4105 = vst [vmem:[%s7249_s19 + $0x138] sm:$0xff] %v4104_v6 }
 0x3f5   : > { %4107 = vst [vmem:[%s7249_s19 + $0x150] sm:$0xff] %v4106_v35 }
 0x3f6   : > { %4109 = vst [vmem:[%s7249_s19 + $0x168] sm:$0xff] %v4108_v57 }
 0x3f7   : > { %4111 = vst [vmem:[%s7249_s19 + $0x180] sm:$0xff] %v4110_v20 }
 0x3f8   : > { %4113 = vst [vmem:[%s7249_s19 + $0x198] sm:$0xff] %v4112_v30 }
 0x3f9   : > { %4115 = vst [vmem:[%s7249_s19 + $0x1b0] sm:$0xff] %v4114_v1 }
 0x3fa   : > { %4117 = vst [vmem:[%s7249_s19 + $0x1c8] sm:$0xff] %v4116_v4 }
 0x3fb   : > { %4119 = vst [vmem:[%s7249_s19 + $0x1e0] sm:$0xff] %v4118_v44 }
 0x3fc   : > { %4121 = vst [vmem:[%s7249_s19 + $0x1f8] sm:$0xff] %v4120_v51 }
 0x3fd   : > { %4123 = vst [vmem:[%s7249_s19 + $0x210] sm:$0xff] %v4122_v2 }
 0x3fe   : > { %4125 = vst [vmem:[%s7249_s19 + $0x228] sm:$0xff] %v4124_v26 }
 0x3ff   : > { %4127 = vst [vmem:[%s7249_s19 + $0x240] sm:$0xff] %v4126_v52 }
 0x400   : > { %4129 = vst [vmem:[%s7249_s19 + $0x258] sm:$0xff] %v4128_v16 }
 0x401   : > { %4131 = vst [vmem:[%s7249_s19 + $0x270] sm:$0xff] %v4130_v59 }
 0x402   : > { %4133 = vst [vmem:[%s7249_s19 + $0x288] sm:$0xff] %v4132_v0 }
 0x403 PF: > { %p14_p11 = scmp.ge.s32.totalorder %s4476_s28, 5   ;;  %s8239_s24 = smov %s4410_s25 }
 0x404   : > { %s8240_s25 = smov %s4486_s8  ;;  %s8241_s26 = smov %s4476_s28 }
 0x405   :  { %16 = sbr.rel (!%p14_p11) target bundleno = 2 (0x2), region = 250 }

</bundles_post_ra>
